<compile_context>
chip_gen: v5e
topology: v5e:2x2
jax: 0.10.0
libtpu: 0.0.40
codegen_flags: <defaults>
</compile_context>

<pallas_src>
import functools

import numpy as np
import jax
import jax.numpy as jnp
from jax.experimental import pallas as pl
from jax.experimental.pallas import tpu as pltpu

LAYERS = [2, 20, 20, 20, 20, 20, 20, 20, 20, 1]   # `layers` from the module
N_LAYERS = len(LAYERS) - 1                        # 9 linear layers
FPAD = 128                                        # padded feature width (sublanes)
TM = 512                                          # batch rows per grid step (lanes)


def _mlp_kernel(w_ref, b_ref, xT_ref, o_ref, *, lb, ub):
    """One tile of the PINN MLP in the transposed (feature, batch) layout.

    w_ref : (9, FPAD, FPAD) VMEM   torch-layout weights, zero padded
    b_ref : (9, FPAD, 1)    VMEM   biases as columns, zero padded
    xT_ref: (2, TM)         VMEM   raw (x, t) for TM batch rows
    o_ref : (1, TM)         VMEM   lane-dense outputs
    """
    # Normalization with scalar literals only (no captured array constants).
    lb0 = float(lb[0]); lb1 = float(lb[1])
    r0 = float(ub[0]) - lb0
    r1 = float(ub[1]) - lb1

    xn0 = (xT_ref[0:1, :] - lb0) / r0                       # (1, TM)
    xn1 = (xT_ref[1:2, :] - lb1) / r1                       # (1, TM)

    # Layer 0: in-features = 2 -> two broadcasted rank-1 products (VPU),
    # avoids a K=2 MXU matmul entirely.
    w0 = w_ref[0]                                           # (FPAD, FPAD)
    z = w0[:, 0:1] * xn0 + w0[:, 1:2] * xn1 + b_ref[0]      # (FPAD, TM)
    a = jnp.tanh(z)

    # Hidden layers 1..7: (FPAD, FPAD) @ (FPAD, TM) on the MXU.
    for i in range(1, N_LAYERS - 1):
        z = jnp.dot(w_ref[i], a, preferred_element_type=jnp.float32) + b_ref[i]
        a = jnp.tanh(z)

    # Output layer: only row 0 of W8 is real; use an (8,128) slice for
    # sublane-aligned shapes, then store the lane-dense (1, TM) row.
    w_out = w_ref[N_LAYERS - 1][0:8, :]                     # (8, FPAD)
    z_out = jnp.dot(w_out, a, preferred_element_type=jnp.float32)   # (8, TM)
    o_ref[...] = z_out[0:1, :] + b_ref[N_LAYERS - 1][0:1, :]        # (1, TM)


def pack_params(weights, biases):
    """One-time packing of torch-layout params into the kernel layout.

    weights[i]: (out_i, in_i) (torch nn.Linear layout), biases[i]: (out_i,).
    Returns w_pad (9, FPAD, FPAD) and b_pad (9, FPAD, 1), zero padded.
    """
    w_pad = jnp.zeros((N_LAYERS, FPAD, FPAD), jnp.float32)
    b_pad = jnp.zeros((N_LAYERS, FPAD, 1), jnp.float32)
    for i in range(N_LAYERS):
        fi, fo = LAYERS[i], LAYERS[i + 1]
        w_pad = w_pad.at[i, :fo, :fi].set(jnp.asarray(weights[i], jnp.float32))
        b_pad = b_pad.at[i, :fo, 0].set(jnp.asarray(biases[i], jnp.float32))
    return w_pad, b_pad


@functools.partial(jax.jit, static_argnames=("lb", "ub"))
def sequential_model_forward(x, w_pad, b_pad, *, lb, ub):
    """x: (N, 2) float32; lb/ub: tuples of 2 floats (domain bounds).
    Returns (N, 1) float32 — the `Sequentialmodel.forward` output."""
    n = x.shape[0]
    n_pad = int(pl.cdiv(n, TM)) * TM

    # (2, N_pad) transposed input; padded columns are zero and simply discarded.
    xT = jnp.zeros((2, n_pad), jnp.float32).at[:, :n].set(x.astype(jnp.float32).T)

    kernel = functools.partial(_mlp_kernel, lb=tuple(lb), ub=tuple(ub))

    out = pl.pallas_call(
        kernel,
        out_shape=jax.ShapeDtypeStruct((1, n_pad), jnp.float32),
        grid_spec=pltpu.PrefetchScalarGridSpec(
            num_scalar_prefetch=0,
            grid=(n_pad // TM,),
            in_specs=[
                # weights / biases: same block every step -> VMEM-resident
                pl.BlockSpec((N_LAYERS, FPAD, FPAD), lambda i: (0, 0, 0)),
                pl.BlockSpec((N_LAYERS, FPAD, 1), lambda i: (0, 0, 0)),
                # raw (2, TM) input tile — no 128-lane padding in HBM
                pl.BlockSpec((2, TM), lambda i: (0, i)),
            ],
            # lane-dense (1, TM) output tile — unmasked stores
            out_specs=pl.BlockSpec((1, TM), lambda i: (0, i)),
        ),
        compiler_params=pltpu.CompilerParams(
            dimension_semantics=("parallel",)),
    )(w_pad, b_pad, xT)

    return out[0, :n].reshape(n, 1)


def _init_params(key):
    """Xavier-normal weights (gain=1, torch layout (out,in)), zero biases —
    matches the module's init."""
    weights, biases = [], []
    for i in range(N_LAYERS):
        fi, fo = LAYERS[i], LAYERS[i + 1]
        key, sub = jax.random.split(key)
        std = np.sqrt(2.0 / (fi + fo))
        weights.append(std * jax.random.normal(sub, (fo, fi), jnp.float32))
        biases.append(jnp.zeros((fo,), jnp.float32))
    return weights, biases


def _reference_forward(x, weights, biases, lb, ub):
    """Pure-JAX reference with torch semantics (a @ W.T + b)."""
    lb = jnp.asarray(lb, jnp.float32)
    ub = jnp.asarray(ub, jnp.float32)
    a = (x - lb) / (ub - lb)
    for i in range(N_LAYERS - 1):
        a = jnp.tanh(a @ weights[i].T + biases[i])
    return a @ weights[-1].T + biases[-1]


# TODO(synk): loss_BC / loss_PDE (autograd PDE residual) and the training loop are
# training-time machinery, not part of the forward pass, and are not implemented here.

if __name__ == "__main__":
    key = jax.random.PRNGKey(0)
    k_x, k_w = jax.random.split(key)

    # synthetic collocation points (x in [-1,1], t in [0,1]); N is deliberately
    # NOT a multiple of TM to exercise the cdiv + tail-padding path.
    N = 600
    lb = (-1.0, 0.0)
    ub = (1.0, 1.0)
    x01 = jax.random.uniform(k_x, (N, 2), jnp.float32)
    x_in = x01 * (jnp.asarray(ub) - jnp.asarray(lb)) + jnp.asarray(lb)

    weights, biases = _init_params(k_w)
    w_pad, b_pad = pack_params(weights, biases)       # one-time packing

    out = sequential_model_forward(x_in, w_pad, b_pad, lb=lb, ub=ub)
    out = jax.block_until_ready(out)
    assert out.shape == (N, 1)

    ref = _reference_forward(x_in, weights, biases, lb, ub)
    np.testing.assert_allclose(np.asarray(out), np.asarray(ref),
                               rtol=1e-4, atol=2e-5)
    print("KERNEL_OK")
</pallas_src>

<mosaic_0001>
module attributes {stable_mosaic.version = 11 : i64} {
  func.func @_mlp_kernel(%arg0: i32, %arg1: memref<9x128x128xf32, #tpu.memory_space<vmem>>, %arg2: memref<9x128x1xf32, #tpu.memory_space<vmem>>, %arg3: memref<2x512xf32, #tpu.memory_space<vmem>>, %arg4: memref<1x512xf32, #tpu.memory_space<vmem>>) attributes {dimension_semantics = [#tpu.dimension_semantics<parallel>], iteration_bounds = array<i64: 2>, scalar_prefetch = 0 : i64, scratch_operands = 0 : i64, tpu.core_type = #tpu.core_type<tc>, window_params = [{pipeline_mode = #tpu.pipeline_mode<synchronous>, transform_indices = @transform_0, window_bounds = array<i64: 9, 128, 128>}, {pipeline_mode = #tpu.pipeline_mode<synchronous>, transform_indices = @transform_1, window_bounds = array<i64: 9, 128, 1>}, {transform_indices = @transform_2, window_bounds = array<i64: 2, 512>}, {transform_indices = @transform_3, window_bounds = array<i64: 1, 512>}]} {
    %c0 = arith.constant 0 : index
    %c0_0 = arith.constant 0 : index
    %0 = vector.load %arg3[%c0, %c0_0] : memref<2x512xf32, #tpu.memory_space<vmem>>, vector<1x512xf32>
    %cst = arith.constant -1.000000e+00 : f32
    %1 = vector.broadcast %cst : f32 to vector<1x512xf32>
    %2 = arith.subf %0, %1 : vector<1x512xf32>
    %cst_1 = arith.constant 2.000000e+00 : f32
    %3 = vector.broadcast %cst_1 : f32 to vector<1x512xf32>
    %4 = arith.divf %2, %3 : vector<1x512xf32>
    %c1 = arith.constant 1 : index
    %c0_2 = arith.constant 0 : index
    %5 = vector.load %arg3[%c1, %c0_2] : memref<2x512xf32, #tpu.memory_space<vmem>>, vector<1x512xf32>
    %cst_3 = arith.constant 0.000000e+00 : f32
    %6 = vector.broadcast %cst_3 : f32 to vector<1x512xf32>
    %7 = arith.subf %5, %6 : vector<1x512xf32>
    %cst_4 = arith.constant 1.000000e+00 : f32
    %8 = vector.broadcast %cst_4 : f32 to vector<1x512xf32>
    %9 = arith.divf %7, %8 : vector<1x512xf32>
    %c0_5 = arith.constant 0 : index
    %c0_6 = arith.constant 0 : index
    %c0_7 = arith.constant 0 : index
    %10 = vector.load %arg1[%c0_5, %c0_6, %c0_7] : memref<9x128x128xf32, #tpu.memory_space<vmem>>, vector<1x128x128xf32>
    %11 = vector.shape_cast %10 : vector<1x128x128xf32> to vector<128x128xf32>
    %12 = vector.extract_strided_slice %11 {offsets = [0, 0], sizes = [128, 1], strides = [1, 1]} : vector<128x128xf32> to vector<128x1xf32>
    %13 = vector.broadcast %12 : vector<128x1xf32> to vector<128x512xf32>
    %14 = vector.broadcast %4 : vector<1x512xf32> to vector<128x512xf32>
    %15 = arith.mulf %13, %14 : vector<128x512xf32>
    %16 = vector.extract_strided_slice %11 {offsets = [0, 1], sizes = [128, 1], strides = [1, 1]} : vector<128x128xf32> to vector<128x1xf32>
    %17 = vector.broadcast %16 : vector<128x1xf32> to vector<128x512xf32>
    %18 = vector.broadcast %9 : vector<1x512xf32> to vector<128x512xf32>
    %19 = arith.mulf %17, %18 : vector<128x512xf32>
    %20 = arith.addf %15, %19 : vector<128x512xf32>
    %c0_8 = arith.constant 0 : index
    %c0_9 = arith.constant 0 : index
    %c0_10 = arith.constant 0 : index
    %21 = vector.load %arg2[%c0_8, %c0_9, %c0_10] : memref<9x128x1xf32, #tpu.memory_space<vmem>>, vector<1x128x1xf32>
    %22 = vector.shape_cast %21 : vector<1x128x1xf32> to vector<128x1xf32>
    %23 = vector.broadcast %22 : vector<128x1xf32> to vector<128x512xf32>
    %24 = arith.addf %20, %23 : vector<128x512xf32>
    %25 = math.tanh %24 : vector<128x512xf32>
    %c1_11 = arith.constant 1 : index
    %c0_12 = arith.constant 0 : index
    %c0_13 = arith.constant 0 : index
    %26 = vector.load %arg1[%c1_11, %c0_12, %c0_13] : memref<9x128x128xf32, #tpu.memory_space<vmem>>, vector<1x128x128xf32>
    %27 = vector.shape_cast %26 : vector<1x128x128xf32> to vector<128x128xf32>
    %cst_14 = arith.constant dense<0.000000e+00> : vector<128x512xf32>
    %28 = tpu.matmul %27, %25, %cst_14 {dimension_numbers = #tpu.dot_dimension_numbers<[1], [0], [0], [1], [0, 0, 1, 1], [], []>} : vector<128x128xf32>, vector<128x512xf32>, vector<128x512xf32> -> vector<128x512xf32>
    %c1_15 = arith.constant 1 : index
    %c0_16 = arith.constant 0 : index
    %c0_17 = arith.constant 0 : index
    %29 = vector.load %arg2[%c1_15, %c0_16, %c0_17] : memref<9x128x1xf32, #tpu.memory_space<vmem>>, vector<1x128x1xf32>
    %30 = vector.shape_cast %29 : vector<1x128x1xf32> to vector<128x1xf32>
    %31 = vector.broadcast %30 : vector<128x1xf32> to vector<128x512xf32>
    %32 = arith.addf %28, %31 : vector<128x512xf32>
    %33 = math.tanh %32 : vector<128x512xf32>
    %c2 = arith.constant 2 : index
    %c0_18 = arith.constant 0 : index
    %c0_19 = arith.constant 0 : index
    %34 = vector.load %arg1[%c2, %c0_18, %c0_19] : memref<9x128x128xf32, #tpu.memory_space<vmem>>, vector<1x128x128xf32>
    %35 = vector.shape_cast %34 : vector<1x128x128xf32> to vector<128x128xf32>
    %cst_20 = arith.constant dense<0.000000e+00> : vector<128x512xf32>
    %36 = tpu.matmul %35, %33, %cst_20 {dimension_numbers = #tpu.dot_dimension_numbers<[1], [0], [0], [1], [0, 0, 1, 1], [], []>} : vector<128x128xf32>, vector<128x512xf32>, vector<128x512xf32> -> vector<128x512xf32>
    %c2_21 = arith.constant 2 : index
    %c0_22 = arith.constant 0 : index
    %c0_23 = arith.constant 0 : index
    %37 = vector.load %arg2[%c2_21, %c0_22, %c0_23] : memref<9x128x1xf32, #tpu.memory_space<vmem>>, vector<1x128x1xf32>
    %38 = vector.shape_cast %37 : vector<1x128x1xf32> to vector<128x1xf32>
    %39 = vector.broadcast %38 : vector<128x1xf32> to vector<128x512xf32>
    %40 = arith.addf %36, %39 : vector<128x512xf32>
    %41 = math.tanh %40 : vector<128x512xf32>
    %c3 = arith.constant 3 : index
    %c0_24 = arith.constant 0 : index
    %c0_25 = arith.constant 0 : index
    %42 = vector.load %arg1[%c3, %c0_24, %c0_25] : memref<9x128x128xf32, #tpu.memory_space<vmem>>, vector<1x128x128xf32>
    %43 = vector.shape_cast %42 : vector<1x128x128xf32> to vector<128x128xf32>
    %cst_26 = arith.constant dense<0.000000e+00> : vector<128x512xf32>
    %44 = tpu.matmul %43, %41, %cst_26 {dimension_numbers = #tpu.dot_dimension_numbers<[1], [0], [0], [1], [0, 0, 1, 1], [], []>} : vector<128x128xf32>, vector<128x512xf32>, vector<128x512xf32> -> vector<128x512xf32>
    %c3_27 = arith.constant 3 : index
    %c0_28 = arith.constant 0 : index
    %c0_29 = arith.constant 0 : index
    %45 = vector.load %arg2[%c3_27, %c0_28, %c0_29] : memref<9x128x1xf32, #tpu.memory_space<vmem>>, vector<1x128x1xf32>
    %46 = vector.shape_cast %45 : vector<1x128x1xf32> to vector<128x1xf32>
    %47 = vector.broadcast %46 : vector<128x1xf32> to vector<128x512xf32>
    %48 = arith.addf %44, %47 : vector<128x512xf32>
    %49 = math.tanh %48 : vector<128x512xf32>
    %c4 = arith.constant 4 : index
    %c0_30 = arith.constant 0 : index
    %c0_31 = arith.constant 0 : index
    %50 = vector.load %arg1[%c4, %c0_30, %c0_31] : memref<9x128x128xf32, #tpu.memory_space<vmem>>, vector<1x128x128xf32>
    %51 = vector.shape_cast %50 : vector<1x128x128xf32> to vector<128x128xf32>
    %cst_32 = arith.constant dense<0.000000e+00> : vector<128x512xf32>
    %52 = tpu.matmul %51, %49, %cst_32 {dimension_numbers = #tpu.dot_dimension_numbers<[1], [0], [0], [1], [0, 0, 1, 1], [], []>} : vector<128x128xf32>, vector<128x512xf32>, vector<128x512xf32> -> vector<128x512xf32>
    %c4_33 = arith.constant 4 : index
    %c0_34 = arith.constant 0 : index
    %c0_35 = arith.constant 0 : index
    %53 = vector.load %arg2[%c4_33, %c0_34, %c0_35] : memref<9x128x1xf32, #tpu.memory_space<vmem>>, vector<1x128x1xf32>
    %54 = vector.shape_cast %53 : vector<1x128x1xf32> to vector<128x1xf32>
    %55 = vector.broadcast %54 : vector<128x1xf32> to vector<128x512xf32>
    %56 = arith.addf %52, %55 : vector<128x512xf32>
    %57 = math.tanh %56 : vector<128x512xf32>
    %c5 = arith.constant 5 : index
    %c0_36 = arith.constant 0 : index
    %c0_37 = arith.constant 0 : index
    %58 = vector.load %arg1[%c5, %c0_36, %c0_37] : memref<9x128x128xf32, #tpu.memory_space<vmem>>, vector<1x128x128xf32>
    %59 = vector.shape_cast %58 : vector<1x128x128xf32> to vector<128x128xf32>
    %cst_38 = arith.constant dense<0.000000e+00> : vector<128x512xf32>
    %60 = tpu.matmul %59, %57, %cst_38 {dimension_numbers = #tpu.dot_dimension_numbers<[1], [0], [0], [1], [0, 0, 1, 1], [], []>} : vector<128x128xf32>, vector<128x512xf32>, vector<128x512xf32> -> vector<128x512xf32>
    %c5_39 = arith.constant 5 : index
    %c0_40 = arith.constant 0 : index
    %c0_41 = arith.constant 0 : index
    %61 = vector.load %arg2[%c5_39, %c0_40, %c0_41] : memref<9x128x1xf32, #tpu.memory_space<vmem>>, vector<1x128x1xf32>
    %62 = vector.shape_cast %61 : vector<1x128x1xf32> to vector<128x1xf32>
    %63 = vector.broadcast %62 : vector<128x1xf32> to vector<128x512xf32>
    %64 = arith.addf %60, %63 : vector<128x512xf32>
    %65 = math.tanh %64 : vector<128x512xf32>
    %c6 = arith.constant 6 : index
    %c0_42 = arith.constant 0 : index
    %c0_43 = arith.constant 0 : index
    %66 = vector.load %arg1[%c6, %c0_42, %c0_43] : memref<9x128x128xf32, #tpu.memory_space<vmem>>, vector<1x128x128xf32>
    %67 = vector.shape_cast %66 : vector<1x128x128xf32> to vector<128x128xf32>
    %cst_44 = arith.constant dense<0.000000e+00> : vector<128x512xf32>
    %68 = tpu.matmul %67, %65, %cst_44 {dimension_numbers = #tpu.dot_dimension_numbers<[1], [0], [0], [1], [0, 0, 1, 1], [], []>} : vector<128x128xf32>, vector<128x512xf32>, vector<128x512xf32> -> vector<128x512xf32>
    %c6_45 = arith.constant 6 : index
    %c0_46 = arith.constant 0 : index
    %c0_47 = arith.constant 0 : index
    %69 = vector.load %arg2[%c6_45, %c0_46, %c0_47] : memref<9x128x1xf32, #tpu.memory_space<vmem>>, vector<1x128x1xf32>
    %70 = vector.shape_cast %69 : vector<1x128x1xf32> to vector<128x1xf32>
    %71 = vector.broadcast %70 : vector<128x1xf32> to vector<128x512xf32>
    %72 = arith.addf %68, %71 : vector<128x512xf32>
    %73 = math.tanh %72 : vector<128x512xf32>
    %c7 = arith.constant 7 : index
    %c0_48 = arith.constant 0 : index
    %c0_49 = arith.constant 0 : index
    %74 = vector.load %arg1[%c7, %c0_48, %c0_49] : memref<9x128x128xf32, #tpu.memory_space<vmem>>, vector<1x128x128xf32>
    %75 = vector.shape_cast %74 : vector<1x128x128xf32> to vector<128x128xf32>
    %cst_50 = arith.constant dense<0.000000e+00> : vector<128x512xf32>
    %76 = tpu.matmul %75, %73, %cst_50 {dimension_numbers = #tpu.dot_dimension_numbers<[1], [0], [0], [1], [0, 0, 1, 1], [], []>} : vector<128x128xf32>, vector<128x512xf32>, vector<128x512xf32> -> vector<128x512xf32>
    %c7_51 = arith.constant 7 : index
    %c0_52 = arith.constant 0 : index
    %c0_53 = arith.constant 0 : index
    %77 = vector.load %arg2[%c7_51, %c0_52, %c0_53] : memref<9x128x1xf32, #tpu.memory_space<vmem>>, vector<1x128x1xf32>
    %78 = vector.shape_cast %77 : vector<1x128x1xf32> to vector<128x1xf32>
    %79 = vector.broadcast %78 : vector<128x1xf32> to vector<128x512xf32>
    %80 = arith.addf %76, %79 : vector<128x512xf32>
    %81 = math.tanh %80 : vector<128x512xf32>
    %c8 = arith.constant 8 : index
    %c0_54 = arith.constant 0 : index
    %c0_55 = arith.constant 0 : index
    %82 = vector.load %arg1[%c8, %c0_54, %c0_55] : memref<9x128x128xf32, #tpu.memory_space<vmem>>, vector<1x128x128xf32>
    %83 = vector.shape_cast %82 : vector<1x128x128xf32> to vector<128x128xf32>
    %84 = vector.extract_strided_slice %83 {offsets = [0, 0], sizes = [8, 128], strides = [1, 1]} : vector<128x128xf32> to vector<8x128xf32>
    %cst_56 = arith.constant dense<0.000000e+00> : vector<8x512xf32>
    %85 = tpu.matmul %84, %81, %cst_56 {dimension_numbers = #tpu.dot_dimension_numbers<[1], [0], [0], [1], [0, 0, 1, 1], [], []>} : vector<8x128xf32>, vector<128x512xf32>, vector<8x512xf32> -> vector<8x512xf32>
    %86 = vector.extract_strided_slice %85 {offsets = [0, 0], sizes = [1, 512], strides = [1, 1]} : vector<8x512xf32> to vector<1x512xf32>
    %c8_57 = arith.constant 8 : index
    %c0_58 = arith.constant 0 : index
    %c0_59 = arith.constant 0 : index
    %87 = vector.load %arg2[%c8_57, %c0_58, %c0_59] : memref<9x128x1xf32, #tpu.memory_space<vmem>>, vector<1x128x1xf32>
    %88 = vector.shape_cast %87 : vector<1x128x1xf32> to vector<128x1xf32>
    %89 = vector.extract_strided_slice %88 {offsets = [0, 0], sizes = [1, 1], strides = [1, 1]} : vector<128x1xf32> to vector<1x1xf32>
    %90 = vector.broadcast %89 : vector<1x1xf32> to vector<1x512xf32>
    %91 = arith.addf %86, %90 : vector<1x512xf32>
    %c0_60 = arith.constant 0 : index
    %c0_61 = arith.constant 0 : index
    %92 = vector.load %arg4[%c0_60, %c0_61] : memref<1x512xf32, #tpu.memory_space<vmem>>, vector<1x512xf32>
    tpu.vector_store %arg4[%c0_60, %c0_61], %91 {strides = array<i32>} : memref<1x512xf32, #tpu.memory_space<vmem>>, vector<1x512xf32>,
    return
  }
  func.func @transform_0(%arg0: i32) -> (i32, i32, i32) {
    %c0_i32 = arith.constant 0 : i32
    %c0_i32_0 = arith.constant 0 : i32
    %c0_i32_1 = arith.constant 0 : i32
    %c0_i32_2 = arith.constant 0 : i32
    return %c0_i32, %c0_i32_0, %c0_i32_1 : i32, i32, i32
  }
  func.func @transform_1(%arg0: i32) -> (i32, i32, i32) {
    %c0_i32 = arith.constant 0 : i32
    %c0_i32_0 = arith.constant 0 : i32
    %c0_i32_1 = arith.constant 0 : i32
    %c0_i32_2 = arith.constant 0 : i32
    return %c0_i32, %c0_i32_0, %c0_i32_1 : i32, i32, i32
  }
  func.func @transform_2(%arg0: i32) -> (i32, i32) {
    %c0_i32 = arith.constant 0 : i32
    %c0_i32_0 = arith.constant 0 : i32
    return %c0_i32, %arg0 : i32, i32
  }
  func.func @transform_3(%arg0: i32) -> (i32, i32) {
    %c0_i32 = arith.constant 0 : i32
    %c0_i32_0 = arith.constant 0 : i32
    return %c0_i32, %arg0 : i32, i32
  }
}

</mosaic_0001>

<bundles_post_ra>
// kernel: sequential_model_forward.1
= control target key start
LH: loop header
LB: loop body
LE: loop exit
PB: predicated region body
PF: predicated region fallthrough
CT: control target
= control target key end

     0   :  { %s5321_s12 = smov 0   ;;  %s8425_s0 = inlined_call_operand.vmem [shape: f32[9,128,128], index: 0, kind: input, shape index: {}]   ;;  %s8426_s1 = inlined_call_operand.vmem [shape: f32[9,128,1], index: 1, kind: input, shape index: {}]   ;;  %s8427_s2 = inlined_call_operand.vmem [shape: f32[2,1024], index: 2, kind: input, shape index: {}]   ;;  %s8428_s3 = inlined_call_operand.vmem [shape: f32[1,1024], index: 3, kind: output, shape index: {}]  }
   0x1 LB: > { %s4006_s13 = sadd.s32 4294967295, %s5296_s12   ;;  %p4010_p0 = scmp.ge.s32.totalorder %s5296_s12, 1  ;;  %s5296_s12 = sphi %s5321_s12, %s13_s12  }
   0x2   : > { %p138_p1 = scmp.lt.s32.totalorder %s5296_s12, 3 }
   0x4   : > { %p139_p2 = pnand %p4010_p0, %p138_p1 }
   0x6   : > { %142 = sbr.rel (%p139_p2) target bundleno = 2457 (0x999), region = 32 }
   0xb   : > { %v199_v0 = vld [vmem:[%s8425_s0 + $0x78] sm:$0xff]  ;;  %v198_v1 = vld [vmem:[%s8425_s0 + $0x70] sm:$0xff]  ;;  %v197_v2 = vld [vmem:[%s8425_s0 + $0x68] sm:$0xff]  ;;  %v5298_v3 = vmov 0   ;;  %v5299_v4 = vmov 1   ;;  %v5300_v26 = vmov 2.0  }
   0xc   : > { %4259 = vset.pattern.permute.xlu2 %v5298_v3  ;;  %4257 = vset.pattern.permute.xlu1 %v5298_v3  ;;  %v196_v5 = vld [vmem:[%s8425_s0 + $0x60] sm:$0xff]  ;;  %v569_v6 = vld [vmem:[%s8426_s1 + $0x78] sm:$0xff]  ;;  %v568_v8 = vld [vmem:[%s8426_s1 + $0x70] sm:$0xff]  ;;  %4264 = vrcp.f32 %v5300_v26  ;;  %s4011_s14 = sshll.u32 %s4006_s13, 2  ;;  %vm3944_vm1 = vcmask 1040384   ;;  %vm3946_vm2 = vcmask 1042434  }
   0xd   : > { %4255 = vset.pattern.permute.xlu0 %v5298_v3  ;;  %272 = vperm.xlu1 %4257, %v198_v1   ;;  %v195_v7 = vld [vmem:[%s8425_s0 + $0x58] sm:$0xff]  ;;  %v194_v9 = vld [vmem:[%s8425_s0 + $0x50] sm:$0xff]  ;;  %v567_v10 = vld [vmem:[%s8426_s1 + $0x68] sm:$0xff]  ;;  %p162_p3 = scmp.lt.s32.totalorder %s4011_s14, 7  ;;  %vm3948_vm3 = vcmask 1041408  }
   0xe   : > { %277 = vperm.xlu0 %4255, %v199_v0   ;;  %267 = vperm.xlu2 %4259, %v197_v2   ;;  %v193_v11 = vld [vmem:[%s8425_s0 + $0x48] sm:$0xff]  ;;  %v566_v12 = vld [vmem:[%s8426_s1 + $0x60] sm:$0xff]  ;;  %v565_v14 = vld [vmem:[%s8426_s1 + $0x58] sm:$0xff] }
   0xf   : > { %v192_v13 = vld [vmem:[%s8425_s0 + $0x40] sm:$0xff]  ;;  %v191_v15 = vld [vmem:[%s8425_s0 + $0x38] sm:$0xff]  ;;  %v564_v16 = vld [vmem:[%s8426_s1 + $0x50] sm:$0xff]  ;;  %s8632_s14 = smov (!%p162_p3, %s4011_s14), 7 }
  0x10   : > { %v190_v17 = vld [vmem:[%s8425_s0 + $0x30] sm:$0xff]  ;;  %v563_v18 = vld [vmem:[%s8426_s1 + $0x48] sm:$0xff]  ;;  %v562_v20 = vld [vmem:[%s8426_s1 + $0x40] sm:$0xff]  ;;  %s4012_s13 = sshll.u32 %s8632_s14, 1  ;;  %s170_s9 = scalar_lea.vmem %s8428_s3, %s8632_s14 }
  0x11   : > { %v189_v19 = vld [vmem:[%s8425_s0 + $0x28] sm:$0xff]  ;;  %v188_v21 = vld [vmem:[%s8425_s0 + $0x20] sm:$0xff]  ;;  %v561_v22 = vld [vmem:[%s8426_s1 + $0x38] sm:$0xff]  ;;  %s165_s25 = scalar_lea.vmem %s8427_s2, %s4012_s13 }
  0x12   : > { %v187_v23 = vld [vmem:[%s8425_s0 + $0x18] sm:$0xff]  ;;  %v560_v24 = vld [vmem:[%s8426_s1 + $0x30] sm:$0xff]  ;;  %v559_v28 = vld [vmem:[%s8426_s1 + $0x28] sm:$0xff]  ;;  %v4265_v29 = vpop.eup %4264 }
  0x13   : > { %v186_v27 = vld [vmem:[%s8425_s0 + $0x10] sm:$0xff]  ;;  %v185_v31 = vld [vmem:[%s8425_s0 + $0x8] sm:$0xff]  ;;  %v175_v32 = vmul.f32 2.0, %v4265_v29  ;;  %v558_v33 = vld [vmem:[%s8426_s1 + $0x20] sm:$0xff]  ;;  %vm179_vm0 = vweird.f32 %v4265_v29 }
  0x14   : > { %v184_v36 = vld [vmem:[%s8425_s0] sm:$0xff]  ;;  %v557_v38 = vld [vmem:[%s8426_s1 + $0x18] sm:$0xff]  ;;  %v556_v46 = vld [vmem:[%s8426_s1 + $0x10] sm:$0xff] }
  0x15   : > { %4258 = vset.pattern.permute.xlu1 %v5299_v4  ;;  %v176_v34 = vsub.f32 1.0, %v175_v32  ;;  %v172_v41 = vld [vmem:[%s165_s25] ss:$2 sm:$0xf]  ;;  %v555_v48 = vld [vmem:[%s8426_s1 + $0x8] sm:$0xff]  ;;  %v4047_v61 = vld [vmem:[%s8426_s1 + $0xf8] sm:$0xff] }
  0x16   : > { %4256 = vset.pattern.permute.xlu0 %v5299_v4  ;;  %4260 = vset.pattern.permute.xlu2 %v5299_v4  ;;  %v4014_v44 = vadd.f32 1.0, %v172_v41  ;;  %v554_v47 = vld [vmem:[%s8426_s1] sm:$0xff]  ;;  %v4043_v62 = vld [vmem:[%s8426_s1 + $0xd8] sm:$0xff] }
  0x17   : > { %414 = vperm.xlu0 %4256, %v199_v0   ;;  %410 = vperm.xlu1 %4258, %v198_v1   ;;  %v177_v37 = vmul.f32 %v4265_v29, %v176_v34  ;;  %v4015_v50 = vld [vmem:[%s165_s25 + $0x1] ss:$2 sm:$0xf] }
  0x18   : > { %406 = vperm.xlu2 %4260, %v197_v2   ;;  %v5449_v53 = vperm.slane %v4015_v50, 0  ;;  %v5451_v54 = vperm.slane %v4015_v50, 1  ;;  %v5453_v55 = vperm.slane %v4015_v50, 2  ;;  %v5461_v59 = vperm.slane %v4015_v50, 3 }
  0x19   : > { %v178_v42 = vadd.f32 %v4265_v29, %v177_v37 }
  0x1b   : > { %v180_v45 = vsel %vm179_vm0, %v4265_v29, %v178_v42 }
  0x1c   : > { %v181_v49 = vmul.f32 %v4014_v44, %v180_v45 }
  0x1e   : > { %v5457_v57 = vperm.slane %v181_v49, 0  ;;  %v5459_v58 = vperm.slane %v181_v49, 1  ;;  %v5463_v60 = vperm.slane %v181_v49, 2  ;;  %v5474_v2 = vperm.slane %v181_v49, 3 }
  0x1f   : > { %4261 = vset.pattern.permute.xlu1 %v5298_v3  ;;  %402 = vperm.xlu0 %4256, %v196_v5  }
  0x20   : > { %4262 = vset.pattern.permute.xlu2 %v5298_v3  ;;  %647 = vperm.xlu1 %4261, %v569_v6  }
  0x21   : > { %262 = vperm.xlu2 %4262, %v196_v5  }
  0x27   : > { %398 = vperm.xlu0 %4256, %v195_v7  }
  0x28   : > { %642 = vperm.xlu1 %4261, %v568_v8  }
  0x29   : > { %257 = vperm.xlu2 %4262, %v195_v7  }
  0x2f   : > { %394 = vperm.xlu0 %4256, %v194_v9  }
  0x30   : > { %637 = vperm.xlu1 %4261, %v567_v10  }
  0x31   : > { %252 = vperm.xlu2 %4262, %v194_v9  }
  0x37   : > { %390 = vperm.xlu0 %4256, %v193_v11  }
  0x38   : > { %632 = vperm.xlu1 %4261, %v566_v12  }
  0x39   : > { %247 = vperm.xlu2 %4262, %v193_v11  }
  0x3f   : > { %386 = vperm.xlu0 %4256, %v192_v13  }
  0x40   : > { %627 = vperm.xlu1 %4261, %v565_v14  }
  0x41   : > { %242 = vperm.xlu2 %4262, %v192_v13  }
  0x47   : > { %382 = vperm.xlu0 %4256, %v191_v15  }
  0x48   : > { %622 = vperm.xlu1 %4261, %v564_v16  }
  0x49   : > { %237 = vperm.xlu2 %4262, %v191_v15  }
  0x4f   : > { %378 = vperm.xlu0 %4256, %v190_v17  }
  0x50   : > { %617 = vperm.xlu1 %4261, %v563_v18  }
  0x51   : > { %232 = vperm.xlu2 %4262, %v190_v17  }
  0x57   : > { %374 = vperm.xlu0 %4256, %v189_v19  }
  0x58   : > { %612 = vperm.xlu1 %4261, %v562_v20  }
  0x59   : > { %227 = vperm.xlu2 %4262, %v189_v19  }
  0x5f   : > { %370 = vperm.xlu0 %4256, %v188_v21  }
  0x60   : > { %607 = vperm.xlu1 %4261, %v561_v22  }
  0x61   : > { %222 = vperm.xlu2 %4262, %v188_v21  }
  0x67   : > { %366 = vperm.xlu0 %4256, %v187_v23  }
  0x68   : > { %602 = vperm.xlu1 %4261, %v560_v24   ;;  %v5403_v25 = vpop.permute.xlu2 %267  ;;  %v4040_v24 = vld [vmem:[%s8426_s1 + $0xc0] sm:$0xff] }
  0x69   : > { %217 = vperm.xlu2 %4262, %v187_v23   ;;  %v4045_v23 = vld [vmem:[%s8426_s1 + $0xe8] sm:$0xff] }
  0x6f   : > { %362 = vperm.xlu0 %4256, %v186_v27  }
  0x70   : > { %597 = vperm.xlu1 %4261, %v559_v28  }
  0x71   : > { %212 = vperm.xlu2 %4262, %v186_v27   ;;  %v4044_v27 = vld [vmem:[%s8426_s1 + $0xe0] sm:$0xff] }
  0x72   : > { %v5413_v30 = vpop.permute.xlu2 %406 }
  0x77   : > { %358 = vperm.xlu0 %4256, %v185_v31  }
  0x78   : > { %592 = vperm.xlu1 %4261, %v558_v33  }
  0x79   : > { %207 = vperm.xlu2 %4262, %v185_v31  }
  0x7b   : > { %v5424_v35 = vpop.permute.xlu2 %262 }
  0x7f   : > { %354 = vperm.xlu0 %4256, %v184_v36   ;;  %v5435_v39 = vpop.permute.xlu1 %272 }
  0x80   : > { %587 = vperm.xlu1 %4261, %v557_v38   ;;  %v278_v40 = vpop.permute.xlu0 %277  ;;  %v345_v28 = vmul.f32 %v5457_v57, %v5435_v39  ;;  %v346_v29 = vmul.f32 %v5459_v58, %v5435_v39  ;;  %v347_v31 = vmul.f32 %v5463_v60, %v5435_v39  ;;  %v348_v32 = vmul.f32 %v5474_v2, %v5435_v39 }
  0x81   : > { %202 = vperm.xlu2 %4262, %v184_v36   ;;  %v349_v5 = vmul.f32 %v5457_v57, %v278_v40  ;;  %v350_v6 = vmul.f32 %v5459_v58, %v278_v40  ;;  %v351_v7 = vmul.f32 %v5463_v60, %v278_v40  ;;  %v352_v8 = vmul.f32 %v5474_v2, %v278_v40 }
  0x82   : > { %v342_v39 = vmul.f32 %v5459_v58, %v5403_v25 }
  0x83   : > { %v5437_v43 = vpop.permute.xlu2 %257 }
  0x87   : > { %4263 = vset.pattern.permute.xlu0 %v5298_v3  ;;  %v4046_v3 = vld [vmem:[%s8426_s1 + $0xf0] sm:$0xff] }
  0x88   : > { %582 = vperm.xlu1 %4261, %v556_v46   ;;  %572 = vperm.xlu0 %4263, %v554_v47   ;;  %v341_v47 = vmul.f32 %v5457_v57, %v5403_v25 }
  0x89   : > { %577 = vperm.xlu2 %4262, %v555_v48   ;;  %v415_v51 = vpop.permute.xlu0 %414  ;;  %v411_v52 = vpop.permute.xlu1 %410  ;;  %v343_v48 = vmul.f32 %v5463_v60, %v5403_v25 }
  0x8a   : > { %v486_v63 = vmul.f32 %v5449_v53, %v415_v51  ;;  %v487_v0 = vmul.f32 %v5451_v54, %v415_v51  ;;  %v488_v1 = vmul.f32 %v5453_v55, %v415_v51  ;;  %v489_v4 = vmul.f32 %v5461_v59, %v415_v51 }
  0x8b   : > { %v5455_v56 = vpop.permute.xlu2 %252  ;;  %v482_v20 = vmul.f32 %v5449_v53, %v411_v52  ;;  %v483_v21 = vmul.f32 %v5451_v54, %v411_v52  ;;  %v484_v22 = vmul.f32 %v5453_v55, %v411_v52  ;;  %v485_v26 = vmul.f32 %v5461_v59, %v411_v52 }
  0x8c   : > { %v550_v10 = vadd.f32 %v486_v63, %v349_v5  ;;  %v551_v11 = vadd.f32 %v487_v0, %v350_v6  ;;  %v552_v12 = vadd.f32 %v488_v1, %v351_v7  ;;  %v553_v14 = vadd.f32 %v489_v4, %v352_v8  ;;  %v4042_v63 = vld [vmem:[%s8426_s1 + $0xd0] sm:$0xff]  ;;  %v4037_v0 = vld [vmem:[%s8426_s1 + $0xa8] sm:$0xff] }
  0x8d   : > { %v546_v34 = vadd.f32 %v482_v20, %v345_v28  ;;  %v547_v36 = vadd.f32 %v483_v21, %v346_v29  ;;  %v548_v37 = vadd.f32 %v484_v22, %v347_v31  ;;  %v549_v40 = vadd.f32 %v485_v26, %v348_v32  ;;  %v4041_v5 = vld [vmem:[%s8426_s1 + $0xc8] sm:$0xff]  ;;  %v4039_v26 = vld [vmem:[%s8426_s1 + $0xb8] sm:$0xff] }
  0x8e   : > { %v478_v52 = vmul.f32 %v5449_v53, %v5413_v30  ;;  %v481_v4 = vmul.f32 %v5461_v59, %v5413_v30  ;;  %v340_v29 = vmul.f32 %v5474_v2, %v5424_v35 }
  0x90   : > { %889 = vperm.xlu1 %4261, %v4047_v61   ;;  %869 = vperm.xlu0 %4263, %v4043_v62   ;;  %v479_v61 = vmul.f32 %v5451_v54, %v5413_v30  ;;  %v480_v62 = vmul.f32 %v5453_v55, %v5413_v30  ;;  %v542_v7 = vadd.f32 %v478_v52, %v341_v47  ;;  %v4036_v52 = vld [vmem:[%s8426_s1 + $0xa0] sm:$0xff] }
  0x91   : > { %884 = vperm.xlu2 %4262, %v4046_v3   ;;  %v5484_v9 = vpop.permute.xlu0 %402  ;;  %v344_v3 = vmul.f32 %v5474_v2, %v5403_v25 }
  0x92   : > { %v648_v13 = vpop.permute.xlu1 %647  ;;  %v543_v8 = vadd.f32 %v479_v61, %v342_v39  ;;  %v544_v25 = vadd.f32 %v480_v62, %v343_v48  ;;  %v474_v22 = vmul.f32 %v5449_v53, %v5484_v9  ;;  %v477_v31 = vmul.f32 %v5461_v59, %v5484_v9  ;;  %v4079_v61 = vld [vmem:[%s8426_s1 + $0x178] sm:$0xff] }
  0x93   : > { %v5486_v15 = vpop.permute.xlu2 %247  ;;  %v710_v16 = vadd.f32 %v648_v13, %v550_v10  ;;  %v711_v17 = vadd.f32 %v648_v13, %v551_v11  ;;  %v712_v18 = vadd.f32 %v648_v13, %v552_v12  ;;  %v713_v19 = vadd.f32 %v648_v13, %v553_v14 }
  0x94   : > { %v545_v11 = vadd.f32 %v481_v4, %v344_v3  ;;  %v334_v3 = vmul.f32 %v5459_v58, %v5437_v43  ;;  %v335_v4 = vmul.f32 %v5463_v60, %v5437_v43 }
  0x95   : > { %4266 = vtanh.f32 %v710_v16 }
  0x96   : > { %4268 = vtanh.f32 %v711_v17  ;;  %v337_v17 = vmul.f32 %v5457_v57, %v5424_v35 }
  0x97   : > { %4270 = vtanh.f32 %v712_v18  ;;  %v338_v18 = vmul.f32 %v5459_v58, %v5424_v35 }
  0x98   : > { %879 = vperm.xlu1 %4261, %v4045_v23   ;;  %854 = vperm.xlu0 %4263, %v4040_v24   ;;  %4272 = vtanh.f32 %v713_v19  ;;  %v339_v19 = vmul.f32 %v5463_v60, %v5424_v35  ;;  %v475_v23 = vmul.f32 %v5451_v54, %v5484_v9  ;;  %v476_v24 = vmul.f32 %v5453_v55, %v5484_v9 }
  0x99   : > { %874 = vperm.xlu2 %4262, %v4044_v27   ;;  %v5509_v33 = vpop.permute.xlu0 %398  ;;  %v4034_v27 = vld [vmem:[%s8426_s1 + $0x90] sm:$0xff]  ;;  %v538_v35 = vadd.f32 %v474_v22, %v337_v17  ;;  %v4033_v22 = vld [vmem:[%s8426_s1 + $0x88] sm:$0xff] }
  0x9a   : > { %v643_v38 = vpop.permute.xlu1 %642  ;;  %v470_v48 = vmul.f32 %v5449_v53, %v5509_v33 }
  0x9b   : > { %v4267_v41 = vpop.eup %4266  ;;  %v706_v42 = vadd.f32 %v643_v38, %v546_v34  ;;  %v707_v44 = vadd.f32 %v643_v38, %v547_v36  ;;  %v708_v45 = vadd.f32 %v643_v38, %v548_v37  ;;  %v5517_v49 = vpop.permute.xlu2 %242  ;;  %v709_v50 = vadd.f32 %v643_v38, %v549_v40  ;;  %v4038_v34 = vld [vmem:[%s8426_s1 + $0xb0] sm:$0xff] }
  0x9c   : > { %v4269_v46 = vpop.eup %4268  ;;  %892 = vmatpush.msra.mxu0 %v4267_v41  ;;  %v539_v37 = vadd.f32 %v475_v23, %v338_v18  ;;  %v540_v38 = vadd.f32 %v476_v24, %v339_v19  ;;  %v541_v40 = vadd.f32 %v477_v31, %v340_v29  ;;  %v4076_v23 = vld [vmem:[%s8426_s1 + $0x160] sm:$0xff]  ;;  %v330_v29 = vmul.f32 %v5459_v58, %v5455_v56 }
  0x9d   : > { %v4271_v51 = vpop.eup %4270  ;;  %957 = vmatpush.msra.mxu1 %v4269_v46  ;;  %4274 = vtanh.f32 %v706_v42  ;;  %v331_v31 = vmul.f32 %v5463_v60, %v5455_v56 }
  0x9e   : > { %v4273_v1 = vpop.eup %4272  ;;  %1022 = vmatpush.msra.mxu2 %v4271_v51  ;;  %4276 = vtanh.f32 %v707_v44  ;;  %v472_v51 = vmul.f32 %v5453_v55, %v5509_v33 }
  0x9f   : > { %1087 = vmatpush.msra.mxu3 %v4273_v1  ;;  %4278 = vtanh.f32 %v708_v45  ;;  %v333_v1 = vmul.f32 %v5457_v57, %v5437_v43 }
  0xa0   : > { %864 = vperm.xlu1 %4261, %v4042_v63   ;;  %839 = vperm.xlu0 %4263, %v4037_v0   ;;  %4280 = vtanh.f32 %v709_v50  ;;  %v471_v50 = vmul.f32 %v5451_v54, %v5509_v33  ;;  %v473_v63 = vmul.f32 %v5461_v59, %v5509_v33  ;;  %v4035_v0 = vld [vmem:[%s8426_s1 + $0x98] sm:$0xff]  ;;  %v336_v33 = vmul.f32 %v5474_v2, %v5437_v43 }
  0xa1   : > { %859 = vperm.xlu2 %4262, %v4041_v5   ;;  %v5538_v6 = vpop.permute.xlu0 %394 }
  0xa2   : > { %v638_v10 = vpop.permute.xlu1 %637  ;;  %v466_v19 = vmul.f32 %v5449_v53, %v5538_v6 }
  0xa3   : > { %v4275_v30 = vpop.eup %4274  ;;  %v702_v12 = vadd.f32 %v638_v10, %v542_v7  ;;  %v703_v13 = vadd.f32 %v638_v10, %v543_v8  ;;  %v704_v14 = vadd.f32 %v638_v10, %v544_v25  ;;  %v705_v20 = vadd.f32 %v638_v10, %v545_v11  ;;  %v5562_v32 = vpop.permute.xlu2 %237 }
  0xa4   : > { %v4277_v16 = vpop.eup %4276  ;;  %893 = vmatpush.msra.mxu0 %v4275_v30  ;;  %v534_v8 = vadd.f32 %v470_v48, %v333_v1  ;;  %v535_v25 = vadd.f32 %v471_v50, %v334_v3  ;;  %v536_v10 = vadd.f32 %v472_v51, %v335_v4  ;;  %v537_v30 = vadd.f32 %v473_v63, %v336_v33 }
  0xa5   : > { %v4279_v21 = vpop.eup %4278  ;;  %958 = vmatpush.msra.mxu1 %v4277_v16  ;;  %4282 = vtanh.f32 %v702_v12  ;;  %v325_v1 = vmul.f32 %v5457_v57, %v5486_v15  ;;  %v326_v3 = vmul.f32 %v5459_v58, %v5486_v15  ;;  %v327_v4 = vmul.f32 %v5463_v60, %v5486_v15 }
  0xa6   : > { %v4281_v28 = vpop.eup %4280  ;;  %1023 = vmatpush.msra.mxu2 %v4279_v21  ;;  %4284 = vtanh.f32 %v703_v13  ;;  %v468_v21 = vmul.f32 %v5453_v55, %v5538_v6 }
  0xa7   : > { %1088 = vmatpush.msra.mxu3 %v4281_v28  ;;  %4286 = vtanh.f32 %v704_v14  ;;  %v329_v28 = vmul.f32 %v5457_v57, %v5455_v56 }
  0xa8   : > { %849 = vperm.xlu1 %4261, %v4039_v26   ;;  %824 = vperm.xlu0 %4263, %v4034_v27   ;;  %4288 = vtanh.f32 %v705_v20  ;;  %v467_v20 = vmul.f32 %v5451_v54, %v5538_v6  ;;  %v469_v26 = vmul.f32 %v5461_v59, %v5538_v6  ;;  %v4032_v27 = vld [vmem:[%s8426_s1 + $0x80] sm:$0xff]  ;;  %v332_v6 = vmul.f32 %v5474_v2, %v5455_v56 }
  0xa9   : > { %844 = vperm.xlu2 %4262, %v4038_v34   ;;  %v5567_v36 = vpop.permute.xlu0 %390 }
  0xaa   : > { %v633_v9 = vpop.permute.xlu1 %632  ;;  %v462_v48 = vmul.f32 %v5449_v53, %v5567_v36  ;;  %v463_v50 = vmul.f32 %v5451_v54, %v5567_v36  ;;  %v464_v51 = vmul.f32 %v5453_v55, %v5567_v36  ;;  %v465_v63 = vmul.f32 %v5461_v59, %v5567_v36 }
  0xab   : > { %v4283_v41 = vpop.eup %4282  ;;  %v698_v42 = vadd.f32 %v633_v9, %v538_v35  ;;  %v699_v44 = vadd.f32 %v633_v9, %v539_v37  ;;  %v700_v45 = vadd.f32 %v633_v9, %v540_v38  ;;  %v701_v47 = vadd.f32 %v633_v9, %v541_v40  ;;  %v5594_v5 = vpop.permute.xlu2 %232 }
  0xac   : > { %v4285_v46 = vpop.eup %4284  ;;  %894 = vmatpush.msra.mxu0 %v4283_v41  ;;  %v530_v35 = vadd.f32 %v466_v19, %v329_v28  ;;  %v531_v37 = vadd.f32 %v467_v20, %v330_v29  ;;  %v532_v38 = vadd.f32 %v468_v21, %v331_v31  ;;  %v533_v41 = vadd.f32 %v469_v26, %v332_v6 }
  0xad   : > { %v4287_v39 = vpop.eup %4286  ;;  %4290 = vtanh.f32 %v698_v42  ;;  %959 = vmatpush.msra.mxu1 %v4285_v46  ;;  %v328_v36 = vmul.f32 %v5474_v2, %v5486_v15  ;;  %v321_v28 = vmul.f32 %v5457_v57, %v5517_v49  ;;  %v322_v29 = vmul.f32 %v5459_v58, %v5517_v49 }
  0xae   : > { %v4289_v62 = vpop.eup %4288  ;;  %4292 = vtanh.f32 %v699_v44  ;;  %1024 = vmatpush.msra.mxu2 %v4287_v39  ;;  %v323_v31 = vmul.f32 %v5463_v60, %v5517_v49 }
  0xaf   : > { %4294 = vtanh.f32 %v700_v45  ;;  %1089 = vmatpush.msra.mxu3 %v4289_v62 }
  0xb0   : > { %4296 = vtanh.f32 %v701_v47  ;;  %834 = vperm.xlu1 %4261, %v4036_v52   ;;  %1327 = vperm.xlu0 %4263, %v4079_v61   ;;  %v4078_v52 = vld [vmem:[%s8426_s1 + $0x170] sm:$0xff]  ;;  %v4073_v61 = vld [vmem:[%s8426_s1 + $0x148] sm:$0xff] }
  0xb1   : > { %829 = vperm.xlu2 %4262, %v4035_v0   ;;  %v5596_v7 = vpop.permute.xlu0 %386  ;;  %v4077_v0 = vld [vmem:[%s8426_s1 + $0x168] sm:$0xff] }
  0xb2   : > { %v628_v11 = vpop.permute.xlu1 %627  ;;  %v458_v19 = vmul.f32 %v5449_v53, %v5596_v7  ;;  %v459_v20 = vmul.f32 %v5451_v54, %v5596_v7  ;;  %v460_v21 = vmul.f32 %v5453_v55, %v5596_v7  ;;  %v461_v26 = vmul.f32 %v5461_v59, %v5596_v7 }
  0xb3   : > { %v4291_v12 = vpop.eup %4290  ;;  %v694_v13 = vadd.f32 %v628_v11, %v534_v8  ;;  %v695_v14 = vadd.f32 %v628_v11, %v535_v25  ;;  %v696_v16 = vadd.f32 %v628_v11, %v536_v10  ;;  %v697_v18 = vadd.f32 %v628_v11, %v537_v30  ;;  %v5625_v9 = vpop.permute.xlu2 %227 }
  0xb4   : > { %v4293_v17 = vpop.eup %4292  ;;  %895 = vmatpush.msra.mxu0 %v4291_v12  ;;  %v526_v8 = vadd.f32 %v462_v48, %v325_v1  ;;  %v527_v25 = vadd.f32 %v463_v50, %v326_v3  ;;  %v528_v10 = vadd.f32 %v464_v51, %v327_v4  ;;  %v529_v30 = vadd.f32 %v465_v63, %v328_v36  ;;  %v4072_v51 = vld [vmem:[%s8426_s1 + $0x140] sm:$0xff] }
  0xb5   : > { %v4295_v43 = vpop.eup %4294  ;;  %4298 = vtanh.f32 %v694_v13  ;;  %960 = vmatpush.msra.mxu1 %v4293_v17  ;;  %v324_v7 = vmul.f32 %v5474_v2, %v5517_v49  ;;  %v317_v1 = vmul.f32 %v5457_v57, %v5562_v32  ;;  %v318_v3 = vmul.f32 %v5459_v58, %v5562_v32 }
  0xb6   : > { %v4297_v24 = vpop.eup %4296  ;;  %4300 = vtanh.f32 %v695_v14  ;;  %1025 = vmatpush.msra.mxu2 %v4295_v43  ;;  %v319_v4 = vmul.f32 %v5463_v60, %v5562_v32 }
  0xb7   : > { %4302 = vtanh.f32 %v696_v16  ;;  %1090 = vmatpush.msra.mxu3 %v4297_v24 }
  0xb8   : > { %4304 = vtanh.f32 %v697_v18  ;;  %819 = vperm.xlu1 %4261, %v4033_v22   ;;  %1312 = vperm.xlu0 %4263, %v4076_v23   ;;  %v4075_v22 = vld [vmem:[%s8426_s1 + $0x158] sm:$0xff]  ;;  %v4070_v23 = vld [vmem:[%s8426_s1 + $0x130] sm:$0xff] }
  0xb9   : > { %814 = vperm.xlu2 %4262, %v4032_v27   ;;  %v5623_v34 = vpop.permute.xlu0 %382  ;;  %v4074_v27 = vld [vmem:[%s8426_s1 + $0x150] sm:$0xff] }
  0xba   : > { %v623_v40 = vpop.permute.xlu1 %622  ;;  %v454_v49 = vmul.f32 %v5449_v53, %v5623_v34  ;;  %v455_v48 = vmul.f32 %v5451_v54, %v5623_v34  ;;  %v456_v50 = vmul.f32 %v5453_v55, %v5623_v34 }
  0xbb   : > { %v4299_v42 = vpop.eup %4298  ;;  %v690_v44 = vadd.f32 %v623_v40, %v530_v35  ;;  %v691_v45 = vadd.f32 %v623_v40, %v531_v37  ;;  %v692_v46 = vadd.f32 %v623_v40, %v532_v38  ;;  %v693_v39 = vadd.f32 %v623_v40, %v533_v41  ;;  %v5654_v18 = vpop.permute.xlu2 %222 }
  0xbc   : > { %v4301_v47 = vpop.eup %4300  ;;  %896 = vmatpush.msra.mxu0 %v4299_v42  ;;  %v522_v35 = vadd.f32 %v458_v19, %v321_v28  ;;  %v523_v37 = vadd.f32 %v459_v20, %v322_v29  ;;  %v524_v38 = vadd.f32 %v460_v21, %v323_v31  ;;  %v525_v41 = vadd.f32 %v461_v26, %v324_v7  ;;  %v4069_v21 = vld [vmem:[%s8426_s1 + $0x128] sm:$0xff]  ;;  %v4068_v26 = vld [vmem:[%s8426_s1 + $0x120] sm:$0xff] }
  0xbd   : > { %v4303_v56 = vpop.eup %4302  ;;  %4306 = vtanh.f32 %v690_v44  ;;  %961 = vmatpush.msra.mxu1 %v4301_v47  ;;  %v314_v28 = vmul.f32 %v5459_v58, %v5594_v5  ;;  %v315_v29 = vmul.f32 %v5463_v60, %v5594_v5 }
  0xbe   : > { %v4305_v62 = vpop.eup %4304  ;;  %4308 = vtanh.f32 %v691_v45  ;;  %1026 = vmatpush.msra.mxu2 %v4303_v56 }
  0xbf   : > { %4310 = vtanh.f32 %v692_v46  ;;  %1091 = vmatpush.msra.mxu3 %v4305_v62  ;;  %v457_v62 = vmul.f32 %v5461_v59, %v5623_v34  ;;  %v320_v34 = vmul.f32 %v5474_v2, %v5562_v32 }
  0xc0   : > { %4312 = vtanh.f32 %v693_v39  ;;  %1322 = vperm.xlu1 %4261, %v4078_v52   ;;  %1297 = vperm.xlu0 %4263, %v4073_v61   ;;  %v4067_v52 = vld [vmem:[%s8426_s1 + $0x118] sm:$0xff] }
  0xc1   : > { %1317 = vperm.xlu2 %4262, %v4077_v0   ;;  %v5652_v33 = vpop.permute.xlu0 %378  ;;  %v4071_v0 = vld [vmem:[%s8426_s1 + $0x138] sm:$0xff] }
  0xc2   : > { %v618_v11 = vpop.permute.xlu1 %617  ;;  %v450_v32 = vmul.f32 %v5449_v53, %v5652_v33  ;;  %v451_v19 = vmul.f32 %v5451_v54, %v5652_v33  ;;  %v452_v20 = vmul.f32 %v5453_v55, %v5652_v33 }
  0xc3   : > { %v4307_v12 = vpop.eup %4306  ;;  %v686_v13 = vadd.f32 %v618_v11, %v526_v8  ;;  %v687_v14 = vadd.f32 %v618_v11, %v527_v25  ;;  %v688_v16 = vadd.f32 %v618_v11, %v528_v10  ;;  %v689_v43 = vadd.f32 %v618_v11, %v529_v30  ;;  %v5697_v63 = vpop.permute.xlu2 %217 }
  0xc4   : > { %v4309_v17 = vpop.eup %4308  ;;  %897 = vmatpush.msra.mxu0 %v4307_v12  ;;  %v518_v8 = vadd.f32 %v454_v49, %v317_v1  ;;  %v519_v25 = vadd.f32 %v455_v48, %v318_v3  ;;  %v520_v10 = vadd.f32 %v456_v50, %v319_v4  ;;  %v521_v30 = vadd.f32 %v457_v62, %v320_v34  ;;  %v4066_v50 = vld [vmem:[%s8426_s1 + $0x110] sm:$0xff]  ;;  %v4065_v62 = vld [vmem:[%s8426_s1 + $0x108] sm:$0xff] }
  0xc5   : > { %v4311_v15 = vpop.eup %4310  ;;  %4314 = vtanh.f32 %v686_v13  ;;  %962 = vmatpush.msra.mxu1 %v4309_v17  ;;  %v310_v1 = vmul.f32 %v5459_v58, %v5625_v9  ;;  %v311_v3 = vmul.f32 %v5463_v60, %v5625_v9 }
  0xc6   : > { %v4313_v24 = vpop.eup %4312  ;;  %4316 = vtanh.f32 %v687_v14  ;;  %1027 = vmatpush.msra.mxu2 %v4311_v15 }
  0xc7   : > { %4318 = vtanh.f32 %v688_v16  ;;  %1092 = vmatpush.msra.mxu3 %v4313_v24  ;;  %v453_v24 = vmul.f32 %v5461_v59, %v5652_v33  ;;  %v316_v33 = vmul.f32 %v5474_v2, %v5594_v5 }
  0xc8   : > { %4320 = vtanh.f32 %v689_v43  ;;  %1307 = vperm.xlu1 %4261, %v4075_v22   ;;  %1282 = vperm.xlu0 %4263, %v4070_v23   ;;  %v4064_v22 = vld [vmem:[%s8426_s1 + $0x100] sm:$0xff] }
  0xc9   : > { %1302 = vperm.xlu2 %4262, %v4074_v27   ;;  %v5681_v6 = vpop.permute.xlu0 %374  ;;  %v313_v27 = vmul.f32 %v5457_v57, %v5594_v5 }
  0xca   : > { %v613_v40 = vpop.permute.xlu1 %612  ;;  %v447_v49 = vmul.f32 %v5451_v54, %v5681_v6  ;;  %v448_v48 = vmul.f32 %v5453_v55, %v5681_v6 }
  0xcb   : > { %v4315_v42 = vpop.eup %4314  ;;  %v682_v44 = vadd.f32 %v613_v40, %v522_v35  ;;  %v683_v45 = vadd.f32 %v613_v40, %v523_v37  ;;  %v684_v46 = vadd.f32 %v613_v40, %v524_v38  ;;  %v685_v39 = vadd.f32 %v613_v40, %v525_v41  ;;  %v5737_v31 = vpop.permute.xlu2 %212 }
  0xcc   : > { %v4317_v47 = vpop.eup %4316  ;;  %898 = vmatpush.msra.mxu0 %v4315_v42  ;;  %v514_v35 = vadd.f32 %v450_v32, %v313_v27  ;;  %v515_v37 = vadd.f32 %v451_v19, %v314_v28  ;;  %v516_v38 = vadd.f32 %v452_v20, %v315_v29  ;;  %v517_v41 = vadd.f32 %v453_v24, %v316_v33  ;;  %v4111_v20 = vld [vmem:[%s8426_s1 + $0x1f8] sm:$0xff]  ;;  %v4110_v24 = vld [vmem:[%s8426_s1 + $0x1f0] sm:$0xff] }
  0xcd   : > { %v4319_v56 = vpop.eup %4318  ;;  %4322 = vtanh.f32 %v682_v44  ;;  %963 = vmatpush.msra.mxu1 %v4317_v47  ;;  %v306_v27 = vmul.f32 %v5459_v58, %v5654_v18  ;;  %v307_v28 = vmul.f32 %v5463_v60, %v5654_v18 }
  0xce   : > { %v4321_v61 = vpop.eup %4320  ;;  %4324 = vtanh.f32 %v683_v45  ;;  %1028 = vmatpush.msra.mxu2 %v4319_v56  ;;  %v446_v56 = vmul.f32 %v5449_v53, %v5681_v6 }
  0xcf   : > { %4326 = vtanh.f32 %v684_v46  ;;  %1093 = vmatpush.msra.mxu3 %v4321_v61  ;;  %v449_v61 = vmul.f32 %v5461_v59, %v5681_v6  ;;  %v312_v6 = vmul.f32 %v5474_v2, %v5625_v9 }
  0xd0   : > { %4328 = vtanh.f32 %v685_v39  ;;  %1292 = vperm.xlu1 %4261, %v4072_v51   ;;  %1267 = vperm.xlu0 %4263, %v4067_v52   ;;  %v4109_v51 = vld [vmem:[%s8426_s1 + $0x1e8] sm:$0xff] }
  0xd1   : > { %1287 = vperm.xlu2 %4262, %v4071_v0   ;;  %v5710_v36 = vpop.permute.xlu0 %370  ;;  %v309_v0 = vmul.f32 %v5457_v57, %v5625_v9 }
  0xd2   : > { %v608_v11 = vpop.permute.xlu1 %607  ;;  %v443_v32 = vmul.f32 %v5451_v54, %v5710_v36  ;;  %v444_v19 = vmul.f32 %v5453_v55, %v5710_v36 }
  0xd3   : > { %v4323_v12 = vpop.eup %4322  ;;  %v678_v13 = vadd.f32 %v608_v11, %v518_v8  ;;  %v679_v14 = vadd.f32 %v608_v11, %v519_v25  ;;  %v680_v16 = vadd.f32 %v608_v11, %v520_v10  ;;  %v681_v43 = vadd.f32 %v608_v11, %v521_v30  ;;  %v5768_v10 = vpop.permute.xlu2 %207 }
  0xd4   : > { %v4325_v17 = vpop.eup %4324  ;;  %899 = vmatpush.msra.mxu0 %v4323_v12  ;;  %v510_v34 = vadd.f32 %v446_v56, %v309_v0  ;;  %v511_v8 = vadd.f32 %v447_v49, %v310_v1  ;;  %v512_v25 = vadd.f32 %v448_v48, %v311_v3  ;;  %v513_v30 = vadd.f32 %v449_v61, %v312_v6  ;;  %v4108_v48 = vld [vmem:[%s8426_s1 + $0x1e0] sm:$0xff] }
  0xd5   : > { %v4327_v15 = vpop.eup %4326  ;;  %4330 = vtanh.f32 %v678_v13  ;;  %964 = vmatpush.msra.mxu1 %v4325_v17  ;;  %v302_v0 = vmul.f32 %v5459_v58, %v5697_v63  ;;  %v303_v1 = vmul.f32 %v5463_v60, %v5697_v63  ;;  %v297_v6 = vmul.f32 %v5457_v57, %v5737_v31 }
  0xd6   : > { %v4329_v23 = vpop.eup %4328  ;;  %4332 = vtanh.f32 %v679_v14  ;;  %1029 = vmatpush.msra.mxu2 %v4327_v15  ;;  %v442_v15 = vmul.f32 %v5449_v53, %v5710_v36 }
  0xd7   : > { %4334 = vtanh.f32 %v680_v16  ;;  %1094 = vmatpush.msra.mxu3 %v4329_v23  ;;  %v445_v23 = vmul.f32 %v5461_v59, %v5710_v36  ;;  %v308_v36 = vmul.f32 %v5474_v2, %v5654_v18 }
  0xd8   : > { %4336 = vtanh.f32 %v681_v43  ;;  %1277 = vperm.xlu1 %4261, %v4069_v21   ;;  %1252 = vperm.xlu0 %4263, %v4064_v22   ;;  %v4106_v21 = vld [vmem:[%s8426_s1 + $0x1d0] sm:$0xff] }
  0xd9   : > { %1272 = vperm.xlu2 %4262, %v4068_v26   ;;  %v5739_v7 = vpop.permute.xlu0 %366  ;;  %v305_v26 = vmul.f32 %v5457_v57, %v5654_v18 }
  0xda   : > { %v603_v40 = vpop.permute.xlu1 %602  ;;  %v439_v56 = vmul.f32 %v5451_v54, %v5739_v7  ;;  %v440_v49 = vmul.f32 %v5453_v55, %v5739_v7  ;;  %v441_v61 = vmul.f32 %v5461_v59, %v5739_v7 }
  0xdb   : > { %v4331_v42 = vpop.eup %4330  ;;  %v674_v44 = vadd.f32 %v603_v40, %v514_v35  ;;  %v675_v45 = vadd.f32 %v603_v40, %v515_v37  ;;  %v676_v46 = vadd.f32 %v603_v40, %v516_v38  ;;  %v677_v39 = vadd.f32 %v603_v40, %v517_v41 }
  0xdc   : > { %v4333_v47 = vpop.eup %4332  ;;  %900 = vmatpush.msra.mxu0 %v4331_v42  ;;  %v506_v33 = vadd.f32 %v442_v15, %v305_v26  ;;  %v507_v35 = vadd.f32 %v443_v32, %v306_v27  ;;  %v508_v37 = vadd.f32 %v444_v19, %v307_v28  ;;  %v509_v40 = vadd.f32 %v445_v23, %v308_v36 }
  0xdd   : > { %v4335_v5 = vpop.eup %4334  ;;  %4338 = vtanh.f32 %v674_v44  ;;  %965 = vmatpush.msra.mxu1 %v4333_v47  ;;  %v5797_v47 = vpop.permute.xlu2 %202 }
  0xde   : > { %v4337_v52 = vpop.eup %4336  ;;  %4340 = vtanh.f32 %v675_v45  ;;  %1030 = vmatpush.msra.mxu2 %v4335_v5  ;;  %v438_v5 = vmul.f32 %v5449_v53, %v5739_v7  ;;  %v304_v7 = vmul.f32 %v5474_v2, %v5697_v63 }
  0xdf   : > { %4342 = vtanh.f32 %v676_v46  ;;  %1095 = vmatpush.msra.mxu3 %v4337_v52  ;;  %v301_v52 = vmul.f32 %v5457_v57, %v5697_v63  ;;  %v298_v63 = vmul.f32 %v5459_v58, %v5737_v31 }
  0xe0   : > { %4344 = vtanh.f32 %v677_v39  ;;  %1262 = vperm.xlu1 %4261, %v4066_v50   ;;  %1755 = vperm.xlu0 %4263, %v4109_v51   ;;  %v4103_v50 = vld [vmem:[%s8426_s1 + $0x1b8] sm:$0xff] }
  0xe1   : > { %1257 = vperm.xlu2 %4262, %v4065_v62   ;;  %v5766_v4 = vpop.permute.xlu0 %362  ;;  %v4107_v62 = vld [vmem:[%s8426_s1 + $0x1d8] sm:$0xff] }
  0xe2   : > { %v598_v11 = vpop.permute.xlu1 %597  ;;  %v435_v27 = vmul.f32 %v5451_v54, %v5766_v4  ;;  %v436_v28 = vmul.f32 %v5453_v55, %v5766_v4 }
  0xe3   : > { %v4339_v12 = vpop.eup %4338  ;;  %v670_v13 = vadd.f32 %v598_v11, %v510_v34  ;;  %v671_v14 = vadd.f32 %v598_v11, %v511_v8  ;;  %v672_v16 = vadd.f32 %v598_v11, %v512_v25  ;;  %v673_v43 = vadd.f32 %v598_v11, %v513_v30 }
  0xe4   : > { %v4341_v17 = vpop.eup %4340  ;;  %901 = vmatpush.msra.mxu0 %v4339_v12  ;;  %v293_v8 = vmul.f32 %v5457_v57, %v5768_v10  ;;  %v502_v11 = vadd.f32 %v438_v5, %v301_v52  ;;  %v503_v30 = vadd.f32 %v439_v56, %v302_v0  ;;  %v504_v12 = vadd.f32 %v440_v49, %v303_v1 }
  0xe5   : > { %v4343_v9 = vpop.eup %4342  ;;  %4346 = vtanh.f32 %v670_v13  ;;  %966 = vmatpush.msra.mxu1 %v4341_v17  ;;  %v294_v13 = vmul.f32 %v5459_v58, %v5768_v10  ;;  %v505_v17 = vadd.f32 %v441_v61, %v304_v7  ;;  %v499_v5 = vadd.f32 %v435_v27, %v298_v63 }
  0xe6   : > { %v4345_v22 = vpop.eup %4344  ;;  %4348 = vtanh.f32 %v671_v14  ;;  %1031 = vmatpush.msra.mxu2 %v4343_v9  ;;  %v434_v14 = vmul.f32 %v5449_v53, %v5766_v4  ;;  %v290_v49 = vmul.f32 %v5459_v58, %v5797_v47 }
  0xe7   : > { %4350 = vtanh.f32 %v672_v16  ;;  %1096 = vmatpush.msra.mxu3 %v4345_v22  ;;  %v300_v22 = vmul.f32 %v5474_v2, %v5737_v31 }
  0xe8   : > { %4352 = vtanh.f32 %v673_v43  ;;  %1765 = vperm.xlu1 %4261, %v4111_v20   ;;  %1740 = vperm.xlu0 %4263, %v4106_v21   ;;  %v299_v21 = vmul.f32 %v5463_v60, %v5737_v31  ;;  %v4100_v31 = vld [vmem:[%s8426_s1 + $0x1a0] sm:$0xff] }
  0xe9   : > { %1760 = vperm.xlu2 %4262, %v4110_v24   ;;  %v5795_v29 = vpop.permute.xlu0 %358 }
  0xea   : > { %v593_v38 = vpop.permute.xlu1 %592  ;;  %v430_v3 = vmul.f32 %v5449_v53, %v5795_v29  ;;  %v431_v34 = vmul.f32 %v5451_v54, %v5795_v29  ;;  %v432_v36 = vmul.f32 %v5453_v55, %v5795_v29  ;;  %v500_v56 = vadd.f32 %v436_v28, %v299_v21  ;;  %v4098_v21 = vld [vmem:[%s8426_s1 + $0x190] sm:$0xff] }
  0xeb   : > { %v4347_v41 = vpop.eup %4346  ;;  %v666_v42 = vadd.f32 %v593_v38, %v506_v33  ;;  %v667_v44 = vadd.f32 %v593_v38, %v507_v35  ;;  %v668_v45 = vadd.f32 %v593_v38, %v508_v37  ;;  %v669_v39 = vadd.f32 %v593_v38, %v509_v40  ;;  %v4105_v33 = vld [vmem:[%s8426_s1 + $0x1c8] sm:$0xff] }
  0xec   : > { %v4349_v46 = vpop.eup %4348  ;;  %902 = vmatpush.msra.mxu0 %v4347_v41  ;;  %v494_v9 = vadd.f32 %v430_v3, %v293_v8  ;;  %v495_v23 = vadd.f32 %v431_v34, %v294_v13  ;;  %v295_v37 = vmul.f32 %v5463_v60, %v5768_v10  ;;  %v296_v38 = vmul.f32 %v5474_v2, %v5768_v10  ;;  %v5862_v41 = vpop.permute.xlu2 %577  ;;  %v4097_v34 = vld [vmem:[%s8426_s1 + $0x188] sm:$0xff] }
  0xed   : > { %v4351_v18 = vpop.eup %4350  ;;  %4354 = vtanh.f32 %v666_v42  ;;  %967 = vmatpush.msra.mxu1 %v4349_v46  ;;  %v437_v40 = vmul.f32 %v5461_v59, %v5766_v4  ;;  %v4104_v42 = vld [vmem:[%s8426_s1 + $0x1c0] sm:$0xff]  ;;  %v433_v10 = vmul.f32 %v5461_v59, %v5795_v29  ;;  %v291_v29 = vmul.f32 %v5463_v60, %v5797_v47 }
  0xee   : > { %v4353_v51 = vpop.eup %4352  ;;  %4356 = vtanh.f32 %v667_v44  ;;  %1032 = vmatpush.msra.mxu2 %v4351_v18  ;;  %v289_v44 = vmul.f32 %v5457_v57, %v5797_v47  ;;  %v654_v46 = vadd.f32 %v5862_v41, %v494_v9  ;;  %v496_v18 = vadd.f32 %v432_v36, %v295_v37  ;;  %v4017_v37 = vld [vmem:[%s8425_s0 + $0x88] sm:$0xff] }
  0xef   : > { %4358 = vtanh.f32 %v668_v45  ;;  %1097 = vmatpush.msra.mxu3 %v4353_v51  ;;  %v498_v45 = vadd.f32 %v434_v14, %v297_v6  ;;  %v497_v1 = vadd.f32 %v433_v10, %v296_v38  ;;  %v4102_v6 = vld [vmem:[%s8426_s1 + $0x1b0] sm:$0xff]  ;;  %v4141_v38 = vld [vmem:[%s8426_s1 + $0x268] sm:$0xff]  ;;  %v4019_v10 = vld [vmem:[%s8425_s0 + $0x98] sm:$0xff] }
  0xf0   : > { %4360 = vtanh.f32 %v669_v39  ;;  %1750 = vperm.xlu1 %4261, %v4108_v48   ;;  %1725 = vperm.xlu0 %4263, %v4103_v50   ;;  %v655_v39 = vadd.f32 %v5862_v41, %v495_v23  ;;  %v501_v50 = vadd.f32 %v437_v40, %v300_v22  ;;  %v656_v8 = vadd.f32 %v5862_v41, %v496_v18  ;;  %v4136_v40 = vld [vmem:[%s8426_s1 + $0x240] sm:$0xff]  ;;  %v4134_v18 = vld [vmem:[%s8426_s1 + $0x230] sm:$0xff] }
  0xf1   : > { %1745 = vperm.xlu2 %4262, %v4107_v62   ;;  %v5832_v25 = vpop.permute.xlu0 %354 }
  0xf2   : > { %v588_v16 = vpop.permute.xlu1 %587  ;;  %v426_v4 = vmul.f32 %v5449_v53, %v5832_v25  ;;  %v427_v57 = vmul.f32 %v5451_v54, %v5832_v25  ;;  %v428_v53 = vmul.f32 %v5453_v55, %v5832_v25  ;;  %v429_v60 = vmul.f32 %v5461_v59, %v5832_v25  ;;  %v4101_v59 = vld [vmem:[%s8426_s1 + $0x1a8] sm:$0xff] }
  0xf3   : > { %v4355_v43 = vpop.eup %4354  ;;  %v662_v15 = vadd.f32 %v588_v16, %v502_v11  ;;  %v663_v32 = vadd.f32 %v588_v16, %v503_v30  ;;  %v664_v19 = vadd.f32 %v588_v16, %v504_v12  ;;  %v665_v24 = vadd.f32 %v588_v16, %v505_v17 }
  0xf4   : > { %v4357_v20 = vpop.eup %4356  ;;  %903 = vmatpush.msra.mxu0 %v4355_v43  ;;  %v490_v7 = vadd.f32 %v426_v4, %v289_v44  ;;  %v491_v55 = vadd.f32 %v427_v57, %v290_v49  ;;  %v492_v30 = vadd.f32 %v428_v53, %v291_v29  ;;  %v292_v25 = vmul.f32 %v5474_v2, %v5797_v47  ;;  %v4099_v47 = vld [vmem:[%s8426_s1 + $0x198] sm:$0xff]  ;;  %v4138_v44 = vld [vmem:[%s8426_s1 + $0x250] sm:$0xff]  ;;  %v4020_v57 = vld [vmem:[%s8425_s0 + $0xa0] sm:$0xff] }
  0xf5   : > { %v4359_v26 = vpop.eup %4358  ;;  %4362 = vtanh.f32 %v662_v15  ;;  %968 = vmatpush.msra.mxu1 %v4357_v20  ;;  %v657_v17 = vadd.f32 %v5862_v41, %v497_v1  ;;  %v4142_v20 = vld [vmem:[%s8426_s1 + $0x270] sm:$0xff]  ;;  %v4140_v41 = vld [vmem:[%s8426_s1 + $0x260] sm:$0xff]  ;;  %v4135_v4 = vld [vmem:[%s8426_s1 + $0x238] sm:$0xff] }
  0xf6   : > { %v4361_v35 = vpop.eup %4360  ;;  %4364 = vtanh.f32 %v663_v32  ;;  %1033 = vmatpush.msra.mxu2 %v4359_v26  ;;  %v493_v16 = vadd.f32 %v429_v60, %v292_v25  ;;  %v4131_v49 = vld [vmem:[%s8426_s1 + $0x218] sm:$0xff]  ;;  %v4021_v29 = vld [vmem:[%s8425_s0 + $0xa8] sm:$0xff]  ;;  %v4166_v1 = vld [vmem:[%s8426_s1 + $0x2b0] sm:$0xff] }
  0xf7   : > { %4366 = vtanh.f32 %v664_v19  ;;  %1098 = vmatpush.msra.mxu3 %v4361_v35  ;;  %v4143_v35 = vld [vmem:[%s8426_s1 + $0x278] sm:$0xff]  ;;  %v4129_v53 = vld [vmem:[%s8426_s1 + $0x208] sm:$0xff] }
  0xf8   : > { %4368 = vtanh.f32 %v665_v24  ;;  %1735 = vperm.xlu1 %4261, %v4105_v33   ;;  %1710 = vperm.xlu0 %4263, %v4100_v31   ;;  %v4016_v24 = vld [vmem:[%s8425_s0 + $0x80] sm:$0xff]  ;;  %v4139_v31 = vld [vmem:[%s8426_s1 + $0x258] sm:$0xff]  ;;  %v4161_v25 = vld [vmem:[%s8426_s1 + $0x288] sm:$0xff] }
  0xf9   : > { %1730 = vperm.xlu2 %4262, %v4104_v42   ;;  %4370 = vtanh.f32 %v654_v46  ;;  %v4096_v33 = vld [vmem:[%s8426_s1 + $0x180] sm:$0xff]  ;;  %v4018_v42 = vld [vmem:[%s8425_s0 + $0x90] sm:$0xff]  ;;  %v4137_v46 = vld [vmem:[%s8426_s1 + $0x248] sm:$0xff] }
  0xfa   : > { %v583_v48 = vpop.permute.xlu1 %582  ;;  %v573_v0 = vpop.permute.xlu0 %572  ;;  %4372 = vtanh.f32 %v655_v39  ;;  %v4130_v39 = vld [vmem:[%s8426_s1 + $0x210] sm:$0xff]  ;;  %v4163_v60 = vld [vmem:[%s8426_s1 + $0x298] sm:$0xff] }
  0xfb   : > { %v4363_v51 = vpop.eup %4362  ;;  %v658_v52 = vadd.f32 %v583_v48, %v498_v45  ;;  %v659_v61 = vadd.f32 %v583_v48, %v499_v5  ;;  %v660_v62 = vadd.f32 %v583_v48, %v500_v56  ;;  %v661_v3 = vadd.f32 %v583_v48, %v501_v50  ;;  %v4133_v45 = vld [vmem:[%s8426_s1 + $0x228] sm:$0xff]  ;;  %v4132_v5 = vld [vmem:[%s8426_s1 + $0x220] sm:$0xff]  ;;  %v4175_v56 = vld [vmem:[%s8426_s1 + $0x2f8] sm:$0xff] }
  0xfc   : > { %v4365_v54 = vpop.eup %4364  ;;  %904 = vmatpush.msra.mxu0 %v4363_v51  ;;  %v650_v12 = vadd.f32 %v573_v0, %v490_v7  ;;  %v651_v63 = vadd.f32 %v573_v0, %v491_v55  ;;  %v652_v13 = vadd.f32 %v573_v0, %v492_v30  ;;  %v653_v15 = vadd.f32 %v573_v0, %v493_v16  ;;  %v4172_v48 = vld [vmem:[%s8426_s1 + $0x2e0] sm:$0xff]  ;;  %v4022_v51 = vld [vmem:[%s8425_s0 + $0xb0] sm:$0xff]  ;;  %v4023_v0 = vld [vmem:[%s8425_s0 + $0xb8] sm:$0xff] }
  0xfd   : > { %v4367_v58 = vpop.eup %4366  ;;  %4374 = vtanh.f32 %v658_v52  ;;  %969 = vmatpush.msra.mxu1 %v4365_v54  ;;  %v4128_v50 = vld [vmem:[%s8426_s1 + $0x200] sm:$0xff]  ;;  %v4174_v52 = vld [vmem:[%s8426_s1 + $0x2f0] sm:$0xff]  ;;  %v4171_v54 = vld [vmem:[%s8426_s1 + $0x2d8] sm:$0xff] }
  0xfe   : > { %v4369_v11 = vpop.eup %4368  ;;  %4376 = vtanh.f32 %v659_v61  ;;  %1034 = vmatpush.msra.mxu2 %v4367_v58  ;;  %v4169_v61 = vld [vmem:[%s8426_s1 + $0x2c8] sm:$0xff]  ;;  %v4024_v7 = vld [vmem:[%s8425_s0 + $0xc0] sm:$0xff]  ;;  %v4167_v55 = vld [vmem:[%s8426_s1 + $0x2b8] sm:$0xff] }
  0xff   : > { %4378 = vtanh.f32 %v660_v62  ;;  %1099 = vmatpush.msra.mxu3 %v4369_v11  ;;  %v4371_v14 = vpop.eup %4370  ;;  %v4173_v62 = vld [vmem:[%s8426_s1 + $0x2e8] sm:$0xff]  ;;  %v4168_v58 = vld [vmem:[%s8426_s1 + $0x2c0] sm:$0xff]  ;;  %v4026_v30 = vld [vmem:[%s8425_s0 + $0xd0] sm:$0xff] }
 0x100   : > { %4380 = vtanh.f32 %v661_v3  ;;  %1720 = vperm.xlu1 %4261, %v4102_v6   ;;  %1695 = vperm.xlu0 %4263, %v4097_v34   ;;  %v4373_v43 = vpop.eup %4372  ;;  %v4170_v3 = vld [vmem:[%s8426_s1 + $0x2d0] sm:$0xff]  ;;  %v4025_v6 = vld [vmem:[%s8425_s0 + $0xc8] sm:$0xff]  ;;  %v4164_v11 = vld [vmem:[%s8426_s1 + $0x2a0] sm:$0xff] }
 0x101   : > { %1715 = vperm.xlu2 %4262, %v4101_v59   ;;  %4382 = vtanh.f32 %v656_v8  ;;  %v4165_v34 = vld [vmem:[%s8426_s1 + $0x2a8] sm:$0xff]  ;;  %v4160_v8 = vld [vmem:[%s8426_s1 + $0x280] sm:$0xff]  ;;  %v4206_v16 = vld [vmem:[%s8426_s1 + $0x370] sm:$0xff] }
 0x102   : > { %4384 = vtanh.f32 %v650_v12  ;;  %v4162_v12 = vld [vmem:[%s8426_s1 + $0x290] sm:$0xff]  ;;  %v4205_v59 = vld [vmem:[%s8426_s1 + $0x368] sm:$0xff] }
 0x103   : > { %v4375_v9 = vpop.eup %4374  ;;  %4386 = vtanh.f32 %v651_v63  ;;  %v4027_v63 = vld [vmem:[%s8425_s0 + $0xd8] sm:$0xff] }
 0x104   : > { %v4377_v32 = vpop.eup %4376  ;;  %4388 = vtanh.f32 %v652_v13  ;;  %905 = vmatpush.msra.mxu0 %v4375_v9  ;;  %v4207_v13 = vld [vmem:[%s8426_s1 + $0x378] sm:$0xff] }
 0x105   : > { %v4379_v2 = vpop.eup %4378  ;;  %970 = vmatpush.msra.mxu1 %v4377_v32  ;;  %4390 = vtanh.f32 %v657_v17  ;;  %v4028_v17 = vld [vmem:[%s8425_s0 + $0xe0] sm:$0xff]  ;;  %v4199_v9 = vld [vmem:[%s8426_s1 + $0x338] sm:$0xff]  ;;  %v4029_v32 = vld [vmem:[%s8425_s0 + $0xe8] sm:$0xff] }
 0x106   : > { %v4381_v19 = vpop.eup %4380  ;;  %1035 = vmatpush.msra.mxu2 %v4379_v2  ;;  %906 = vmatpush.msra.mxu0 %v4371_v14  ;;  %4392 = vtanh.f32 %v653_v15  ;;  %v4202_v14 = vld [vmem:[%s8426_s1 + $0x350] sm:$0xff]  ;;  %v4203_v15 = vld [vmem:[%s8426_s1 + $0x358] sm:$0xff]  ;;  %v4201_v2 = vld [vmem:[%s8426_s1 + $0x348] sm:$0xff] }
 0x107   : > { %v4383_v22 = vpop.eup %4382  ;;  %1100 = vmatpush.msra.mxu3 %v4381_v19  ;;  %971 = vmatpush.msra.mxu1 %v4373_v43  ;;  %v4204_v43 = vld [vmem:[%s8426_s1 + $0x360] sm:$0xff] }
 0x108   : > { %v4385_v23 = vpop.eup %4384  ;;  %1036 = vmatpush.msra.mxu2 %v4383_v22  ;;  %1705 = vperm.xlu1 %4261, %v4099_v47   ;;  %v4196_v47 = vld [vmem:[%s8426_s1 + $0x320] sm:$0xff]  ;;  %v4193_v22 = vld [vmem:[%s8426_s1 + $0x308] sm:$0xff] }
 0x109   : > { %v4387_v26 = vpop.eup %4386  ;;  %2198 = vperm.xlu0 %4263, %v4142_v20   ;;  %1700 = vperm.xlu2 %4262, %v4098_v21   ;;  %v4200_v19 = vld [vmem:[%s8426_s1 + $0x340] sm:$0xff]  ;;  %v4030_v20 = vld [vmem:[%s8425_s0 + $0xf0] sm:$0xff] }
 0x10a   : > { %v4389_v27 = vpop.eup %4388  ;;  %907 = vmatpush.msra.mxu0 %v4385_v23  ;;  %972 = vmatpush.msra.mxu1 %v4387_v26  ;;  %v4198_v21 = vld [vmem:[%s8426_s1 + $0x330] sm:$0xff]  ;;  %v4197_v23 = vld [vmem:[%s8426_s1 + $0x328] sm:$0xff]  ;;  %v4195_v26 = vld [vmem:[%s8426_s1 + $0x318] sm:$0xff] }
 0x10b   : > { %v4391_v28 = vpop.eup %4390  ;;  %1037 = vmatpush.msra.mxu2 %v4389_v27  ;;  %908 = vmatmul.f32.vlgmr.msra.gmra.mxu0 %v4016_v24  ;;  %v4238_v27 = vld [vmem:[%s8426_s1 + $0x3f0] sm:$0xff] }
 0x10c   : > { %1101 = vmatpush.msra.mxu3 %v4391_v28  ;;  %973 = vmatmul.f32.vlgmr.msra.gmra.mxu1 %v4016_v24  ;;  %v4393_v36 = vpop.eup %4392  ;;  %v4194_v28 = vld [vmem:[%s8426_s1 + $0x310] sm:$0xff] }
 0x10d   : > { %1038 = vmatmul.f32.vlgmr.msra.gmra.mxu2 %v4016_v24 }
 0x10e   : > { %1102 = vmatpush.msra.mxu3 %v4393_v36 }
 0x10f   : > { %1103 = vmatmul.f32.vlgmr.msra.gmra.mxu3 %v4016_v24  ;;  %v4031_v24 = vld [vmem:[%s8425_s0 + $0xf8] sm:$0xff] }
 0x110   : > { %1690 = vperm.xlu1 %4261, %v4096_v33  }
 0x111   : > { %2183 = vperm.xlu0 %4263, %v4139_v31   ;;  %2203 = vperm.xlu2 %4262, %v4143_v35   ;;  %v4192_v31 = vld [vmem:[%s8426_s1 + $0x300] sm:$0xff]  ;;  %v4235_v35 = vld [vmem:[%s8426_s1 + $0x3d8] sm:$0xff] }
 0x113   : > { %911 = vmatmul.f32.gmra.mxu0 %v4017_v37 }
 0x114   : > { %976 = vmatmul.f32.gmra.mxu1 %v4017_v37 }
 0x115   : > { %1041 = vmatmul.f32.gmra.mxu2 %v4017_v37 }
 0x117   : > { %1106 = vmatmul.f32.gmra.mxu3 %v4017_v37  ;;  %v4239_v37 = vld [vmem:[%s8426_s1 + $0x3f8] sm:$0xff] }
 0x118   : > { %2193 = vperm.xlu1 %4261, %v4141_v38  }
 0x119   : > { %2168 = vperm.xlu0 %4263, %v4136_v40   ;;  %2188 = vperm.xlu2 %4262, %v4140_v41  }
 0x11b   : > { %914 = vmatmul.f32.gmra.mxu0 %v4018_v42 }
 0x11c   : > { %979 = vmatmul.f32.gmra.mxu1 %v4018_v42 }
 0x11d   : > { %1044 = vmatmul.f32.gmra.mxu2 %v4018_v42 }
 0x11f   : > { %1109 = vmatmul.f32.gmra.mxu3 %v4018_v42 }
 0x120   : > { %2178 = vperm.xlu1 %4261, %v4138_v44   ;;  %v4237_v44 = vld [vmem:[%s8426_s1 + $0x3e8] sm:$0xff] }
 0x121   : > { %2153 = vperm.xlu0 %4263, %v4133_v45   ;;  %2173 = vperm.xlu2 %4262, %v4137_v46   ;;  %v4232_v45 = vld [vmem:[%s8426_s1 + $0x3c0] sm:$0xff] }
 0x122   : > { %v4236_v46 = vld [vmem:[%s8426_s1 + $0x3e0] sm:$0xff] }
 0x123   : > { %917 = vmatmul.f32.gmra.mxu0 %v4019_v10 }
 0x124   : > { %982 = vmatmul.f32.gmra.mxu1 %v4019_v10 }
 0x125   : > { %1047 = vmatmul.f32.gmra.mxu2 %v4019_v10 }
 0x127   : > { %1112 = vmatmul.f32.gmra.mxu3 %v4019_v10 }
 0x128   : > { %2163 = vperm.xlu1 %4261, %v4135_v4  }
 0x129   : > { %2138 = vperm.xlu0 %4263, %v4130_v39   ;;  %2158 = vperm.xlu2 %4262, %v4134_v18  }
 0x12b   : > { %920 = vmatmul.f32.gmra.mxu0 %v4020_v57 }
 0x12c   : > { %985 = vmatmul.f32.gmra.mxu1 %v4020_v57 }
 0x12d   : > { %1050 = vmatmul.f32.gmra.mxu2 %v4020_v57 }
 0x12f   : > { %1115 = vmatmul.f32.gmra.mxu3 %v4020_v57  ;;  %v4234_v57 = vld [vmem:[%s8426_s1 + $0x3d0] sm:$0xff] }
 0x130   : > { %2148 = vperm.xlu1 %4261, %v4132_v5   ;;  %v4229_v5 = vld [vmem:[%s8426_s1 + $0x3a8] sm:$0xff] }
 0x131   : > { %2641 = vperm.xlu0 %4263, %v4175_v56   ;;  %2143 = vperm.xlu2 %4262, %v4131_v49   ;;  %v4233_v56 = vld [vmem:[%s8426_s1 + $0x3c8] sm:$0xff] }
 0x133   : > { %923 = vmatmul.f32.gmra.mxu0 %v4021_v29 }
 0x134   : > { %988 = vmatmul.f32.gmra.mxu1 %v4021_v29 }
 0x135   : > { %1053 = vmatmul.f32.gmra.mxu2 %v4021_v29 }
 0x137   : > { %1118 = vmatmul.f32.gmra.mxu3 %v4021_v29 }
 0x138   : > { %2133 = vperm.xlu1 %4261, %v4129_v53  }
 0x139   : > { %2626 = vperm.xlu0 %4263, %v4172_v48   ;;  %2128 = vperm.xlu2 %4262, %v4128_v50   ;;  %v4231_v50 = vld [vmem:[%s8426_s1 + $0x3b8] sm:$0xff] }
 0x13b   : > { %926 = vmatmul.f32.gmra.mxu0 %v4022_v51 }
 0x13c   : > { %991 = vmatmul.f32.gmra.mxu1 %v4022_v51 }
 0x13d   : > { %1056 = vmatmul.f32.gmra.mxu2 %v4022_v51 }
 0x13f   : > { %1121 = vmatmul.f32.gmra.mxu3 %v4022_v51  ;;  %v4226_v51 = vld [vmem:[%s8426_s1 + $0x390] sm:$0xff] }
 0x140   : > { %2636 = vperm.xlu1 %4261, %v4174_v52   ;;  %v4230_v52 = vld [vmem:[%s8426_s1 + $0x3b0] sm:$0xff] }
 0x141   : > { %2611 = vperm.xlu0 %4263, %v4169_v61   ;;  %2631 = vperm.xlu2 %4262, %v4173_v62  }
 0x143   : > { %929 = vmatmul.f32.gmra.mxu0 %v4023_v0 }
 0x144   : > { %994 = vmatmul.f32.gmra.mxu1 %v4023_v0 }
 0x145   : > { %1059 = vmatmul.f32.gmra.mxu2 %v4023_v0 }
 0x147   : > { %1124 = vmatmul.f32.gmra.mxu3 %v4023_v0 }
 0x148   : > { %2621 = vperm.xlu1 %4261, %v4171_v54  }
 0x149   : > { %2596 = vperm.xlu0 %4263, %v4166_v1   ;;  %2616 = vperm.xlu2 %4262, %v4170_v3   ;;  %v4228_v1 = vld [vmem:[%s8426_s1 + $0x3a0] sm:$0xff] }
 0x14a   : > { %v4241_v3 = vld [vmem:[%s8426_s1 + $0x400] sm:$0xff] }
 0x14b   : > { %932 = vmatmul.f32.gmra.mxu0 %v4024_v7 }
 0x14c   : > { %997 = vmatmul.f32.gmra.mxu1 %v4024_v7 }
 0x14d   : > { %1062 = vmatmul.f32.gmra.mxu2 %v4024_v7 }
 0x14f   : > { %1127 = vmatmul.f32.gmra.mxu3 %v4024_v7  ;;  %v4227_v7 = vld [vmem:[%s8426_s1 + $0x398] sm:$0xff] }
 0x150   : > { %2606 = vperm.xlu1 %4261, %v4168_v58  }
 0x151   : > { %2581 = vperm.xlu0 %4263, %v4163_v60   ;;  %2601 = vperm.xlu2 %4262, %v4167_v55  }
 0x153   : > { %935 = vmatmul.f32.gmra.mxu0 %v4025_v6 }
 0x154   : > { %1000 = vmatmul.f32.gmra.mxu1 %v4025_v6 }
 0x155   : > { %1065 = vmatmul.f32.gmra.mxu2 %v4025_v6 }
 0x157   : > { %1130 = vmatmul.f32.gmra.mxu3 %v4025_v6 }
 0x158   : > { %2591 = vperm.xlu1 %4261, %v4165_v34   ;;  %v6188_v34 = vpop.permute.xlu2 %884 }
 0x159   : > { %2566 = vperm.xlu0 %4263, %v4160_v8   ;;  %2586 = vperm.xlu2 %4262, %v4164_v11   ;;  %v6190_v8 = vpop.permute.xlu1 %889  ;;  %v4225_v11 = vld [vmem:[%s8426_s1 + $0x388] sm:$0xff] }
 0x15b   : > { %938 = vmatmul.f32.gmra.mxu0 %v4026_v30 }
 0x15c   : > { %1003 = vmatmul.f32.gmra.mxu1 %v4026_v30 }
 0x15d   : > { %1068 = vmatmul.f32.gmra.mxu2 %v4026_v30 }
 0x15f   : > { %1133 = vmatmul.f32.gmra.mxu3 %v4026_v30  ;;  %v4224_v30 = vld [vmem:[%s8426_s1 + $0x380] sm:$0xff] }
 0x160   : > { %2576 = vperm.xlu1 %4261, %v4162_v12  }
 0x161   : > { %3069 = vperm.xlu0 %4263, %v4205_v59   ;;  %2571 = vperm.xlu2 %4262, %v4161_v25  }
 0x163   : > { %941 = vmatmul.f32.gmra.mxu0 %v4027_v63 }
 0x164   : > { %1006 = vmatmul.f32.gmra.mxu1 %v4027_v63 }
 0x165   : > { %1071 = vmatmul.f32.gmra.mxu2 %v4027_v63 }
 0x167   : > { %1136 = vmatmul.f32.gmra.mxu3 %v4027_v63 }
 0x168   : > { %3079 = vperm.xlu1 %4261, %v4207_v13   ;;  %v6206_v13 = vpop.permute.xlu2 %874 }
 0x169   : > { %3054 = vperm.xlu0 %4263, %v4202_v14   ;;  %3074 = vperm.xlu2 %4262, %v4206_v16   ;;  %v6208_v14 = vpop.permute.xlu1 %879 }
 0x16b   : > { %944 = vmatmul.f32.gmra.mxu0 %v4028_v17 }
 0x16c   : > { %1009 = vmatmul.f32.gmra.mxu1 %v4028_v17 }
 0x16d   : > { %1074 = vmatmul.f32.gmra.mxu2 %v4028_v17 }
 0x16f   : > { %1139 = vmatmul.f32.gmra.mxu3 %v4028_v17 }
 0x170   : > { %3064 = vperm.xlu1 %4261, %v4204_v43  }
 0x171   : > { %3039 = vperm.xlu0 %4263, %v4199_v9   ;;  %3059 = vperm.xlu2 %4262, %v4203_v15   ;;  %v6218_v15 = vpop.permute.xlu2 %859 }
 0x173   : > { %947 = vmatmul.f32.gmra.mxu0 %v4029_v32 }
 0x174   : > { %1012 = vmatmul.f32.gmra.mxu1 %v4029_v32 }
 0x175   : > { %1077 = vmatmul.f32.gmra.mxu2 %v4029_v32 }
 0x177   : > { %1142 = vmatmul.f32.gmra.mxu3 %v4029_v32 }
 0x178   : > { %3049 = vperm.xlu1 %4261, %v4201_v2  }
 0x179   : > { %3024 = vperm.xlu0 %4263, %v4196_v47   ;;  %3044 = vperm.xlu2 %4262, %v4200_v19   ;;  %v6224_v47 = vpop.permute.xlu1 %864 }
 0x17b   : > { %950 = vmatmul.f32.gmra.mxu0 %v4030_v20 }
 0x17c   : > { %1015 = vmatmul.f32.gmra.mxu1 %v4030_v20 }
 0x17d   : > { %1080 = vmatmul.f32.gmra.mxu2 %v4030_v20 }
 0x17f   : > { %1145 = vmatmul.f32.gmra.mxu3 %v4030_v20 }
 0x180   : > { %3034 = vperm.xlu1 %4261, %v4198_v21   ;;  %v6230_v21 = vpop.permute.xlu0 %869 }
 0x181   : > { %3009 = vperm.xlu0 %4263, %v4193_v22   ;;  %3029 = vperm.xlu2 %4262, %v4197_v23  }
 0x183   : > { %953 = vmatmul.f32.gmra.mxu0 %v4031_v24 }
 0x184   : > { %1018 = vmatmul.f32.gmra.mxu1 %v4031_v24 }
 0x185   : > { %1083 = vmatmul.f32.gmra.mxu2 %v4031_v24 }
 0x187   : > { %1148 = vmatmul.f32.gmra.mxu3 %v4031_v24 }
 0x188   : > { %v6099_v36 = vpop.f32.mrf.mxu0  ;;  %3019 = vperm.xlu1 %4261, %v4195_v26  }
 0x189   : > { %v6101_v33 = vpop.f32.mrf.mxu1  ;;  %3512 = vperm.xlu0 %4263, %v4238_v27   ;;  %3014 = vperm.xlu2 %4262, %v4194_v28   ;;  %v6240_v27 = vpop.permute.xlu2 %844 }
 0x18a   : > { %8453 = vst [vmem:[#allocation2_spill] sm:$0xff] %v6101_v33  ;;  %v6242_v28 = vpop.permute.xlu1 %849 }
 0x190   : > { %v6112_v38 = vpop.f32.mrf.mxu2  ;;  %v6114_v40 = vpop.f32.mrf.mxu0  ;;  %3004 = vperm.xlu1 %4261, %v4192_v31  }
 0x191   : > { %8454 = vst [vmem:[#allocation3_spill] sm:$0xff] %v6112_v38  ;;  %v6116_v41 = vpop.f32.mrf.mxu1  ;;  %3497 = vperm.xlu0 %4263, %v4235_v35   ;;  %3517 = vperm.xlu2 %4262, %v4239_v37   ;;  %v6244_v31 = vpop.permute.xlu0 %854 }
 0x192   : > { %v6118_v42 = vpop.f32.mrf.mxu3 }
 0x193   : > { %8455 = vst [vmem:[#allocation4_spill] sm:$0xff] %v6118_v42 }
 0x198   : > { %v6129_v10 = vpop.f32.mrf.mxu2  ;;  %v6131_v4 = vpop.f32.mrf.mxu0  ;;  %3507 = vperm.xlu1 %4261, %v4237_v44  }
 0x199   : > { %8456 = vst [vmem:[#allocation5_spill] sm:$0xff] %v6129_v10  ;;  %v6133_v39 = vpop.f32.mrf.mxu1  ;;  %3482 = vperm.xlu0 %4263, %v4232_v45   ;;  %3502 = vperm.xlu2 %4262, %v4236_v46   ;;  %v6254_v46 = vpop.permute.xlu2 %829 }
 0x19a   : > { %v6135_v18 = vpop.f32.mrf.mxu3 }
 0x19b   : > { %8457 = vst [vmem:[#allocation6_spill] sm:$0xff] %v6135_v18 }
 0x1a0   : > { %v6146_v49 = vpop.f32.mrf.mxu2  ;;  %v6148_v29 = vpop.f32.mrf.mxu0  ;;  %3492 = vperm.xlu1 %4261, %v4234_v57  }
 0x1a1   : > { %8458 = vst [vmem:[#allocation7_spill] sm:$0xff] %v6146_v49  ;;  %v6150_v53 = vpop.f32.mrf.mxu1  ;;  %3467 = vperm.xlu0 %4263, %v4229_v5   ;;  %3487 = vperm.xlu2 %4262, %v4233_v56   ;;  %v6256_v57 = vpop.permute.xlu1 %834 }
 0x1a2   : > { %v6152_v48 = vpop.f32.mrf.mxu3  ;;  %v6258_v5 = vpop.permute.xlu0 %839 }
 0x1a3   : > { %8459 = vst [vmem:[#allocation8_spill] sm:$0xff] %v6152_v48 }
 0x1a8   : > { %v6163_v61 = vpop.f32.mrf.mxu2  ;;  %v6165_v62 = vpop.f32.mrf.mxu0  ;;  %3477 = vperm.xlu1 %4261, %v4231_v50  }
 0x1a9   : > { %v6167_v0 = vpop.f32.mrf.mxu1  ;;  %3452 = vperm.xlu0 %4263, %v4226_v51   ;;  %3472 = vperm.xlu2 %4262, %v4230_v52  }
 0x1aa   : > { %v6169_v54 = vpop.f32.mrf.mxu3  ;;  %v6282_v18 = vpop.permute.xlu0 %824 }
 0x1ab   : > { %8460 = vst [vmem:[#allocation9_spill] sm:$0xff] %v6169_v54  ;;  %v916_v49 = vadd.f32 %v6131_v4, %v6282_v18  ;;  %v984_v54 = vadd.f32 %v6150_v53, %v6254_v46  ;;  %v987_v4 = vadd.f32 %v6167_v0, %v6256_v57 }
 0x1ac   : > { %8462 = vst [vmem:[#allocation11_spill] sm:$0xff] %v6282_v18 }
 0x1b0   : > { %v6180_v58 = vpop.f32.mrf.mxu2  ;;  %v6182_v60 = vpop.f32.mrf.mxu0  ;;  %3462 = vperm.xlu1 %4261, %v4228_v1  }
 0x1b1   : > { %v6184_v55 = vpop.f32.mrf.mxu1  ;;  %3930 = vperm.xlu0 %4263, %v4241_v3   ;;  %3457 = vperm.xlu2 %4262, %v4227_v7   ;;  %v6268_v1 = vpop.permute.xlu2 %814 }
 0x1b2   : > { %v6186_v6 = vpop.f32.mrf.mxu3  ;;  %v6270_v3 = vpop.permute.xlu1 %819  ;;  %v910_v7 = vadd.f32 %v6099_v36, %v6268_v1  ;;  %v981_v36 = vadd.f32 %v6133_v39, %v6282_v18 }
 0x1b3   : > { %8461 = vst [vmem:[#allocation10_spill] sm:$0xff] %v6270_v3  ;;  %v913_v42 = vadd.f32 %v6114_v40, %v6270_v3  ;;  %v978_v10 = vadd.f32 %v6116_v41, %v6270_v3  ;;  %v919_v40 = vadd.f32 %v6148_v29, %v6254_v46  ;;  %v922_v41 = vadd.f32 %v6165_v62, %v6256_v57 }
 0x1b4   : > { %4394 = vtanh.f32 %v910_v7 }
 0x1b5   : > { %4396 = vtanh.f32 %v913_v42  ;;  %v925_v42 = vadd.f32 %v6182_v60, %v6258_v5 }
 0x1b6   : > { %4398 = vtanh.f32 %v978_v10 }
 0x1b7   : > { %4400 = vtanh.f32 %v916_v49  ;;  %v990_v49 = vadd.f32 %v6184_v55, %v6258_v5 }
 0x1b8   : > { %v6198_v12 = vpop.f32.mrf.mxu2  ;;  %v6200_v59 = vpop.f32.mrf.mxu0  ;;  %3447 = vperm.xlu1 %4261, %v4225_v11   ;;  %4402 = vtanh.f32 %v981_v36 }
 0x1b9   : > { %v6202_v25 = vpop.f32.mrf.mxu1  ;;  %3442 = vperm.xlu2 %4262, %v4224_v30   ;;  %4404 = vtanh.f32 %v919_v40  ;;  %v928_v62 = vadd.f32 %v6200_v59, %v6240_v27 }
 0x1ba   : > { %v6204_v63 = vpop.f32.mrf.mxu3  ;;  %v6308_v39 = vpop.eup %4394  ;;  %4406 = vtanh.f32 %v984_v54  ;;  %v993_v60 = vadd.f32 %v6202_v25, %v6240_v27 }
 0x1bb   : > { %8463 = vst [vmem:[#allocation12_spill] sm:$0xff] %v6308_v39  ;;  %v6314_v53 = vpop.eup %4396  ;;  %4408 = vtanh.f32 %v922_v41 }
 0x1bc   : > { %8464 = vst [vmem:[#allocation13_spill] sm:$0xff] %v6314_v53  ;;  %v6318_v0 = vpop.eup %4398  ;;  %4410 = vtanh.f32 %v987_v4 }
 0x1bd   : > { %8465 = vst [vmem:[#allocation14_spill] sm:$0xff] %v6318_v0  ;;  %v6322_v36 = vpop.eup %4400  ;;  %4412 = vtanh.f32 %v925_v42 }
 0x1be   : > { %8466 = vst [vmem:[#allocation15_spill] sm:$0xff] %v6322_v36  ;;  %v6326_v55 = vpop.eup %4402  ;;  %4414 = vtanh.f32 %v990_v49 }
 0x1bf   : > { %8467 = vst [vmem:[#allocation16_spill] sm:$0xff] %v6326_v55  ;;  %v6330_v41 = vpop.eup %4404  ;;  %4416 = vtanh.f32 %v928_v62 }
 0x1c0   : > { %v6210_v16 = vpop.f32.mrf.mxu2  ;;  %v6212_v17 = vpop.f32.mrf.mxu0  ;;  %8468 = vst [vmem:[#allocation17_spill] sm:$0xff] %v6330_v41  ;;  %4418 = vtanh.f32 %v993_v60 }
 0x1c1   : > { %v6214_v43 = vpop.f32.mrf.mxu1  ;;  %v931_v54 = vadd.f32 %v6212_v17, %v6242_v28  ;;  %v6334_v4 = vpop.eup %4406 }
 0x1c2   : > { %v6216_v9 = vpop.f32.mrf.mxu3  ;;  %v996_v40 = vadd.f32 %v6214_v43, %v6242_v28  ;;  %8469 = vst [vmem:[#allocation18_spill] sm:$0xff] %v6334_v4  ;;  %v6338_v39 = vpop.eup %4408 }
 0x1c3   : > { %8470 = vst [vmem:[#allocation19_spill] sm:$0xff] %v6338_v39  ;;  %4420 = vtanh.f32 %v931_v54  ;;  %v6342_v0 = vpop.eup %4410 }
 0x1c4   : > { %8471 = vst [vmem:[#allocation20_spill] sm:$0xff] %v6342_v0  ;;  %4422 = vtanh.f32 %v996_v40  ;;  %v6348_v60 = vpop.eup %4412 }
 0x1c5   : > { %v6352_v53 = vpop.eup %4414 }
 0x1c6   : > { %8472 = vst [vmem:[#allocation21_spill] sm:$0xff] %v6352_v53  ;;  %v6356_v54 = vpop.eup %4416 }
 0x1c7   : > { %v6360_v40 = vpop.eup %4418 }
 0x1c8   : > { %v6220_v32 = vpop.f32.mrf.mxu2  ;;  %v6222_v2 = vpop.f32.mrf.mxu0 }
 0x1c9   : > { %v6226_v19 = vpop.f32.mrf.mxu1  ;;  %v934_v59 = vadd.f32 %v6222_v2, %v6244_v31  ;;  %v6364_v55 = vpop.eup %4420 }
 0x1ca   : > { %v6228_v20 = vpop.f32.mrf.mxu3  ;;  %v999_v25 = vadd.f32 %v6226_v19, %v6244_v31 }
 0x1cb   : > { %4424 = vtanh.f32 %v934_v59 }
 0x1cc   : > { %4426 = vtanh.f32 %v999_v25  ;;  %v6368_v25 = vpop.eup %4422 }
 0x1d0   : > { %v6232_v22 = vpop.f32.mrf.mxu2  ;;  %v6234_v23 = vpop.f32.mrf.mxu0 }
 0x1d1   : > { %v6236_v24 = vpop.f32.mrf.mxu1  ;;  %v937_v43 = vadd.f32 %v6234_v23, %v6218_v15  ;;  %v6370_v36 = vpop.eup %4424 }
 0x1d2   : > { %v6238_v26 = vpop.f32.mrf.mxu3  ;;  %v1002_v2 = vadd.f32 %v6236_v24, %v6218_v15 }
 0x1d3   : > { %4428 = vtanh.f32 %v937_v43 }
 0x1d4   : > { %4430 = vtanh.f32 %v1002_v2 }
 0x1d8   : > { %v6246_v35 = vpop.f32.mrf.mxu2  ;;  %v6248_v37 = vpop.f32.mrf.mxu0 }
 0x1d9   : > { %v6250_v44 = vpop.f32.mrf.mxu1  ;;  %v940_v19 = vadd.f32 %v6248_v37, %v6224_v47 }
 0x1da   : > { %v6252_v45 = vpop.f32.mrf.mxu3  ;;  %v1005_v23 = vadd.f32 %v6250_v44, %v6224_v47 }
 0x1db   : > { %4432 = vtanh.f32 %v940_v19 }
 0x1dc   : > { %4434 = vtanh.f32 %v1005_v23 }
 0x1e0   : > { %v6260_v56 = vpop.f32.mrf.mxu2  ;;  %v6262_v50 = vpop.f32.mrf.mxu0 }
 0x1e1   : > { %v6264_v51 = vpop.f32.mrf.mxu1  ;;  %v943_v24 = vadd.f32 %v6262_v50, %v6230_v21 }
 0x1e2   : > { %v6266_v52 = vpop.f32.mrf.mxu3  ;;  %v1008_v59 = vadd.f32 %v6264_v51, %v6230_v21  ;;  %v6374_v51 = vpop.eup %4426 }
 0x1e3   : > { %4436 = vtanh.f32 %v943_v24 }
 0x1e4   : > { %4438 = vtanh.f32 %v1008_v59 }
 0x1e8   : > { %v6274_v11 = vpop.f32.mrf.mxu2  ;;  %v6276_v30 = vpop.f32.mrf.mxu0 }
 0x1e9   : > { %v6280_v38 = vpop.f32.mrf.mxu1  ;;  %v946_v37 = vadd.f32 %v6276_v30, %v6206_v13  ;;  %v6377_v30 = vpop.eup %4428 }
 0x1ea   : > { %v6286_v48 = vpop.f32.mrf.mxu3  ;;  %v6381_v0 = vpop.eup %4430 }
 0x1eb   : > { %4440 = vtanh.f32 %v946_v37 }
 0x1f0   : > { %v6300_v7 = vpop.f32.mrf.mxu2  ;;  %v6302_v3 = vpop.f32.mrf.mxu0 }
 0x1f1   : > { %v6306_v10 = vpop.f32.mrf.mxu1  ;;  %v949_v23 = vadd.f32 %v6302_v3, %v6208_v14 }
 0x1f2   : > { %v6312_v29 = vpop.f32.mrf.mxu3 }
 0x1f8   : > { %v1078_v42 = vpop.f32.mrf.mxu2  ;;  %v951_v17 = vpop.f32.mrf.mxu0 }
 0x1f9   : > { %v1016_v49 = vpop.f32.mrf.mxu1  ;;  %v952_v50 = vadd.f32 %v951_v17, %v6188_v34  ;;  %v6384_v17 = vpop.eup %4432 }
 0x1fa   : > { %v6346_v62 = vpop.f32.mrf.mxu3  ;;  %v1017_v24 = vadd.f32 %v1016_v49, %v6188_v34  ;;  %v6388_v59 = vpop.eup %4434 }
 0x1fb   : > { %v4437_v37 = vpop.eup %4436 }
 0x1fc   : > { %v4439_v3 = vpop.eup %4438 }
 0x200   : > { %v1081_v44 = vpop.f32.mrf.mxu2  ;;  %v954_v43 = vpop.f32.mrf.mxu0 }
 0x201   : > { %v955_v2 = vadd.f32 %v954_v43, %v6190_v8  ;;  %v1019_v4 = vpop.f32.mrf.mxu1  ;;  %v1011_v43 = vadd.f32 %v6280_v38, %v6206_v13  ;;  %v1082_v18 = vadd.f32 %v1081_v44, %v6188_v34  ;;  %v1079_v38 = vadd.f32 %v1078_v42, %v6208_v14 }
 0x202   : > { %v1146_v19 = vpop.f32.mrf.mxu3  ;;  %v1020_v41 = vadd.f32 %v1019_v4, %v6190_v8  ;;  %v1014_v4 = vadd.f32 %v6306_v10, %v6208_v14  ;;  %v1076_v44 = vadd.f32 %v6300_v7, %v6206_v13  ;;  %v1070_v7 = vadd.f32 %v6260_v56, %v6224_v47 }
 0x203   : > { %4442 = vtanh.f32 %v955_v2  ;;  %v4441_v2 = vpop.eup %4440  ;;  %v1147_v10 = vadd.f32 %v1146_v19, %v6188_v34  ;;  %v1073_v34 = vadd.f32 %v6274_v11, %v6230_v21  ;;  %v1126_v19 = vadd.f32 %v6228_v20, %v6242_v28 }
 0x204   : > { %4444 = vtanh.f32 %v952_v50 }
 0x205   : > { %4446 = vtanh.f32 %v1020_v41 }
 0x206   : > { %4448 = vtanh.f32 %v949_v23 }
 0x207   : > { %4450 = vtanh.f32 %v1017_v24 }
 0x208   : > { %v1084_v49 = vpop.f32.mrf.mxu2  ;;  %4452 = vtanh.f32 %v1011_v43  ;;  %v1144_v43 = vadd.f32 %v6346_v62, %v6208_v14 }
 0x209   : > { %v1085_v39 = vadd.f32 %v1084_v49, %v6190_v8  ;;  %v4443_v53 = vpop.eup %4442  ;;  %4454 = vtanh.f32 %v1014_v4  ;;  %v8479_v4 = vld [vmem:[#allocation8_spill] sm:$0xff] }
 0x20a   : > { %v1149_v50 = vpop.f32.mrf.mxu3  ;;  %v4445_v33 = vpop.eup %4444  ;;  %1330 = vmatpush.msrb.mxu0 %v4443_v53  ;;  %v1067_v53 = vadd.f32 %v6246_v35, %v6218_v15  ;;  %v1132_v35 = vadd.f32 %v6252_v45, %v6218_v15  ;;  %v1058_v45 = vadd.f32 %v6210_v16, %v6240_v27 }
 0x20b   : > { %4456 = vtanh.f32 %v1085_v39  ;;  %v1150_v41 = vadd.f32 %v1149_v50, %v6190_v8  ;;  %v4447_v23 = vpop.eup %4446  ;;  %v1141_v8 = vadd.f32 %v6312_v29, %v6206_v13  ;;  %v1135_v29 = vadd.f32 %v6266_v52, %v6224_v47 }
 0x20c   : > { %4458 = vtanh.f32 %v1082_v18  ;;  %v4449_v24 = vpop.eup %4448  ;;  %1395 = vmatpush.msrb.mxu1 %v4447_v23  ;;  %1331 = vmatpush.msrb.mxu0 %v4445_v33  ;;  %v1138_v33 = vadd.f32 %v6286_v48, %v6230_v21  ;;  %v1064_v48 = vadd.f32 %v6232_v22, %v6244_v31  ;;  %v1061_v47 = vadd.f32 %v6220_v32, %v6242_v28 }
 0x20d   : > { %4460 = vtanh.f32 %v1150_v41  ;;  %v4451_v42 = vpop.eup %4450  ;;  %v1129_v22 = vadd.f32 %v6238_v26, %v6244_v31  ;;  %v1055_v31 = vadd.f32 %v6198_v12, %v6258_v5  ;;  %v1052_v28 = vadd.f32 %v6180_v58, %v6256_v57  ;;  %v8484_v41 = vld [vmem:[#allocation6_spill] sm:$0xff] }
 0x20e   : > { %4462 = vtanh.f32 %v1079_v38  ;;  %v4453_v39 = vpop.eup %4452  ;;  %1396 = vmatpush.msrb.mxu1 %v4451_v42  ;;  %1332 = vmatpush.msrb.mxu0 %v4449_v24  ;;  %v8483_v38 = vld [vmem:[#allocation5_spill] sm:$0xff]  ;;  %v8486_v24 = vld [vmem:[#allocation15_spill] sm:$0xff] }
 0x20f   : > { %4464 = vtanh.f32 %v1147_v10  ;;  %v4455_v18 = vpop.eup %4454  ;;  %v8487_v42 = vld [vmem:[#allocation3_spill] sm:$0xff] }
 0x210   : > { %4466 = vtanh.f32 %v1076_v44  ;;  %1397 = vmatpush.msrb.mxu1 %v4455_v18  ;;  %1333 = vmatpush.msrb.mxu0 %v4441_v2  ;;  %v8482_v2 = vld [vmem:[#allocation10_spill] sm:$0xff] }
 0x211   : > { %v4457_v14 = vpop.eup %4456  ;;  %4468 = vtanh.f32 %v1144_v43  ;;  %v1043_v50 = vadd.f32 %v8483_v38, %v8482_v2  ;;  %v1108_v23 = vadd.f32 %v8484_v41, %v8482_v2  ;;  %v8485_v44 = vld [vmem:[#allocation18_spill] sm:$0xff] }
 0x212   : > { %v4459_v11 = vpop.eup %4458  ;;  %4470 = vtanh.f32 %v1073_v34  ;;  %1460 = vmatpush.msrb.mxu2 %v4457_v14  ;;  %1398 = vmatpush.msrb.mxu1 %v4453_v39  ;;  %v1040_v34 = vadd.f32 %v8487_v42, %v6268_v1  ;;  %v8490_v14 = vld [vmem:[#allocation13_spill] sm:$0xff] }
 0x213   : > { %v4461_v13 = vpop.eup %4460  ;;  %4472 = vtanh.f32 %v1141_v8  ;;  %1334 = vmatpush.msrb.mxu0 %v4437_v37  ;;  %v8488_v8 = vld [vmem:[#allocation4_spill] sm:$0xff] }
 0x214   : > { %v4463_v56 = vpop.eup %4462  ;;  %4474 = vtanh.f32 %v1070_v7  ;;  %1525 = vmatpush.msrb.mxu3 %v4461_v13  ;;  %1461 = vmatpush.msrb.mxu2 %v4459_v11  ;;  %v1105_v18 = vadd.f32 %v8488_v8, %v6268_v1  ;;  %v8489_v7 = vld [vmem:[#allocation16_spill] sm:$0xff]  ;;  %v4048_v11 = vld [vmem:[%s8425_s0 + $0x100] sm:$0xff] }
 0x215   : > { %v4465_v21 = vpop.eup %4464  ;;  %4476 = vtanh.f32 %v1138_v33  ;;  %1399 = vmatpush.msrb.mxu1 %v4439_v3  ;;  %1335 = vmatpush.msrb.mxu0 %v6384_v17  ;;  %v8478_v17 = vld [vmem:[#allocation7_spill] sm:$0xff]  ;;  %v8480_v3 = vld [vmem:[#allocation20_spill] sm:$0xff]  ;;  %v8491_v13 = vld [vmem:[#allocation14_spill] sm:$0xff] }
 0x216   : > { %v4467_v62 = vpop.eup %4466  ;;  %4478 = vtanh.f32 %v1067_v53  ;;  %1526 = vmatpush.msrb.mxu3 %v4465_v21  ;;  %1462 = vmatpush.msrb.mxu2 %v4463_v56 }
 0x217   : > { %v4469_v52 = vpop.eup %4468  ;;  %4480 = vtanh.f32 %v1135_v29  ;;  %1400 = vmatpush.msrb.mxu1 %v6388_v59  ;;  %1336 = vmatpush.msrb.mxu0 %v6377_v30  ;;  %v1123_v30 = vadd.f32 %v6216_v9, %v6240_v27  ;;  %v1049_v27 = vadd.f32 %v6163_v61, %v6254_v46  ;;  %v8492_v29 = vld [vmem:[#allocation12_spill] sm:$0xff] }
 0x218   : > { %v4471_v15 = vpop.eup %4470  ;;  %4482 = vtanh.f32 %v1064_v48  ;;  %1527 = vmatpush.msrb.mxu3 %v4469_v52  ;;  %1463 = vmatpush.msrb.mxu2 %v4467_v62  ;;  %v4049_v52 = vld [vmem:[%s8425_s0 + $0x108] sm:$0xff] }
 0x219   : > { %v4473_v32 = vpop.eup %4472  ;;  %4484 = vtanh.f32 %v1132_v35  ;;  %1401 = vmatpush.msrb.mxu1 %v6381_v0  ;;  %1337 = vmatpush.msrb.mxu0 %v6370_v36  ;;  %v1120_v0 = vadd.f32 %v6204_v63, %v6258_v5  ;;  %v1117_v36 = vadd.f32 %v6186_v6, %v6256_v57  ;;  %v8473_v5 = vld [vmem:[#allocation2_spill] sm:$0xff]  ;;  %v8476_v6 = vld [vmem:[#allocation19_spill] sm:$0xff] }
 0x21a   : > { %v4475_v26 = vpop.eup %4474  ;;  %4486 = vtanh.f32 %v1061_v47  ;;  %1528 = vmatpush.msrb.mxu3 %v4473_v32  ;;  %1464 = vmatpush.msrb.mxu2 %v4471_v15  ;;  %v4050_v15 = vld [vmem:[%s8425_s0 + $0x110] sm:$0xff]  ;;  %v4052_v32 = vld [vmem:[%s8425_s0 + $0x120] sm:$0xff] }
 0x21b   : > { %v4477_v16 = vpop.eup %4476  ;;  %4488 = vtanh.f32 %v1129_v22  ;;  %1402 = vmatpush.msrb.mxu1 %v6374_v51  ;;  %1338 = vmatpush.msrb.mxu0 %v6364_v55  ;;  %v975_v55 = vadd.f32 %v8473_v5, %v6268_v1  ;;  %v8475_v51 = vld [vmem:[#allocation21_spill] sm:$0xff] }
 0x21c   : > { %v4479_v20 = vpop.eup %4478  ;;  %4490 = vtanh.f32 %v1058_v45  ;;  %1529 = vmatpush.msrb.mxu3 %v4477_v16  ;;  %1465 = vmatpush.msrb.mxu2 %v4475_v26  ;;  %v4051_v45 = vld [vmem:[%s8425_s0 + $0x118] sm:$0xff]  ;;  %v4054_v26 = vld [vmem:[%s8425_s0 + $0x130] sm:$0xff]  ;;  %v4056_v16 = vld [vmem:[%s8425_s0 + $0x140] sm:$0xff] }
 0x21d   : > { %v4481_v12 = vpop.eup %4480  ;;  %4492 = vtanh.f32 %v1126_v19  ;;  %1403 = vmatpush.msrb.mxu1 %v6368_v25  ;;  %1339 = vmatpush.msrb.mxu0 %v6356_v54  ;;  %v8474_v54 = vld [vmem:[#allocation9_spill] sm:$0xff]  ;;  %v4053_v19 = vld [vmem:[%s8425_s0 + $0x128] sm:$0xff] }
 0x21e   : > { %v4483_v9 = vpop.eup %4482  ;;  %4494 = vtanh.f32 %v1055_v31  ;;  %1530 = vmatpush.msrb.mxu3 %v4481_v12  ;;  %1466 = vmatpush.msrb.mxu2 %v4479_v20  ;;  %v1114_v25 = vadd.f32 %v8474_v54, %v6254_v46  ;;  %v8481_v46 = vld [vmem:[#allocation17_spill] sm:$0xff]  ;;  %v4058_v20 = vld [vmem:[%s8425_s0 + $0x150] sm:$0xff]  ;;  %v4060_v12 = vld [vmem:[%s8425_s0 + $0x160] sm:$0xff] }
 0x21f   : > { %v4485_v58 = vpop.eup %4484  ;;  %4496 = vtanh.f32 %v1123_v30  ;;  %1404 = vmatpush.msrb.mxu1 %v6360_v40  ;;  %1340 = vmatpush.msrb.mxu0 %v6348_v60  ;;  %v8477_v40 = vld [vmem:[#allocation11_spill] sm:$0xff]  ;;  %v4055_v31 = vld [vmem:[%s8425_s0 + $0x138] sm:$0xff] }
 0x220   : > { %v4487_v63 = vpop.eup %4486  ;;  %4498 = vtanh.f32 %v1052_v28  ;;  %1531 = vmatpush.msrb.mxu3 %v4485_v58  ;;  %1467 = vmatpush.msrb.mxu2 %v4483_v9  ;;  %v1046_v60 = vadd.f32 %v8478_v17, %v8477_v40  ;;  %v1111_v37 = vadd.f32 %v8479_v4, %v8477_v40  ;;  %v4057_v30 = vld [vmem:[%s8425_s0 + $0x148] sm:$0xff]  ;;  %v4059_v28 = vld [vmem:[%s8425_s0 + $0x158] sm:$0xff]  ;;  %v4062_v9 = vld [vmem:[%s8425_s0 + $0x170] sm:$0xff] }
 0x221   : > { %v4489_v61 = vpop.eup %4488  ;;  %4500 = vtanh.f32 %v1120_v0  ;;  %1405 = vmatpush.msrb.mxu1 %v8475_v51  ;;  %1341 = vmatpush.msrb.mxu0 %v8476_v6  ;;  %v4061_v0 = vld [vmem:[%s8425_s0 + $0x168] sm:$0xff] }
 0x222   : > { %v4491_v57 = vpop.eup %4490  ;;  %4502 = vtanh.f32 %v1049_v27  ;;  %1532 = vmatpush.msrb.mxu3 %v4489_v61  ;;  %1468 = vmatpush.msrb.mxu2 %v4487_v63  ;;  %v4063_v27 = vld [vmem:[%s8425_s0 + $0x178] sm:$0xff] }
 0x223   : > { %v4493_v59 = vpop.eup %4492  ;;  %4504 = vtanh.f32 %v1117_v36  ;;  %1406 = vmatpush.msrb.mxu1 %v8480_v3  ;;  %1342 = vmatpush.msrb.mxu0 %v8481_v46 }
 0x224   : > { %v4495_v49 = vpop.eup %4494  ;;  %4506 = vtanh.f32 %v975_v55  ;;  %1533 = vmatpush.msrb.mxu3 %v4493_v59  ;;  %1469 = vmatpush.msrb.mxu2 %v4491_v57 }
 0x225   : > { %v4497_v10 = vpop.eup %4496  ;;  %4508 = vtanh.f32 %v1114_v25  ;;  %1407 = vmatpush.msrb.mxu1 %v8485_v44  ;;  %1343 = vmatpush.msrb.mxu0 %v8486_v24 }
 0x226   : > { %v4499_v43 = vpop.eup %4498  ;;  %4510 = vtanh.f32 %v1046_v60  ;;  %1534 = vmatpush.msrb.mxu3 %v4497_v10  ;;  %1470 = vmatpush.msrb.mxu2 %v4495_v49  ;;  %v6568_v10 = vpop.permute.xlu0 %1327 }
 0x227   : > { %v4501_v39 = vpop.eup %4500  ;;  %4512 = vtanh.f32 %v1111_v37  ;;  %1408 = vmatpush.msrb.mxu1 %v8489_v7  ;;  %1344 = vmatpush.msrb.mxu0 %v8490_v14 }
 0x228   : > { %v4503_v33 = vpop.eup %4502  ;;  %4514 = vtanh.f32 %v1043_v50  ;;  %1535 = vmatpush.msrb.mxu3 %v4501_v39  ;;  %1471 = vmatpush.msrb.mxu2 %v4499_v43 }
 0x229   : > { %v4505_v53 = vpop.eup %4504  ;;  %4516 = vtanh.f32 %v1108_v23  ;;  %1409 = vmatpush.msrb.mxu1 %v8491_v13  ;;  %1345 = vmatpush.msrb.mxu0 %v8492_v29 }
 0x22a   : > { %v4507_v1 = vpop.eup %4506  ;;  %4518 = vtanh.f32 %v1040_v34  ;;  %1536 = vmatpush.msrb.mxu3 %v4505_v53  ;;  %1472 = vmatpush.msrb.mxu2 %v4503_v33  ;;  %v6582_v34 = vpop.permute.xlu2 %1317 }
 0x22b   : > { %v4509_v56 = vpop.eup %4508  ;;  %4520 = vtanh.f32 %v1105_v18  ;;  %1410 = vmatpush.msrb.mxu1 %v4507_v1  ;;  %1346 = vmatmul.f32.vlgmr.msrb.gmra.mxu0 %v4048_v11  ;;  %v6588_v18 = vpop.permute.xlu1 %1322 }
 0x22c   : > { %v4511_v48 = vpop.eup %4510  ;;  %1537 = vmatpush.msrb.mxu3 %v4509_v56  ;;  %1411 = vmatmul.f32.vlgmr.msrb.gmra.mxu1 %v4048_v11 }
 0x22d   : > { %v4513_v21 = vpop.eup %4512  ;;  %1473 = vmatpush.msrb.mxu2 %v4511_v48 }
 0x22e   : > { %v4515_v35 = vpop.eup %4514  ;;  %1538 = vmatpush.msrb.mxu3 %v4513_v21  ;;  %v6580_v42 = vpop.permute.xlu0 %1312 }
 0x22f   : > { %v4517_v62 = vpop.eup %4516  ;;  %1474 = vmatpush.msrb.mxu2 %v4515_v35 }
 0x230   : > { %v4519_v47 = vpop.eup %4518  ;;  %1539 = vmatpush.msrb.mxu3 %v4517_v62 }
 0x231   : > { %v4521_v22 = vpop.eup %4520  ;;  %1475 = vmatpush.msrb.mxu2 %v4519_v47 }
 0x232   : > { %1540 = vmatpush.msrb.mxu3 %v4521_v22  ;;  %1476 = vmatmul.f32.vlgmr.msrb.gmra.mxu2 %v4048_v11  ;;  %v6600_v13 = vpop.permute.xlu2 %1302 }
 0x233   : > { %1541 = vmatmul.f32.vlgmr.msrb.gmra.mxu3 %v4048_v11  ;;  %1349 = vmatmul.f32.gmra.mxu0 %v4049_v52  ;;  %v6604_v1 = vpop.permute.xlu1 %1307 }
 0x234   : > { %1414 = vmatmul.f32.gmra.mxu1 %v4049_v52 }
 0x236   : > { %v6594_v33 = vpop.permute.xlu0 %1297 }
 0x23a   : > { %1479 = vmatmul.f32.gmra.mxu2 %v4049_v52  ;;  %v6616_v47 = vpop.permute.xlu2 %1287 }
 0x23b   : > { %1544 = vmatmul.f32.gmra.mxu3 %v4049_v52  ;;  %1352 = vmatmul.f32.gmra.mxu0 %v4050_v15  ;;  %v6620_v22 = vpop.permute.xlu1 %1292 }
 0x23c   : > { %1417 = vmatmul.f32.gmra.mxu1 %v4050_v15 }
 0x23e   : > { %v6612_v35 = vpop.permute.xlu0 %1282 }
 0x242   : > { %1482 = vmatmul.f32.gmra.mxu2 %v4050_v15 }
 0x243   : > { %1547 = vmatmul.f32.gmra.mxu3 %v4050_v15  ;;  %1355 = vmatmul.f32.gmra.mxu0 %v4051_v45 }
 0x244   : > { %1420 = vmatmul.f32.gmra.mxu1 %v4051_v45 }
 0x24a   : > { %1485 = vmatmul.f32.gmra.mxu2 %v4051_v45 }
 0x24b   : > { %1550 = vmatmul.f32.gmra.mxu3 %v4051_v45  ;;  %1358 = vmatmul.f32.gmra.mxu0 %v4052_v32 }
 0x24c   : > { %1423 = vmatmul.f32.gmra.mxu1 %v4052_v32 }
 0x252   : > { %1488 = vmatmul.f32.gmra.mxu2 %v4052_v32 }
 0x253   : > { %1553 = vmatmul.f32.gmra.mxu3 %v4052_v32  ;;  %1361 = vmatmul.f32.gmra.mxu0 %v4053_v19 }
 0x254   : > { %1426 = vmatmul.f32.gmra.mxu1 %v4053_v19 }
 0x25a   : > { %1491 = vmatmul.f32.gmra.mxu2 %v4053_v19 }
 0x25b   : > { %1556 = vmatmul.f32.gmra.mxu3 %v4053_v19  ;;  %1364 = vmatmul.f32.gmra.mxu0 %v4054_v26  ;;  %v6628_v19 = vpop.permute.xlu0 %1267 }
 0x25c   : > { %1429 = vmatmul.f32.gmra.mxu1 %v4054_v26 }
 0x262   : > { %1494 = vmatmul.f32.gmra.mxu2 %v4054_v26 }
 0x263   : > { %1559 = vmatmul.f32.gmra.mxu3 %v4054_v26  ;;  %1367 = vmatmul.f32.gmra.mxu0 %v4055_v31 }
 0x264   : > { %1432 = vmatmul.f32.gmra.mxu1 %v4055_v31 }
 0x26a   : > { %1497 = vmatmul.f32.gmra.mxu2 %v4055_v31 }
 0x26b   : > { %1562 = vmatmul.f32.gmra.mxu3 %v4055_v31  ;;  %1370 = vmatmul.f32.gmra.mxu0 %v4056_v16  ;;  %v6632_v31 = vpop.permute.xlu2 %1272 }
 0x26c   : > { %1435 = vmatmul.f32.gmra.mxu1 %v4056_v16 }
 0x272   : > { %1500 = vmatmul.f32.gmra.mxu2 %v4056_v16 }
 0x273   : > { %1565 = vmatmul.f32.gmra.mxu3 %v4056_v16  ;;  %1373 = vmatmul.f32.gmra.mxu0 %v4057_v30  ;;  %v6634_v16 = vpop.permute.xlu1 %1277 }
 0x274   : > { %1438 = vmatmul.f32.gmra.mxu1 %v4057_v30 }
 0x27a   : > { %1503 = vmatmul.f32.gmra.mxu2 %v4057_v30 }
 0x27b   : > { %1568 = vmatmul.f32.gmra.mxu3 %v4057_v30  ;;  %1376 = vmatmul.f32.gmra.mxu0 %v4058_v20 }
 0x27c   : > { %1441 = vmatmul.f32.gmra.mxu1 %v4058_v20 }
 0x282   : > { %1506 = vmatmul.f32.gmra.mxu2 %v4058_v20 }
 0x283   : > { %1571 = vmatmul.f32.gmra.mxu3 %v4058_v20  ;;  %1379 = vmatmul.f32.gmra.mxu0 %v4059_v28 }
 0x284   : > { %1444 = vmatmul.f32.gmra.mxu1 %v4059_v28 }
 0x28a   : > { %1509 = vmatmul.f32.gmra.mxu2 %v4059_v28 }
 0x28b   : > { %1574 = vmatmul.f32.gmra.mxu3 %v4059_v28  ;;  %1382 = vmatmul.f32.gmra.mxu0 %v4060_v12 }
 0x28c   : > { %1447 = vmatmul.f32.gmra.mxu1 %v4060_v12 }
 0x292   : > { %1512 = vmatmul.f32.gmra.mxu2 %v4060_v12 }
 0x293   : > { %1577 = vmatmul.f32.gmra.mxu3 %v4060_v12  ;;  %1385 = vmatmul.f32.gmra.mxu0 %v4061_v0 }
 0x294   : > { %1450 = vmatmul.f32.gmra.mxu1 %v4061_v0 }
 0x29a   : > { %1515 = vmatmul.f32.gmra.mxu2 %v4061_v0 }
 0x29b   : > { %1580 = vmatmul.f32.gmra.mxu3 %v4061_v0  ;;  %1388 = vmatmul.f32.gmra.mxu0 %v4062_v9  ;;  %v6644_v0 = vpop.permute.xlu0 %1252 }
 0x29c   : > { %1453 = vmatmul.f32.gmra.mxu1 %v4062_v9  ;;  %8501 = vst [vmem:[#allocation17_spill] sm:$0xff] %v6644_v0 }
 0x2a2   : > { %1518 = vmatmul.f32.gmra.mxu2 %v4062_v9 }
 0x2a3   : > { %1583 = vmatmul.f32.gmra.mxu3 %v4062_v9  ;;  %1391 = vmatmul.f32.gmra.mxu0 %v4063_v27 }
 0x2a4   : > { %1456 = vmatmul.f32.gmra.mxu1 %v4063_v27 }
 0x2a8   : > { %v6522_v58 = vpop.f32.mrf.mxu0 }
 0x2a9   : > { %v6524_v36 = vpop.f32.mrf.mxu1  ;;  %v1348_v9 = vadd.f32 %v6522_v58, %v6644_v0 }
 0x2aa   : > { %1521 = vmatmul.f32.gmra.mxu2 %v4063_v27 }
 0x2ab   : > { %1586 = vmatmul.f32.gmra.mxu3 %v4063_v27  ;;  %v6648_v27 = vpop.permute.xlu2 %1257  ;;  %4522 = vtanh.f32 %v1348_v9 }
 0x2ac   : > { %8502 = vst [vmem:[#allocation10_spill] sm:$0xff] %v6648_v27 }
 0x2b0   : > { %v6526_v63 = vpop.f32.mrf.mxu0 }
 0x2b1   : > { %v6528_v5 = vpop.f32.mrf.mxu1 }
 0x2b5   : > { %v6530_v55 = vpop.f32.mrf.mxu2 }
 0x2b6   : > { %8493 = vst [vmem:[#allocation2_spill] sm:$0xff] %v6530_v55  ;;  %v6532_v61 = vpop.f32.mrf.mxu3 }
 0x2b7   : > { %8494 = vst [vmem:[#allocation9_spill] sm:$0xff] %v6532_v61  ;;  %v1413_v61 = vadd.f32 %v6524_v36, %v6644_v0 }
 0x2b8   : > { %v6534_v54 = vpop.f32.mrf.mxu0 }
 0x2b9   : > { %v6536_v25 = vpop.f32.mrf.mxu1  ;;  %4524 = vtanh.f32 %v1413_v61 }
 0x2bd   : > { %v6538_v51 = vpop.f32.mrf.mxu2 }
 0x2be   : > { %8495 = vst [vmem:[#allocation21_spill] sm:$0xff] %v6538_v51  ;;  %v6540_v6 = vpop.f32.mrf.mxu3 }
 0x2bf   : > { %8496 = vst [vmem:[#allocation19_spill] sm:$0xff] %v6540_v6  ;;  %v1351_v6 = vadd.f32 %v6526_v63, %v6648_v27 }
 0x2c0   : > { %v6542_v57 = vpop.f32.mrf.mxu0 }
 0x2c1   : > { %v6544_v40 = vpop.f32.mrf.mxu1  ;;  %4526 = vtanh.f32 %v1351_v6  ;;  %v1357_v63 = vadd.f32 %v6542_v57, %v6628_v19 }
 0x2c5   : > { %v6546_v17 = vpop.f32.mrf.mxu2 }
 0x2c6   : > { %8497 = vst [vmem:[#allocation11_spill] sm:$0xff] %v6546_v17  ;;  %v6548_v60 = vpop.f32.mrf.mxu3  ;;  %v1416_v17 = vadd.f32 %v6528_v5, %v6648_v27 }
 0x2c7   : > { %8498 = vst [vmem:[#allocation7_spill] sm:$0xff] %v6548_v60  ;;  %v6658_v60 = vpop.permute.xlu1 %1262 }
 0x2c8   : > { %v6550_v59 = vpop.f32.mrf.mxu0  ;;  %8503 = vst [vmem:[#allocation5_spill] sm:$0xff] %v6658_v60  ;;  %v1354_v58 = vadd.f32 %v6534_v54, %v6658_v60  ;;  %v1419_v36 = vadd.f32 %v6536_v25, %v6658_v60  ;;  %4528 = vtanh.f32 %v1416_v17  ;;  %v6676_v25 = vpop.eup %4522 }
 0x2c9   : > { %v6552_v4 = vpop.f32.mrf.mxu1  ;;  %v1360_v5 = vadd.f32 %v6550_v59, %v6632_v31  ;;  %8504 = vst [vmem:[#allocation6_spill] sm:$0xff] %v6676_v25  ;;  %v6682_v17 = vpop.eup %4524 }
 0x2ca   : > { %4530 = vtanh.f32 %v1354_v58  ;;  %v1425_v61 = vadd.f32 %v6552_v4, %v6632_v31  ;;  %8505 = vst [vmem:[#allocation18_spill] sm:$0xff] %v6682_v17  ;;  %v6686_v59 = vpop.eup %4526 }
 0x2cb   : > { %4532 = vtanh.f32 %v1419_v36  ;;  %8506 = vst [vmem:[#allocation15_spill] sm:$0xff] %v6686_v59 }
 0x2cc   : > { %4534 = vtanh.f32 %v1357_v63 }
 0x2cd   : > { %v6554_v37 = vpop.f32.mrf.mxu2 }
 0x2ce   : > { %8499 = vst [vmem:[#allocation8_spill] sm:$0xff] %v6554_v37  ;;  %v6556_v3 = vpop.f32.mrf.mxu3  ;;  %v1422_v37 = vadd.f32 %v6544_v40, %v6628_v19  ;;  %v6690_v58 = vpop.eup %4528 }
 0x2cf   : > { %8500 = vst [vmem:[#allocation20_spill] sm:$0xff] %v6556_v3 }
 0x2d0   : > { %v6558_v46 = vpop.f32.mrf.mxu0  ;;  %4536 = vtanh.f32 %v1422_v37  ;;  %8507 = vst [vmem:[#allocation3_spill] sm:$0xff] %v6690_v58  ;;  %v6694_v63 = vpop.eup %4530 }
 0x2d1   : > { %v6560_v49 = vpop.f32.mrf.mxu1  ;;  %v1363_v6 = vadd.f32 %v6558_v46, %v6634_v16  ;;  %4538 = vtanh.f32 %v1360_v5  ;;  %8508 = vst [vmem:[#allocation4_spill] sm:$0xff] %v6694_v63 }
 0x2d2   : > { %v1428_v40 = vadd.f32 %v6560_v49, %v6634_v16  ;;  %4540 = vtanh.f32 %v1425_v61  ;;  %v6698_v49 = vpop.eup %4532 }
 0x2d3   : > { %4542 = vtanh.f32 %v1363_v6  ;;  %8509 = vst [vmem:[#allocation16_spill] sm:$0xff] %v6698_v49  ;;  %v6702_v5 = vpop.eup %4534 }
 0x2d4   : > { %4544 = vtanh.f32 %v1428_v40 }
 0x2d5   : > { %v6562_v2 = vpop.f32.mrf.mxu2 }
 0x2d6   : > { %v6564_v38 = vpop.f32.mrf.mxu3 }
 0x2d8   : > { %v6566_v50 = vpop.f32.mrf.mxu0 }
 0x2d9   : > { %v6570_v41 = vpop.f32.mrf.mxu1  ;;  %v1366_v4 = vadd.f32 %v6566_v50, %v6612_v35 }
 0x2da   : > { %v1431_v46 = vadd.f32 %v6570_v41, %v6612_v35  ;;  %v6706_v41 = vpop.eup %4536 }
 0x2db   : > { %4546 = vtanh.f32 %v1366_v4 }
 0x2dc   : > { %4548 = vtanh.f32 %v1431_v46 }
 0x2dd   : > { %v6572_v23 = vpop.f32.mrf.mxu2 }
 0x2de   : > { %v6574_v44 = vpop.f32.mrf.mxu3 }
 0x2e0   : > { %v6576_v24 = vpop.f32.mrf.mxu0 }
 0x2e1   : > { %v6578_v43 = vpop.f32.mrf.mxu1  ;;  %v1369_v37 = vadd.f32 %v6576_v24, %v6616_v47  ;;  %v6712_v24 = vpop.eup %4538 }
 0x2e2   : > { %v1434_v50 = vadd.f32 %v6578_v43, %v6616_v47  ;;  %v6718_v4 = vpop.eup %4540 }
 0x2e3   : > { %4550 = vtanh.f32 %v1369_v37 }
 0x2e4   : > { %4552 = vtanh.f32 %v1434_v50 }
 0x2e5   : > { %v6584_v39 = vpop.f32.mrf.mxu2 }
 0x2e6   : > { %v6586_v8 = vpop.f32.mrf.mxu3 }
 0x2e8   : > { %v6590_v7 = vpop.f32.mrf.mxu0 }
 0x2e9   : > { %v6592_v14 = vpop.f32.mrf.mxu1  ;;  %v1372_v61 = vadd.f32 %v6590_v7, %v6620_v22  ;;  %v6720_v7 = vpop.eup %4542 }
 0x2ea   : > { %v1437_v6 = vadd.f32 %v6592_v14, %v6620_v22  ;;  %v6722_v25 = vpop.eup %4544 }
 0x2eb   : > { %4554 = vtanh.f32 %v1372_v61  ;;  %v6726_v58 = vpop.eup %4546 }
 0x2ec   : > { %4556 = vtanh.f32 %v1437_v6  ;;  %v6730_v50 = vpop.eup %4548 }
 0x2ed   : > { %v6596_v11 = vpop.f32.mrf.mxu2  ;;  %v6733_v60 = vpop.eup %4550 }
 0x2ee   : > { %v6598_v53 = vpop.f32.mrf.mxu3 }
 0x2f0   : > { %v6602_v29 = vpop.f32.mrf.mxu0 }
 0x2f1   : > { %v6606_v56 = vpop.f32.mrf.mxu1  ;;  %v1375_v43 = vadd.f32 %v6602_v29, %v6594_v33 }
 0x2f3   : > { %4558 = vtanh.f32 %v1375_v43 }
 0x2f5   : > { %v6608_v48 = vpop.f32.mrf.mxu2 }
 0x2f6   : > { %v6610_v21 = vpop.f32.mrf.mxu3 }
 0x2f8   : > { %v6614_v62 = vpop.f32.mrf.mxu0 }
 0x2f9   : > { %v6618_v52 = vpop.f32.mrf.mxu1 }
 0x2fd   : > { %v6622_v15 = vpop.f32.mrf.mxu2 }
 0x2fe   : > { %v6624_v45 = vpop.f32.mrf.mxu3 }
 0x300   : > { %v6626_v32 = vpop.f32.mrf.mxu0 }
 0x301   : > { %v6630_v26 = vpop.f32.mrf.mxu1 }
 0x302   : > { %v1446_v49 = vadd.f32 %v6630_v26, %v6604_v1 }
 0x305   : > { %v6636_v30 = vpop.f32.mrf.mxu2 }
 0x306   : > { %v6638_v20 = vpop.f32.mrf.mxu3 }
 0x308   : > { %v6640_v28 = vpop.f32.mrf.mxu0 }
 0x309   : > { %v6642_v12 = vpop.f32.mrf.mxu1 }
 0x30d   : > { %v6652_v55 = vpop.f32.mrf.mxu2 }
 0x30e   : > { %v6656_v51 = vpop.f32.mrf.mxu3 }
 0x310   : > { %v1386_v3 = vpop.f32.mrf.mxu0 }
 0x311   : > { %v1451_v0 = vpop.f32.mrf.mxu1  ;;  %v1387_v61 = vadd.f32 %v1386_v3, %v6582_v34 }
 0x312   : > { %v1452_v6 = vadd.f32 %v1451_v0, %v6582_v34  ;;  %v1381_v0 = vadd.f32 %v6626_v32, %v6604_v1  ;;  %v1440_v32 = vadd.f32 %v6606_v56, %v6594_v33 }
 0x315   : > { %v6674_v54 = vpop.f32.mrf.mxu2 }
 0x316   : > { %v6680_v57 = vpop.f32.mrf.mxu3 }
 0x318   : > { %v1389_v9 = vpop.f32.mrf.mxu0 }
 0x319   : > { %v1454_v36 = vpop.f32.mrf.mxu1  ;;  %v1390_v14 = vadd.f32 %v1389_v9, %v6588_v18  ;;  %v6736_v9 = vpop.eup %4552 }
 0x31a   : > { %v1455_v29 = vadd.f32 %v1454_v36, %v6588_v18  ;;  %v6740_v36 = vpop.eup %4554 }
 0x31d   : > { %v6710_v17 = vpop.f32.mrf.mxu2 }
 0x31e   : > { %v6716_v40 = vpop.f32.mrf.mxu3 }
 0x320   : > { %v1392_v46 = vpop.f32.mrf.mxu0 }
 0x321   : > { %v1393_v27 = vadd.f32 %v1392_v46, %v6568_v10  ;;  %v1457_v37 = vpop.f32.mrf.mxu1  ;;  %v1384_v46 = vadd.f32 %v6640_v28, %v6580_v42 }
 0x322   : > { %v1458_v59 = vadd.f32 %v1457_v37, %v6568_v10  ;;  %v1449_v37 = vadd.f32 %v6642_v12, %v6580_v42  ;;  %v1443_v12 = vadd.f32 %v6618_v52, %v6600_v13 }
 0x323   : > { %4560 = vtanh.f32 %v1393_v27  ;;  %v6744_v27 = vpop.eup %4556 }
 0x324   : > { %4562 = vtanh.f32 %v1458_v59  ;;  %v4559_v59 = vpop.eup %4558 }
 0x325   : > { %4564 = vtanh.f32 %v1390_v14  ;;  %v1519_v43 = vpop.f32.mrf.mxu2  ;;  %v1378_v14 = vadd.f32 %v6614_v62, %v6600_v13 }
 0x326   : > { %4566 = vtanh.f32 %v1455_v29  ;;  %v1584_v3 = vpop.f32.mrf.mxu3 }
 0x327   : > { %4568 = vtanh.f32 %v1387_v61  ;;  %v1585_v56 = vadd.f32 %v1584_v3, %v6588_v18  ;;  %v1511_v3 = vadd.f32 %v6652_v55, %v6604_v1 }
 0x328   : > { %4570 = vtanh.f32 %v1452_v6 }
 0x329   : > { %v4561_v28 = vpop.eup %4560  ;;  %4572 = vtanh.f32 %v1384_v46  ;;  %v1520_v46 = vadd.f32 %v1519_v43, %v6588_v18  ;;  %v1582_v43 = vadd.f32 %v6716_v40, %v6582_v34  ;;  %v1579_v18 = vadd.f32 %v6680_v57, %v6580_v42 }
 0x32a   : > { %v4563_v63 = vpop.eup %4562  ;;  %4574 = vtanh.f32 %v1449_v37  ;;  %1768 = vmatpush.msra.mxu0 %v4561_v28  ;;  %v1576_v40 = vadd.f32 %v6656_v51, %v6604_v1  ;;  %v1573_v57 = vadd.f32 %v6638_v20, %v6600_v13  ;;  %v1570_v1 = vadd.f32 %v6624_v45, %v6594_v33 }
 0x32b   : > { %v4565_v29 = vpop.eup %4564  ;;  %4576 = vtanh.f32 %v1381_v0  ;;  %1833 = vmatpush.msra.mxu1 %v4563_v63  ;;  %v1517_v0 = vadd.f32 %v6710_v17, %v6582_v34  ;;  %v1567_v20 = vadd.f32 %v6610_v21, %v6620_v22  ;;  %v1499_v45 = vadd.f32 %v6596_v11, %v6616_v47 }
 0x32c   : > { %v4567_v61 = vpop.eup %4566  ;;  %4578 = vtanh.f32 %v1446_v49  ;;  %1769 = vmatpush.msra.mxu0 %v4565_v29  ;;  %v1514_v29 = vadd.f32 %v6674_v54, %v6580_v42 }
 0x32d   : > { %v4569_v26 = vpop.eup %4568  ;;  %4580 = vtanh.f32 %v1378_v14  ;;  %v1522_v6 = vpop.f32.mrf.mxu2  ;;  %1834 = vmatpush.msra.mxu1 %v4567_v61  ;;  %v1505_v61 = vadd.f32 %v6622_v15, %v6594_v33 }
 0x32e   : > { %v4571_v62 = vpop.eup %4570  ;;  %4582 = vtanh.f32 %v1443_v12  ;;  %v1523_v52 = vadd.f32 %v1522_v6, %v6568_v10  ;;  %v1587_v37 = vpop.f32.mrf.mxu3  ;;  %1770 = vmatpush.msra.mxu0 %v4569_v26  ;;  %v8517_v26 = vld [vmem:[#allocation7_spill] sm:$0xff] }
 0x32f   : > { %v4573_v28 = vpop.eup %4572  ;;  %4584 = vtanh.f32 %v1440_v32  ;;  %v1588_v63 = vadd.f32 %v1587_v37, %v6568_v10  ;;  %1835 = vmatpush.msra.mxu1 %v4571_v62  ;;  %v1508_v32 = vadd.f32 %v6636_v30, %v6600_v13  ;;  %v1502_v30 = vadd.f32 %v6608_v48, %v6620_v22  ;;  %v8518_v62 = vld [vmem:[#allocation3_spill] sm:$0xff]  ;;  %v8520_v37 = vld [vmem:[#allocation21_spill] sm:$0xff] }
 0x330   : > { %v4575_v49 = vpop.eup %4574  ;;  %4586 = vtanh.f32 %v1523_v52  ;;  %1771 = vmatpush.msra.mxu0 %v4573_v28  ;;  %v1496_v22 = vadd.f32 %v6584_v39, %v6612_v35  ;;  %v8519_v52 = vld [vmem:[#allocation10_spill] sm:$0xff] }
 0x331   : > { %v4577_v14 = vpop.eup %4576  ;;  %4588 = vtanh.f32 %v1588_v63  ;;  %1836 = vmatpush.msra.mxu1 %v4575_v49  ;;  %v1481_v28 = vadd.f32 %v8520_v37, %v8519_v52  ;;  %v8522_v49 = vld [vmem:[#allocation19_spill] sm:$0xff] }
 0x332   : > { %v4579_v12 = vpop.eup %4578  ;;  %4590 = vtanh.f32 %v1520_v46  ;;  %1772 = vmatpush.msra.mxu0 %v4577_v14  ;;  %v8523_v14 = vld [vmem:[#allocation18_spill] sm:$0xff] }
 0x333   : > { %v4581_v10 = vpop.eup %4580  ;;  %4592 = vtanh.f32 %v1585_v56  ;;  %1837 = vmatpush.msra.mxu1 %v4579_v12  ;;  %v8521_v56 = vld [vmem:[#allocation6_spill] sm:$0xff]  ;;  %v8524_v12 = vld [vmem:[#allocation17_spill] sm:$0xff] }
 0x334   : > { %v4583_v17 = vpop.eup %4582  ;;  %4594 = vtanh.f32 %v1517_v0  ;;  %1773 = vmatpush.msra.mxu0 %v4581_v10  ;;  %v1546_v0 = vadd.f32 %v8522_v49, %v8519_v52  ;;  %v6930_v52 = vpop.permute.xlu1 %1765 }
 0x335   : > { %v4585_v34 = vpop.eup %4584  ;;  %4596 = vtanh.f32 %v1582_v43  ;;  %1838 = vmatpush.msra.mxu1 %v4583_v17  ;;  %v8526_v17 = vld [vmem:[#allocation9_spill] sm:$0xff] }
 0x336   : > { %v4587_v54 = vpop.eup %4586  ;;  %4598 = vtanh.f32 %v1514_v29  ;;  %1774 = vmatpush.msra.mxu0 %v4559_v59  ;;  %v8525_v29 = vld [vmem:[#allocation2_spill] sm:$0xff] }
 0x337   : > { %v4589_v42 = vpop.eup %4588  ;;  %4600 = vtanh.f32 %v1579_v18  ;;  %1839 = vmatpush.msra.mxu1 %v4585_v34  ;;  %1898 = vmatpush.msra.mxu2 %v4587_v54  ;;  %v1478_v10 = vadd.f32 %v8525_v29, %v8524_v12 }
 0x338   : > { %v4591_v55 = vpop.eup %4590  ;;  %4602 = vtanh.f32 %v1511_v3  ;;  %1963 = vmatpush.msra.mxu3 %v4589_v42  ;;  %1775 = vmatpush.msra.mxu0 %v6740_v36  ;;  %v1543_v3 = vadd.f32 %v8526_v17, %v8524_v12  ;;  %v4081_v42 = vld [vmem:[%s8425_s0 + $0x188] sm:$0xff] }
 0x339   : > { %v4593_v51 = vpop.eup %4592  ;;  %4604 = vtanh.f32 %v1576_v40  ;;  %1840 = vmatpush.msra.mxu1 %v6744_v27  ;;  %1899 = vmatpush.msra.mxu2 %v4591_v55  ;;  %v8516_v27 = vld [vmem:[#allocation15_spill] sm:$0xff] }
 0x33a   : > { %v4595_v13 = vpop.eup %4594  ;;  %4606 = vtanh.f32 %v1508_v32  ;;  %1964 = vmatpush.msra.mxu3 %v4593_v51  ;;  %1776 = vmatpush.msra.mxu0 %v6733_v60  ;;  %v1564_v60 = vadd.f32 %v6598_v53, %v6616_v47  ;;  %v1493_v47 = vadd.f32 %v6572_v23, %v6634_v16 }
 0x33b   : > { %v4597_v15 = vpop.eup %4596  ;;  %4608 = vtanh.f32 %v1573_v57  ;;  %1841 = vmatpush.msra.mxu1 %v6736_v9  ;;  %1900 = vmatpush.msra.mxu2 %v4595_v13  ;;  %v8513_v9 = vld [vmem:[#allocation16_spill] sm:$0xff] }
 0x33c   : > { %v4599_v33 = vpop.eup %4598  ;;  %4610 = vtanh.f32 %v1505_v61  ;;  %1965 = vmatpush.msra.mxu3 %v4597_v15  ;;  %1777 = vmatpush.msra.mxu0 %v6726_v58  ;;  %v1561_v58 = vadd.f32 %v6586_v8, %v6612_v35  ;;  %v1490_v35 = vadd.f32 %v6562_v2, %v6632_v31  ;;  %v4083_v15 = vld [vmem:[%s8425_s0 + $0x198] sm:$0xff]  ;;  %v6940_v49 = vpop.permute.xlu1 %1750 }
 0x33d   : > { %v4601_v48 = vpop.eup %4600  ;;  %4612 = vtanh.f32 %v1570_v1  ;;  %1842 = vmatpush.msra.mxu1 %v6730_v50  ;;  %1901 = vmatpush.msra.mxu2 %v4599_v33  ;;  %v8512_v50 = vld [vmem:[#allocation20_spill] sm:$0xff]  ;;  %v4085_v33 = vld [vmem:[%s8425_s0 + $0x1a8] sm:$0xff] }
 0x33e   : > { %v4603_v21 = vpop.eup %4602  ;;  %4614 = vtanh.f32 %v1502_v30  ;;  %1966 = vmatpush.msra.mxu3 %v4601_v48  ;;  %1778 = vmatpush.msra.mxu0 %v6720_v7  ;;  %v1558_v7 = vadd.f32 %v6574_v44, %v6634_v16  ;;  %v8510_v16 = vld [vmem:[#allocation8_spill] sm:$0xff]  ;;  %v4087_v48 = vld [vmem:[%s8425_s0 + $0x1b8] sm:$0xff] }
 0x33f   : > { %v4605_v11 = vpop.eup %4604  ;;  %4616 = vtanh.f32 %v1567_v20  ;;  %1843 = vmatpush.msra.mxu1 %v6722_v25  ;;  %1902 = vmatpush.msra.mxu2 %v4603_v21  ;;  %v1555_v25 = vadd.f32 %v6564_v38, %v6632_v31  ;;  %v8514_v31 = vld [vmem:[#allocation5_spill] sm:$0xff]  ;;  %v4082_v30 = vld [vmem:[%s8425_s0 + $0x190] sm:$0xff]  ;;  %v4084_v20 = vld [vmem:[%s8425_s0 + $0x1a0] sm:$0xff] }
 0x340   : > { %v4607_v53 = vpop.eup %4606  ;;  %4618 = vtanh.f32 %v1499_v45  ;;  %1967 = vmatpush.msra.mxu3 %v4605_v11  ;;  %1779 = vmatpush.msra.mxu0 %v6712_v24  ;;  %v1487_v24 = vadd.f32 %v8510_v16, %v6628_v19  ;;  %v1549_v6 = vadd.f32 %v8517_v26, %v8514_v31  ;;  %v4086_v45 = vld [vmem:[%s8425_s0 + $0x1b0] sm:$0xff]  ;;  %v4089_v21 = vld [vmem:[%s8425_s0 + $0x1c8] sm:$0xff]  ;;  %v4091_v11 = vld [vmem:[%s8425_s0 + $0x1d8] sm:$0xff] }
 0x341   : > { %v4609_v39 = vpop.eup %4608  ;;  %4620 = vtanh.f32 %v1564_v60  ;;  %1844 = vmatpush.msra.mxu1 %v6718_v4  ;;  %1903 = vmatpush.msra.mxu2 %v4607_v53  ;;  %v8511_v4 = vld [vmem:[#allocation4_spill] sm:$0xff]  ;;  %v4088_v60 = vld [vmem:[%s8425_s0 + $0x1c0] sm:$0xff]  ;;  %v4093_v53 = vld [vmem:[%s8425_s0 + $0x1e8] sm:$0xff] }
 0x342   : > { %v4611_v8 = vpop.eup %4610  ;;  %4622 = vtanh.f32 %v1496_v22  ;;  %1968 = vmatpush.msra.mxu3 %v4609_v39  ;;  %1780 = vmatpush.msra.mxu0 %v6702_v5  ;;  %v1552_v5 = vadd.f32 %v8512_v50, %v6628_v19  ;;  %v4080_v19 = vld [vmem:[%s8425_s0 + $0x180] sm:$0xff]  ;;  %v4090_v22 = vld [vmem:[%s8425_s0 + $0x1d0] sm:$0xff]  ;;  %v4095_v39 = vld [vmem:[%s8425_s0 + $0x1f8] sm:$0xff] }
 0x343   : > { %v4613_v23 = vpop.eup %4612  ;;  %4624 = vtanh.f32 %v1561_v58  ;;  %1845 = vmatpush.msra.mxu1 %v6706_v41  ;;  %1904 = vmatpush.msra.mxu2 %v4611_v8  ;;  %v8515_v41 = vld [vmem:[#allocation11_spill] sm:$0xff]  ;;  %v4092_v58 = vld [vmem:[%s8425_s0 + $0x1e0] sm:$0xff] }
 0x344   : > { %v4615_v44 = vpop.eup %4614  ;;  %4626 = vtanh.f32 %v1493_v47  ;;  %1969 = vmatpush.msra.mxu3 %v4613_v23  ;;  %1781 = vmatpush.msra.mxu0 %v8511_v4  ;;  %v1484_v36 = vadd.f32 %v8515_v41, %v8514_v31  ;;  %v4094_v47 = vld [vmem:[%s8425_s0 + $0x1f0] sm:$0xff] }
 0x345   : > { %v4617_v2 = vpop.eup %4616  ;;  %4628 = vtanh.f32 %v1558_v7  ;;  %1846 = vmatpush.msra.mxu1 %v8513_v9  ;;  %1905 = vmatpush.msra.mxu2 %v4615_v44 }
 0x346   : > { %v4619_v38 = vpop.eup %4618  ;;  %4630 = vtanh.f32 %v1490_v35  ;;  %1970 = vmatpush.msra.mxu3 %v4617_v2  ;;  %1782 = vmatpush.msra.mxu0 %v8516_v27 }
 0x347   : > { %v4621_v59 = vpop.eup %4620  ;;  %4632 = vtanh.f32 %v1555_v25  ;;  %1847 = vmatpush.msra.mxu1 %v8518_v62  ;;  %1906 = vmatpush.msra.mxu2 %v4619_v38 }
 0x348   : > { %v4623_v46 = vpop.eup %4622  ;;  %4634 = vtanh.f32 %v1487_v24  ;;  %1971 = vmatpush.msra.mxu3 %v4621_v59  ;;  %1783 = vmatpush.msra.mxu0 %v8521_v56 }
 0x349   : > { %v4625_v63 = vpop.eup %4624  ;;  %4636 = vtanh.f32 %v1552_v5  ;;  %1848 = vmatpush.msra.mxu1 %v8523_v14  ;;  %1907 = vmatpush.msra.mxu2 %v4623_v46 }
 0x34a   : > { %v4627_v43 = vpop.eup %4626  ;;  %4638 = vtanh.f32 %v1484_v36  ;;  %1972 = vmatpush.msra.mxu3 %v4625_v63  ;;  %1784 = vmatmul.f32.vlgmr.msra.gmra.mxu0 %v4080_v19 }
 0x34b   : > { %v4629_v18 = vpop.eup %4628  ;;  %4640 = vtanh.f32 %v1549_v6  ;;  %1849 = vmatmul.f32.vlgmr.msra.gmra.mxu1 %v4080_v19  ;;  %1908 = vmatpush.msra.mxu2 %v4627_v43  ;;  %v6946_v43 = vpop.permute.xlu0 %1755 }
 0x34c   : > { %v4631_v34 = vpop.eup %4630  ;;  %4642 = vtanh.f32 %v1481_v28  ;;  %1973 = vmatpush.msra.mxu3 %v4629_v18 }
 0x34d   : > { %v4633_v40 = vpop.eup %4632  ;;  %4644 = vtanh.f32 %v1546_v0  ;;  %1909 = vmatpush.msra.mxu2 %v4631_v34 }
 0x34e   : > { %v4635_v54 = vpop.eup %4634  ;;  %4646 = vtanh.f32 %v1478_v10  ;;  %1974 = vmatpush.msra.mxu3 %v4633_v40  ;;  %v6952_v10 = vpop.permute.xlu2 %1760 }
 0x34f   : > { %v4637_v32 = vpop.eup %4636  ;;  %4648 = vtanh.f32 %v1543_v3  ;;  %1910 = vmatpush.msra.mxu2 %v4635_v54  ;;  %v6958_v3 = vpop.permute.xlu1 %1735 }
 0x350   : > { %v4639_v57 = vpop.eup %4638  ;;  %1975 = vmatpush.msra.mxu3 %v4637_v32 }
 0x351   : > { %v4641_v55 = vpop.eup %4640  ;;  %1911 = vmatpush.msra.mxu2 %v4639_v57 }
 0x352   : > { %v4643_v61 = vpop.eup %4642  ;;  %1976 = vmatpush.msra.mxu3 %v4641_v55  ;;  %1787 = vmatmul.f32.gmra.mxu0 %v4081_v42 }
 0x353   : > { %v4645_v51 = vpop.eup %4644  ;;  %1852 = vmatmul.f32.gmra.mxu1 %v4081_v42  ;;  %1912 = vmatpush.msra.mxu2 %v4643_v61  ;;  %v6964_v54 = vpop.permute.xlu0 %1740 }
 0x354   : > { %v4647_v1 = vpop.eup %4646  ;;  %1977 = vmatpush.msra.mxu3 %v4645_v51 }
 0x355   : > { %v4649_v13 = vpop.eup %4648  ;;  %1913 = vmatpush.msra.mxu2 %v4647_v1 }
 0x356   : > { %1978 = vmatpush.msra.mxu3 %v4649_v13  ;;  %1914 = vmatmul.f32.vlgmr.msra.gmra.mxu2 %v4080_v19  ;;  %v6966_v32 = vpop.permute.xlu2 %1745 }
 0x357   : > { %1979 = vmatmul.f32.vlgmr.msra.gmra.mxu3 %v4080_v19  ;;  %v6976_v51 = vpop.permute.xlu1 %1720 }
 0x35a   : > { %1790 = vmatmul.f32.gmra.mxu0 %v4082_v30 }
 0x35b   : > { %1855 = vmatmul.f32.gmra.mxu1 %v4082_v30  ;;  %v6978_v1 = vpop.permute.xlu0 %1725 }
 0x35e   : > { %1917 = vmatmul.f32.gmra.mxu2 %v4081_v42  ;;  %v6980_v13 = vpop.permute.xlu2 %1730 }
 0x35f   : > { %1982 = vmatmul.f32.gmra.mxu3 %v4081_v42 }
 0x362   : > { %1793 = vmatmul.f32.gmra.mxu0 %v4083_v15 }
 0x363   : > { %1858 = vmatmul.f32.gmra.mxu1 %v4083_v15 }
 0x366   : > { %1920 = vmatmul.f32.gmra.mxu2 %v4082_v30 }
 0x367   : > { %1985 = vmatmul.f32.gmra.mxu3 %v4082_v30 }
 0x36a   : > { %1796 = vmatmul.f32.gmra.mxu0 %v4084_v20 }
 0x36b   : > { %1861 = vmatmul.f32.gmra.mxu1 %v4084_v20 }
 0x36e   : > { %1923 = vmatmul.f32.gmra.mxu2 %v4083_v15 }
 0x36f   : > { %1988 = vmatmul.f32.gmra.mxu3 %v4083_v15 }
 0x372   : > { %1799 = vmatmul.f32.gmra.mxu0 %v4085_v33 }
 0x373   : > { %1864 = vmatmul.f32.gmra.mxu1 %v4085_v33 }
 0x376   : > { %1926 = vmatmul.f32.gmra.mxu2 %v4084_v20 }
 0x377   : > { %1991 = vmatmul.f32.gmra.mxu3 %v4084_v20 }
 0x37a   : > { %1802 = vmatmul.f32.gmra.mxu0 %v4086_v45 }
 0x37b   : > { %1867 = vmatmul.f32.gmra.mxu1 %v4086_v45 }
 0x37e   : > { %1929 = vmatmul.f32.gmra.mxu2 %v4085_v33 }
 0x37f   : > { %1994 = vmatmul.f32.gmra.mxu3 %v4085_v33 }
 0x382   : > { %1805 = vmatmul.f32.gmra.mxu0 %v4087_v48 }
 0x383   : > { %1870 = vmatmul.f32.gmra.mxu1 %v4087_v48 }
 0x386   : > { %1932 = vmatmul.f32.gmra.mxu2 %v4086_v45 }
 0x387   : > { %1997 = vmatmul.f32.gmra.mxu3 %v4086_v45  ;;  %v6990_v45 = vpop.permute.xlu1 %1705 }
 0x388   : > { %8536 = vst [vmem:[#allocation15_spill] sm:$0xff] %v6990_v45 }
 0x38a   : > { %1808 = vmatmul.f32.gmra.mxu0 %v4088_v60 }
 0x38b   : > { %1873 = vmatmul.f32.gmra.mxu1 %v4088_v60 }
 0x38e   : > { %1935 = vmatmul.f32.gmra.mxu2 %v4087_v48 }
 0x38f   : > { %2000 = vmatmul.f32.gmra.mxu3 %v4087_v48  ;;  %v6992_v48 = vpop.permute.xlu0 %1710 }
 0x392   : > { %1811 = vmatmul.f32.gmra.mxu0 %v4089_v21 }
 0x393   : > { %1876 = vmatmul.f32.gmra.mxu1 %v4089_v21 }
 0x396   : > { %1938 = vmatmul.f32.gmra.mxu2 %v4088_v60 }
 0x397   : > { %2003 = vmatmul.f32.gmra.mxu3 %v4088_v60 }
 0x39a   : > { %1814 = vmatmul.f32.gmra.mxu0 %v4090_v22 }
 0x39b   : > { %1879 = vmatmul.f32.gmra.mxu1 %v4090_v22 }
 0x39e   : > { %1941 = vmatmul.f32.gmra.mxu2 %v4089_v21 }
 0x39f   : > { %2006 = vmatmul.f32.gmra.mxu3 %v4089_v21 }
 0x3a2   : > { %1817 = vmatmul.f32.gmra.mxu0 %v4091_v11 }
 0x3a3   : > { %1882 = vmatmul.f32.gmra.mxu1 %v4091_v11 }
 0x3a6   : > { %1944 = vmatmul.f32.gmra.mxu2 %v4090_v22 }
 0x3a7   : > { %2009 = vmatmul.f32.gmra.mxu3 %v4090_v22  ;;  %v6998_v22 = vpop.permute.xlu2 %1715 }
 0x3aa   : > { %1820 = vmatmul.f32.gmra.mxu0 %v4092_v58 }
 0x3ab   : > { %1885 = vmatmul.f32.gmra.mxu1 %v4092_v58 }
 0x3ae   : > { %1947 = vmatmul.f32.gmra.mxu2 %v4091_v11 }
 0x3af   : > { %2012 = vmatmul.f32.gmra.mxu3 %v4091_v11 }
 0x3b2   : > { %1823 = vmatmul.f32.gmra.mxu0 %v4093_v53 }
 0x3b3   : > { %1888 = vmatmul.f32.gmra.mxu1 %v4093_v53 }
 0x3b6   : > { %1950 = vmatmul.f32.gmra.mxu2 %v4092_v58 }
 0x3b7   : > { %2015 = vmatmul.f32.gmra.mxu3 %v4092_v58 }
 0x3ba   : > { %1826 = vmatmul.f32.gmra.mxu0 %v4094_v47 }
 0x3bb   : > { %1891 = vmatmul.f32.gmra.mxu1 %v4094_v47 }
 0x3be   : > { %1953 = vmatmul.f32.gmra.mxu2 %v4093_v53 }
 0x3bf   : > { %2018 = vmatmul.f32.gmra.mxu3 %v4093_v53  ;;  %v7004_v53 = vpop.permute.xlu1 %1690 }
 0x3c0   : > { %8537 = vst [vmem:[#allocation7_spill] sm:$0xff] %v7004_v53 }
 0x3c2   : > { %1829 = vmatmul.f32.gmra.mxu0 %v4095_v39 }
 0x3c3   : > { %1894 = vmatmul.f32.gmra.mxu1 %v4095_v39 }
 0x3c6   : > { %1956 = vmatmul.f32.gmra.mxu2 %v4094_v47 }
 0x3c7   : > { %2021 = vmatmul.f32.gmra.mxu3 %v4094_v47  ;;  %v6882_v7 = vpop.f32.mrf.mxu0 }
 0x3c8   : > { %v6884_v8 = vpop.f32.mrf.mxu1 }
 0x3ce   : > { %1959 = vmatmul.f32.gmra.mxu2 %v4095_v39 }
 0x3cf   : > { %2024 = vmatmul.f32.gmra.mxu3 %v4095_v39  ;;  %v6886_v35 = vpop.f32.mrf.mxu0  ;;  %v1786_v39 = vadd.f32 %v6882_v7, %v7004_v53 }
 0x3d0   : > { %v6888_v23 = vpop.f32.mrf.mxu1 }
 0x3d1   : > { %4650 = vtanh.f32 %v1786_v39 }
 0x3d7   : > { %v6890_v25 = vpop.f32.mrf.mxu0 }
 0x3d8   : > { %v6892_v44 = vpop.f32.mrf.mxu1 }
 0x3d9   : > { %v6894_v16 = vpop.f32.mrf.mxu2 }
 0x3da   : > { %8527 = vst [vmem:[#allocation13_spill] sm:$0xff] %v6894_v16  ;;  %v6896_v24 = vpop.f32.mrf.mxu3  ;;  %v7008_v16 = vpop.permute.xlu0 %1695 }
 0x3db   : > { %8528 = vst [vmem:[#allocation14_spill] sm:$0xff] %v6896_v24 }
 0x3dc   : > { %8538 = vst [vmem:[#allocation3_spill] sm:$0xff] %v7008_v16 }
 0x3df   : > { %v6898_v4 = vpop.f32.mrf.mxu0 }
 0x3e0   : > { %v6900_v2 = vpop.f32.mrf.mxu1 }
 0x3e1   : > { %v6902_v50 = vpop.f32.mrf.mxu2 }
 0x3e2   : > { %8529 = vst [vmem:[#allocation12_spill] sm:$0xff] %v6902_v50  ;;  %v6904_v5 = vpop.f32.mrf.mxu3 }
 0x3e3   : > { %8530 = vst [vmem:[#allocation8_spill] sm:$0xff] %v6904_v5  ;;  %v1851_v5 = vadd.f32 %v6884_v8, %v7004_v53  ;;  %v1795_v53 = vadd.f32 %v6898_v4, %v6990_v45 }
 0x3e5   : > { %4652 = vtanh.f32 %v1851_v5 }
 0x3e7   : > { %v6906_v9 = vpop.f32.mrf.mxu0 }
 0x3e8   : > { %v6908_v38 = vpop.f32.mrf.mxu1 }
 0x3e9   : > { %v6910_v31 = vpop.f32.mrf.mxu2 }
 0x3ea   : > { %8531 = vst [vmem:[#allocation4_spill] sm:$0xff] %v6910_v31  ;;  %v6912_v41 = vpop.f32.mrf.mxu3 }
 0x3eb   : > { %8532 = vst [vmem:[#allocation20_spill] sm:$0xff] %v6912_v41  ;;  %v1789_v41 = vadd.f32 %v6886_v35, %v7008_v16  ;;  %v1860_v35 = vadd.f32 %v6900_v2, %v6990_v45 }
 0x3ed   : > { %4654 = vtanh.f32 %v1789_v41 }
 0x3ef   : > { %v6914_v36 = vpop.f32.mrf.mxu0 }
 0x3f0   : > { %v6916_v27 = vpop.f32.mrf.mxu1  ;;  %v1801_v4 = vadd.f32 %v6914_v36, %v6998_v22 }
 0x3f1   : > { %v6918_v59 = vpop.f32.mrf.mxu2 }
 0x3f2   : > { %8533 = vst [vmem:[#allocation16_spill] sm:$0xff] %v6918_v59  ;;  %v6920_v26 = vpop.f32.mrf.mxu3  ;;  %v1854_v59 = vadd.f32 %v6888_v23, %v7008_v16  ;;  %v1798_v23 = vadd.f32 %v6906_v9, %v6992_v48  ;;  %v1866_v9 = vadd.f32 %v6916_v27, %v6998_v22 }
 0x3f3   : > { %8534 = vst [vmem:[#allocation5_spill] sm:$0xff] %v6920_v26  ;;  %v7018_v26 = vpop.permute.xlu2 %1700 }
 0x3f4   : > { %8539 = vst [vmem:[#allocation10_spill] sm:$0xff] %v7018_v26  ;;  %v1792_v7 = vadd.f32 %v6890_v25, %v7018_v26  ;;  %v1857_v8 = vadd.f32 %v6892_v44, %v7018_v26  ;;  %4656 = vtanh.f32 %v1854_v59  ;;  %v1863_v25 = vadd.f32 %v6908_v38, %v6992_v48  ;;  %v7036_v44 = vpop.eup %4650 }
 0x3f5   : > { %8540 = vst [vmem:[#allocation21_spill] sm:$0xff] %v7036_v44  ;;  %v7042_v2 = vpop.eup %4652 }
 0x3f6   : > { %4658 = vtanh.f32 %v1792_v7  ;;  %8541 = vst [vmem:[#allocation6_spill] sm:$0xff] %v7042_v2  ;;  %v7046_v59 = vpop.eup %4654 }
 0x3f7   : > { %v6922_v6 = vpop.f32.mrf.mxu0  ;;  %4660 = vtanh.f32 %v1857_v8 }
 0x3f8   : > { %v6924_v62 = vpop.f32.mrf.mxu1  ;;  %4662 = vtanh.f32 %v1795_v53  ;;  %v1804_v38 = vadd.f32 %v6922_v6, %v6976_v51 }
 0x3f9   : > { %v6926_v19 = vpop.f32.mrf.mxu2  ;;  %4664 = vtanh.f32 %v1860_v35  ;;  %v1869_v36 = vadd.f32 %v6924_v62, %v6976_v51 }
 0x3fa   : > { %v6928_v46 = vpop.f32.mrf.mxu3  ;;  %4666 = vtanh.f32 %v1798_v23  ;;  %v7050_v7 = vpop.eup %4656 }
 0x3fb   : > { %8535 = vst [vmem:[#allocation11_spill] sm:$0xff] %v6928_v46  ;;  %4668 = vtanh.f32 %v1863_v25 }
 0x3fc   : > { %8542 = vst [vmem:[#allocation19_spill] sm:$0xff] %v7050_v7  ;;  %v7054_v53 = vpop.eup %4658  ;;  %4670 = vtanh.f32 %v1801_v4 }
 0x3fd   : > { %v7056_v8 = vpop.eup %4660  ;;  %4672 = vtanh.f32 %v1866_v9 }
 0x3fe   : > { %v7058_v27 = vpop.eup %4662  ;;  %4674 = vtanh.f32 %v1804_v38 }
 0x3ff   : > { %v6932_v37 = vpop.f32.mrf.mxu0  ;;  %v7062_v26 = vpop.eup %4664  ;;  %4676 = vtanh.f32 %v1869_v36 }
 0x400   : > { %v6934_v28 = vpop.f32.mrf.mxu1  ;;  %v7068_v2 = vpop.eup %4666 }
 0x401   : > { %v6936_v56 = vpop.f32.mrf.mxu2 }
 0x402   : > { %v6938_v63 = vpop.f32.mrf.mxu3 }
 0x407   : > { %v6942_v0 = vpop.f32.mrf.mxu0 }
 0x408   : > { %v6944_v14 = vpop.f32.mrf.mxu1 }
 0x409   : > { %v6948_v12 = vpop.f32.mrf.mxu2 }
 0x40a   : > { %v6950_v29 = vpop.f32.mrf.mxu3 }
 0x40f   : > { %v6954_v18 = vpop.f32.mrf.mxu0 }
 0x410   : > { %v6956_v17 = vpop.f32.mrf.mxu1 }
 0x411   : > { %v6960_v34 = vpop.f32.mrf.mxu2 }
 0x412   : > { %v6962_v40 = vpop.f32.mrf.mxu3 }
 0x417   : > { %v6968_v42 = vpop.f32.mrf.mxu0 }
 0x418   : > { %v6970_v57 = vpop.f32.mrf.mxu1 }
 0x419   : > { %v6972_v55 = vpop.f32.mrf.mxu2 }
 0x41a   : > { %v6974_v61 = vpop.f32.mrf.mxu3 }
 0x41f   : > { %v6982_v30 = vpop.f32.mrf.mxu0 }
 0x420   : > { %v6984_v15 = vpop.f32.mrf.mxu1 }
 0x421   : > { %v6986_v20 = vpop.f32.mrf.mxu2 }
 0x422   : > { %v6988_v33 = vpop.f32.mrf.mxu3 }
 0x427   : > { %v6994_v60 = vpop.f32.mrf.mxu0 }
 0x428   : > { %v6996_v21 = vpop.f32.mrf.mxu1 }
 0x429   : > { %v7000_v11 = vpop.f32.mrf.mxu2  ;;  %v1887_v36 = vadd.f32 %v6996_v21, %v6940_v49  ;;  %v1881_v21 = vadd.f32 %v6970_v57, %v6964_v54  ;;  %v1810_v57 = vadd.f32 %v6942_v0, %v6980_v13 }
 0x42a   : > { %v7002_v58 = vpop.f32.mrf.mxu3 }
 0x42f   : > { %v1824_v47 = vpop.f32.mrf.mxu0 }
 0x430   : > { %v1889_v24 = vpop.f32.mrf.mxu1  ;;  %v1825_v9 = vadd.f32 %v1824_v47, %v6946_v43 }
 0x431   : > { %v7012_v50 = vpop.f32.mrf.mxu2 }
 0x432   : > { %v7016_v31 = vpop.f32.mrf.mxu3 }
 0x437   : > { %v1827_v46 = vpop.f32.mrf.mxu0 }
 0x438   : > { %v1892_v39 = vpop.f32.mrf.mxu1  ;;  %v1828_v23 = vadd.f32 %v1827_v46, %v6952_v10  ;;  %v7073_v46 = vpop.eup %4668 }
 0x439   : > { %v7034_v5 = vpop.f32.mrf.mxu2  ;;  %v1893_v62 = vadd.f32 %v1892_v39, %v6952_v10  ;;  %v7076_v45 = vpop.eup %4670  ;;  %v1822_v39 = vadd.f32 %v6994_v60, %v6940_v49 }
 0x43a   : > { %v7040_v41 = vpop.f32.mrf.mxu3 }
 0x43f   : > { %v1830_v35 = vpop.f32.mrf.mxu0 }
 0x440   : > { %v1831_v6 = vadd.f32 %v1830_v35, %v6930_v52  ;;  %v1895_v16 = vpop.f32.mrf.mxu1  ;;  %v1890_v35 = vadd.f32 %v1889_v24, %v6946_v43 }
 0x441   : > { %v1896_v25 = vadd.f32 %v1895_v16, %v6930_v52  ;;  %v7066_v4 = vpop.f32.mrf.mxu2  ;;  %v7080_v16 = vpop.eup %4672 }
 0x442   : > { %4678 = vtanh.f32 %v1831_v6  ;;  %v7071_v38 = vpop.f32.mrf.mxu3  ;;  %v7084_v47 = vpop.eup %4674  ;;  %v1819_v6 = vadd.f32 %v6982_v30, %v6966_v32 }
 0x443   : > { %4680 = vtanh.f32 %v1896_v25  ;;  %v7088_v24 = vpop.eup %4676  ;;  %v1884_v25 = vadd.f32 %v6984_v15, %v6966_v32 }
 0x444   : > { %4682 = vtanh.f32 %v1828_v23  ;;  %v1816_v23 = vadd.f32 %v6968_v42, %v6964_v54 }
 0x445   : > { %4684 = vtanh.f32 %v1893_v62 }
 0x446   : > { %4686 = vtanh.f32 %v1825_v9  ;;  %v1813_v9 = vadd.f32 %v6954_v18, %v6958_v3 }
 0x447   : > { %4688 = vtanh.f32 %v1890_v35  ;;  %v1878_v35 = vadd.f32 %v6956_v17, %v6958_v3 }
 0x448   : > { %v4679_v60 = vpop.eup %4678  ;;  %4690 = vtanh.f32 %v1822_v39 }
 0x449   : > { %v4681_v44 = vpop.eup %4680  ;;  %4692 = vtanh.f32 %v1887_v36  ;;  %v1957_v62 = vpop.f32.mrf.mxu2  ;;  %2206 = vmatpush.msrb.mxu0 %v4679_v60  ;;  %v1875_v36 = vadd.f32 %v6944_v14, %v6980_v13 }
 0x44a   : > { %v4683_v30 = vpop.eup %4682  ;;  %4694 = vtanh.f32 %v1819_v6  ;;  %v2022_v7 = vpop.f32.mrf.mxu3  ;;  %2271 = vmatpush.msrb.mxu1 %v4681_v44  ;;  %v1807_v44 = vadd.f32 %v6932_v37, %v6978_v1  ;;  %v1872_v6 = vadd.f32 %v6934_v28, %v6978_v1 }
 0x44b   : > { %v4685_v15 = vpop.eup %4684  ;;  %4696 = vtanh.f32 %v1884_v25  ;;  %2207 = vmatpush.msrb.mxu0 %v4683_v30  ;;  %v2023_v28 = vadd.f32 %v2022_v7, %v6952_v10 }
 0x44c   : > { %v4687_v42 = vpop.eup %4686  ;;  %4698 = vtanh.f32 %v1816_v23  ;;  %2272 = vmatpush.msrb.mxu1 %v4685_v15  ;;  %v1958_v23 = vadd.f32 %v1957_v62, %v6952_v10  ;;  %v2020_v62 = vadd.f32 %v7071_v38, %v6946_v43  ;;  %v2017_v10 = vadd.f32 %v7040_v41, %v6940_v49 }
 0x44d   : > { %v4689_v39 = vpop.eup %4688  ;;  %4700 = vtanh.f32 %v1881_v21  ;;  %2208 = vmatpush.msrb.mxu0 %v4687_v42  ;;  %v2014_v38 = vadd.f32 %v7016_v31, %v6966_v32  ;;  %v2011_v41 = vadd.f32 %v7002_v58, %v6964_v54  ;;  %v1943_v31 = vadd.f32 %v6986_v20, %v6958_v3 }
 0x44e   : > { %v4691_v18 = vpop.eup %4690  ;;  %4702 = vtanh.f32 %v1813_v9  ;;  %2273 = vmatpush.msrb.mxu1 %v4689_v39  ;;  %v1952_v39 = vadd.f32 %v7034_v5, %v6940_v49  ;;  %v1940_v58 = vadd.f32 %v6972_v55, %v6980_v13 }
 0x44f   : > { %v4693_v17 = vpop.eup %4692  ;;  %4704 = vtanh.f32 %v1878_v35  ;;  %2209 = vmatpush.msrb.mxu0 %v4691_v18  ;;  %v1955_v35 = vadd.f32 %v7066_v4, %v6946_v43  ;;  %v1949_v4 = vadd.f32 %v7012_v50, %v6966_v32 }
 0x450   : > { %v4695_v0 = vpop.eup %4694  ;;  %4706 = vtanh.f32 %v1810_v57  ;;  %2274 = vmatpush.msrb.mxu1 %v4693_v17 }
 0x451   : > { %v4697_v25 = vpop.eup %4696  ;;  %4708 = vtanh.f32 %v1875_v36  ;;  %v1960_v14 = vpop.f32.mrf.mxu2  ;;  %2210 = vmatpush.msrb.mxu0 %v4695_v0  ;;  %v1946_v36 = vadd.f32 %v7000_v11, %v6964_v54  ;;  %v2008_v11 = vadd.f32 %v6988_v33, %v6958_v3  ;;  %v1937_v33 = vadd.f32 %v6960_v34, %v6978_v1  ;;  %v8551_v0 = vld [vmem:[#allocation4_spill] sm:$0xff] }
 0x452   : > { %v4699_v60 = vpop.eup %4698  ;;  %4710 = vtanh.f32 %v1807_v44  ;;  %v1961_v37 = vadd.f32 %v1960_v14, %v6930_v52  ;;  %v2025_v21 = vpop.f32.mrf.mxu3  ;;  %2275 = vmatpush.msrb.mxu1 %v4697_v25  ;;  %v8549_v44 = vld [vmem:[#allocation5_spill] sm:$0xff] }
 0x453   : > { %v4701_v30 = vpop.eup %4700  ;;  %4712 = vtanh.f32 %v1872_v6  ;;  %v2026_v9 = vadd.f32 %v2025_v21, %v6930_v52  ;;  %2211 = vmatpush.msrb.mxu0 %v4699_v60  ;;  %v8550_v6 = vld [vmem:[#allocation10_spill] sm:$0xff]  ;;  %v8552_v60 = vld [vmem:[#allocation20_spill] sm:$0xff]  ;;  %v8553_v21 = vld [vmem:[#allocation3_spill] sm:$0xff] }
 0x454   : > { %v4703_v15 = vpop.eup %4702  ;;  %4714 = vtanh.f32 %v1961_v37  ;;  %2276 = vmatpush.msrb.mxu1 %v4701_v30  ;;  %v1922_v25 = vadd.f32 %v8551_v0, %v8550_v6  ;;  %v8554_v30 = vld [vmem:[#allocation12_spill] sm:$0xff] }
 0x455   : > { %v4705_v42 = vpop.eup %4704  ;;  %4716 = vtanh.f32 %v2026_v9  ;;  %2212 = vmatpush.msrb.mxu0 %v4703_v15  ;;  %v8555_v15 = vld [vmem:[#allocation8_spill] sm:$0xff] }
 0x456   : > { %v4707_v57 = vpop.eup %4706  ;;  %4718 = vtanh.f32 %v1958_v23  ;;  %2277 = vmatpush.msrb.mxu1 %v4705_v42  ;;  %v1987_v23 = vadd.f32 %v8552_v60, %v8550_v6 }
 0x457   : > { %v4709_v52 = vpop.eup %4708  ;;  %4720 = vtanh.f32 %v2023_v28  ;;  %2213 = vmatpush.msrb.mxu0 %v4707_v57  ;;  %v1919_v28 = vadd.f32 %v8554_v30, %v8553_v21  ;;  %v8557_v57 = vld [vmem:[#allocation13_spill] sm:$0xff] }
 0x458   : > { %v4711_v7 = vpop.eup %4710  ;;  %4722 = vtanh.f32 %v1955_v35  ;;  %2278 = vmatpush.msrb.mxu1 %v4709_v52  ;;  %v1984_v35 = vadd.f32 %v8555_v15, %v8553_v21  ;;  %v4113_v52 = vld [vmem:[%s8425_s0 + $0x208] sm:$0xff]  ;;  %v7288_v21 = vpop.permute.xlu2 %2203 }
 0x459   : > { %v4713_v43 = vpop.eup %4712  ;;  %4724 = vtanh.f32 %v2020_v62  ;;  %2214 = vmatpush.msrb.mxu0 %v4711_v7  ;;  %v8556_v62 = vld [vmem:[#allocation7_spill] sm:$0xff]  ;;  %v8558_v7 = vld [vmem:[#allocation14_spill] sm:$0xff] }
 0x45a   : > { %v4715_v5 = vpop.eup %4714  ;;  %4726 = vtanh.f32 %v1952_v39  ;;  %2279 = vmatpush.msrb.mxu1 %v4713_v43  ;;  %v1916_v39 = vadd.f32 %v8557_v57, %v8556_v62 }
 0x45b   : > { %v4717_v49 = vpop.eup %4716  ;;  %4728 = vtanh.f32 %v2017_v10  ;;  %2215 = vmatpush.msrb.mxu0 %v7084_v47  ;;  %2336 = vmatpush.msrb.mxu2 %v4715_v5  ;;  %v2005_v47 = vadd.f32 %v6974_v61, %v6980_v13  ;;  %v1934_v13 = vadd.f32 %v6948_v12, %v6976_v51 }
 0x45c   : > { %v4719_v50 = vpop.eup %4718  ;;  %4730 = vtanh.f32 %v1949_v4  ;;  %2280 = vmatpush.msrb.mxu1 %v7088_v24  ;;  %2401 = vmatpush.msrb.mxu3 %v4717_v49  ;;  %v8548_v24 = vld [vmem:[#allocation6_spill] sm:$0xff]  ;;  %v1981_v4 = vadd.f32 %v8558_v7, %v8556_v62  ;;  %v7302_v62 = vpop.permute.xlu0 %2198 }
 0x45d   : > { %v4721_v32 = vpop.eup %4720  ;;  %4732 = vtanh.f32 %v2014_v38  ;;  %2216 = vmatpush.msrb.mxu0 %v7076_v45  ;;  %2337 = vmatpush.msrb.mxu2 %v4719_v50  ;;  %v2002_v45 = vadd.f32 %v6962_v40, %v6978_v1  ;;  %v1931_v1 = vadd.f32 %v6936_v56, %v6998_v22  ;;  %v7165_v56 = vld [vmem:[%s8425_s0 + $0x200] sm:$0xff] }
 0x45e   : > { %v4723_v54 = vpop.eup %4722  ;;  %4734 = vtanh.f32 %v1946_v36  ;;  %2281 = vmatpush.msrb.mxu1 %v7080_v16  ;;  %2402 = vmatpush.msrb.mxu3 %v4721_v32 }
 0x45f   : > { %v4725_v20 = vpop.eup %4724  ;;  %4736 = vtanh.f32 %v2011_v41  ;;  %2217 = vmatpush.msrb.mxu0 %v7068_v2  ;;  %2338 = vmatpush.msrb.mxu2 %v4723_v54  ;;  %v1999_v2 = vadd.f32 %v6950_v29, %v6976_v51  ;;  %v1928_v51 = vadd.f32 %v6926_v19, %v6992_v48  ;;  %v8547_v19 = vld [vmem:[#allocation16_spill] sm:$0xff] }
 0x460   : > { %v4727_v3 = vpop.eup %4726  ;;  %4738 = vtanh.f32 %v1943_v31  ;;  %2282 = vmatpush.msrb.mxu1 %v7073_v46  ;;  %2403 = vmatpush.msrb.mxu3 %v4725_v20  ;;  %v8546_v46 = vld [vmem:[#allocation15_spill] sm:$0xff]  ;;  %v4114_v31 = vld [vmem:[%s8425_s0 + $0x210] sm:$0xff]  ;;  %v4116_v20 = vld [vmem:[%s8425_s0 + $0x220] sm:$0xff] }
 0x461   : > { %v4729_v55 = vpop.eup %4728  ;;  %4740 = vtanh.f32 %v2008_v11  ;;  %2218 = vmatpush.msrb.mxu0 %v7058_v27  ;;  %2339 = vmatpush.msrb.mxu2 %v4727_v3  ;;  %v1925_v16 = vadd.f32 %v8547_v19, %v8546_v46  ;;  %v1990_v17 = vadd.f32 %v8549_v44, %v8546_v46  ;;  %v4118_v3 = vld [vmem:[%s8425_s0 + $0x230] sm:$0xff] }
 0x462   : > { %v4731_v61 = vpop.eup %4730  ;;  %4742 = vtanh.f32 %v1940_v58  ;;  %2283 = vmatpush.msrb.mxu1 %v7062_v26  ;;  %2404 = vmatpush.msrb.mxu3 %v4729_v55  ;;  %v1996_v26 = vadd.f32 %v6938_v63, %v6998_v22  ;;  %v8544_v63 = vld [vmem:[#allocation11_spill] sm:$0xff]  ;;  %v4115_v58 = vld [vmem:[%s8425_s0 + $0x218] sm:$0xff]  ;;  %v4120_v55 = vld [vmem:[%s8425_s0 + $0x240] sm:$0xff] }
 0x463   : > { %v4733_v34 = vpop.eup %4732  ;;  %4744 = vtanh.f32 %v2005_v47  ;;  %2219 = vmatpush.msrb.mxu0 %v7054_v53  ;;  %2340 = vmatpush.msrb.mxu2 %v4731_v61  ;;  %v8543_v53 = vld [vmem:[#allocation19_spill] sm:$0xff]  ;;  %v1993_v22 = vadd.f32 %v8544_v63, %v6992_v48  ;;  %v4122_v61 = vld [vmem:[%s8425_s0 + $0x250] sm:$0xff] }
 0x464   : > { %v4735_v40 = vpop.eup %4734  ;;  %4746 = vtanh.f32 %v1937_v33  ;;  %2284 = vmatpush.msrb.mxu1 %v7056_v8  ;;  %2405 = vmatpush.msrb.mxu3 %v4733_v34  ;;  %v4117_v47 = vld [vmem:[%s8425_s0 + $0x228] sm:$0xff]  ;;  %v4119_v33 = vld [vmem:[%s8425_s0 + $0x238] sm:$0xff]  ;;  %v4124_v34 = vld [vmem:[%s8425_s0 + $0x260] sm:$0xff] }
 0x465   : > { %v4737_v12 = vpop.eup %4736  ;;  %4748 = vtanh.f32 %v2002_v45  ;;  %2220 = vmatpush.msrb.mxu0 %v7046_v59  ;;  %2341 = vmatpush.msrb.mxu2 %v4735_v40  ;;  %v8545_v59 = vld [vmem:[#allocation21_spill] sm:$0xff]  ;;  %v4121_v45 = vld [vmem:[%s8425_s0 + $0x248] sm:$0xff]  ;;  %v4126_v40 = vld [vmem:[%s8425_s0 + $0x270] sm:$0xff] }
 0x466   : > { %v4739_v29 = vpop.eup %4738  ;;  %4750 = vtanh.f32 %v1934_v13  ;;  %2285 = vmatpush.msrb.mxu1 %v8543_v53  ;;  %2406 = vmatpush.msrb.mxu3 %v4737_v12  ;;  %v4123_v13 = vld [vmem:[%s8425_s0 + $0x258] sm:$0xff] }
 0x467   : > { %v4741_v8 = vpop.eup %4740  ;;  %4752 = vtanh.f32 %v1999_v2  ;;  %2221 = vmatpush.msrb.mxu0 %v8545_v59  ;;  %2342 = vmatpush.msrb.mxu2 %v4739_v29  ;;  %v4125_v2 = vld [vmem:[%s8425_s0 + $0x268] sm:$0xff] }
 0x468   : > { %v4743_v27 = vpop.eup %4742  ;;  %4754 = vtanh.f32 %v1931_v1  ;;  %2286 = vmatpush.msrb.mxu1 %v8548_v24  ;;  %2407 = vmatpush.msrb.mxu3 %v4741_v8  ;;  %v4127_v1 = vld [vmem:[%s8425_s0 + $0x278] sm:$0xff] }
 0x469   : > { %v4745_v18 = vpop.eup %4744  ;;  %4756 = vtanh.f32 %v1996_v26  ;;  %2222 = vmatmul.f32.vlgmr.msrb.gmra.mxu0 %v7165_v56  ;;  %2287 = vmatmul.f32.vlgmr.msrb.gmra.mxu1 %v7165_v56 }
 0x46a   : > { %v4747_v48 = vpop.eup %4746  ;;  %4758 = vtanh.f32 %v1928_v51  ;;  %2343 = vmatpush.msrb.mxu2 %v4743_v27  ;;  %2408 = vmatpush.msrb.mxu3 %v4745_v18 }
 0x46b   : > { %v4749_v14 = vpop.eup %4748  ;;  %4760 = vtanh.f32 %v1993_v22 }
 0x46c   : > { %v4751_v37 = vpop.eup %4750  ;;  %4762 = vtanh.f32 %v1925_v16  ;;  %2344 = vmatpush.msrb.mxu2 %v4747_v48  ;;  %2409 = vmatpush.msrb.mxu3 %v4749_v14 }
 0x46d   : > { %v4753_v9 = vpop.eup %4752  ;;  %4764 = vtanh.f32 %v1990_v17 }
 0x46e   : > { %v4755_v42 = vpop.eup %4754  ;;  %4766 = vtanh.f32 %v1922_v25  ;;  %2345 = vmatpush.msrb.mxu2 %v4751_v37  ;;  %2410 = vmatpush.msrb.mxu3 %v4753_v9 }
 0x46f   : > { %v4757_v10 = vpop.eup %4756  ;;  %4768 = vtanh.f32 %v1987_v23 }
 0x470   : > { %v4759_v43 = vpop.eup %4758  ;;  %4770 = vtanh.f32 %v1919_v28  ;;  %2346 = vmatpush.msrb.mxu2 %v4755_v42  ;;  %2411 = vmatpush.msrb.mxu3 %v4757_v10  ;;  %v7300_v42 = vpop.permute.xlu1 %2193 }
 0x471   : > { %v4761_v38 = vpop.eup %4760  ;;  %4772 = vtanh.f32 %v1984_v35  ;;  %2225 = vmatmul.f32.gmra.mxu0 %v4113_v52  ;;  %2290 = vmatmul.f32.gmra.mxu1 %v4113_v52  ;;  %v7298_v35 = vpop.permute.xlu2 %2188 }
 0x472   : > { %v4763_v5 = vpop.eup %4762  ;;  %4774 = vtanh.f32 %v1916_v39  ;;  %2347 = vmatpush.msrb.mxu2 %v4759_v43  ;;  %2412 = vmatpush.msrb.mxu3 %v4761_v38 }
 0x473   : > { %v4765_v36 = vpop.eup %4764  ;;  %4776 = vtanh.f32 %v1981_v4 }
 0x474   : > { %v4767_v49 = vpop.eup %4766  ;;  %2348 = vmatpush.msrb.mxu2 %v4763_v5  ;;  %2413 = vmatpush.msrb.mxu3 %v4765_v36 }
 0x475   : > { %v4769_v41 = vpop.eup %4768 }
 0x476   : > { %v4771_v50 = vpop.eup %4770  ;;  %2349 = vmatpush.msrb.mxu2 %v4767_v49  ;;  %2414 = vmatpush.msrb.mxu3 %v4769_v41  ;;  %v7324_v49 = vpop.permute.xlu0 %2183 }
 0x477   : > { %v4773_v32 = vpop.eup %4772 }
 0x478   : > { %v4775_v11 = vpop.eup %4774  ;;  %2350 = vmatpush.msrb.mxu2 %v4771_v50  ;;  %2415 = vmatpush.msrb.mxu3 %v4773_v32  ;;  %v7314_v4 = vpop.permute.xlu1 %2178 }
 0x479   : > { %v4777_v54 = vpop.eup %4776  ;;  %2228 = vmatmul.f32.gmra.mxu0 %v4114_v31  ;;  %2293 = vmatmul.f32.gmra.mxu1 %v4114_v31  ;;  %v7312_v7 = vpop.permute.xlu2 %2173 }
 0x47a   : > { %2351 = vmatpush.msrb.mxu2 %v4775_v11  ;;  %2416 = vmatpush.msrb.mxu3 %v4777_v54 }
 0x47b   : > { %2352 = vmatmul.f32.vlgmr.msrb.gmra.mxu2 %v7165_v56  ;;  %2417 = vmatmul.f32.vlgmr.msrb.gmra.mxu3 %v7165_v56 }
 0x480   : > { %v7334_v54 = vpop.permute.xlu1 %2163 }
 0x481   : > { %2231 = vmatmul.f32.gmra.mxu0 %v4115_v58  ;;  %2296 = vmatmul.f32.gmra.mxu1 %v4115_v58  ;;  %v7332_v11 = vpop.permute.xlu2 %2158 }
 0x483   : > { %2355 = vmatmul.f32.gmra.mxu2 %v4113_v52  ;;  %2420 = vmatmul.f32.gmra.mxu3 %v4113_v52 }
 0x489   : > { %2234 = vmatmul.f32.gmra.mxu0 %v4116_v20  ;;  %2299 = vmatmul.f32.gmra.mxu1 %v4116_v20 }
 0x48b   : > { %2358 = vmatmul.f32.gmra.mxu2 %v4114_v31  ;;  %2423 = vmatmul.f32.gmra.mxu3 %v4114_v31 }
 0x491   : > { %2237 = vmatmul.f32.gmra.mxu0 %v4117_v47  ;;  %2302 = vmatmul.f32.gmra.mxu1 %v4117_v47 }
 0x493   : > { %2361 = vmatmul.f32.gmra.mxu2 %v4115_v58  ;;  %2426 = vmatmul.f32.gmra.mxu3 %v4115_v58  ;;  %v7336_v58 = vpop.permute.xlu0 %2168 }
 0x499   : > { %2240 = vmatmul.f32.gmra.mxu0 %v4118_v3  ;;  %2305 = vmatmul.f32.gmra.mxu1 %v4118_v3 }
 0x49b   : > { %2364 = vmatmul.f32.gmra.mxu2 %v4116_v20  ;;  %2429 = vmatmul.f32.gmra.mxu3 %v4116_v20 }
 0x4a1   : > { %2243 = vmatmul.f32.gmra.mxu0 %v4119_v33  ;;  %2308 = vmatmul.f32.gmra.mxu1 %v4119_v33 }
 0x4a3   : > { %2367 = vmatmul.f32.gmra.mxu2 %v4117_v47  ;;  %2432 = vmatmul.f32.gmra.mxu3 %v4117_v47 }
 0x4a9   : > { %2246 = vmatmul.f32.gmra.mxu0 %v4120_v55  ;;  %2311 = vmatmul.f32.gmra.mxu1 %v4120_v55 }
 0x4ab   : > { %2370 = vmatmul.f32.gmra.mxu2 %v4118_v3  ;;  %2435 = vmatmul.f32.gmra.mxu3 %v4118_v3 }
 0x4b1   : > { %2249 = vmatmul.f32.gmra.mxu0 %v4121_v45  ;;  %2314 = vmatmul.f32.gmra.mxu1 %v4121_v45 }
 0x4b3   : > { %2373 = vmatmul.f32.gmra.mxu2 %v4119_v33  ;;  %2438 = vmatmul.f32.gmra.mxu3 %v4119_v33 }
 0x4b9   : > { %2252 = vmatmul.f32.gmra.mxu0 %v4122_v61  ;;  %2317 = vmatmul.f32.gmra.mxu1 %v4122_v61 }
 0x4bb   : > { %2376 = vmatmul.f32.gmra.mxu2 %v4120_v55  ;;  %2441 = vmatmul.f32.gmra.mxu3 %v4120_v55  ;;  %v7342_v55 = vpop.permute.xlu2 %2143 }
 0x4c1   : > { %2255 = vmatmul.f32.gmra.mxu0 %v4123_v13  ;;  %2320 = vmatmul.f32.gmra.mxu1 %v4123_v13 }
 0x4c3   : > { %2379 = vmatmul.f32.gmra.mxu2 %v4121_v45  ;;  %2444 = vmatmul.f32.gmra.mxu3 %v4121_v45  ;;  %v7344_v45 = vpop.permute.xlu1 %2148 }
 0x4c9   : > { %2258 = vmatmul.f32.gmra.mxu0 %v4124_v34  ;;  %2323 = vmatmul.f32.gmra.mxu1 %v4124_v34 }
 0x4cb   : > { %2382 = vmatmul.f32.gmra.mxu2 %v4122_v61  ;;  %2447 = vmatmul.f32.gmra.mxu3 %v4122_v61  ;;  %v7346_v61 = vpop.permute.xlu0 %2153 }
 0x4d1   : > { %2261 = vmatmul.f32.gmra.mxu0 %v4125_v2  ;;  %2326 = vmatmul.f32.gmra.mxu1 %v4125_v2 }
 0x4d3   : > { %2385 = vmatmul.f32.gmra.mxu2 %v4123_v13  ;;  %2450 = vmatmul.f32.gmra.mxu3 %v4123_v13 }
 0x4d9   : > { %2264 = vmatmul.f32.gmra.mxu0 %v4126_v40  ;;  %2329 = vmatmul.f32.gmra.mxu1 %v4126_v40 }
 0x4db   : > { %2388 = vmatmul.f32.gmra.mxu2 %v4124_v34  ;;  %2453 = vmatmul.f32.gmra.mxu3 %v4124_v34 }
 0x4e1   : > { %2267 = vmatmul.f32.gmra.mxu0 %v4127_v1  ;;  %2332 = vmatmul.f32.gmra.mxu1 %v4127_v1 }
 0x4e3   : > { %2391 = vmatmul.f32.gmra.mxu2 %v4125_v2  ;;  %2456 = vmatmul.f32.gmra.mxu3 %v4125_v2 }
 0x4e6   : > { %v7236_v12 = vpop.f32.mrf.mxu0  ;;  %v7238_v26 = vpop.f32.mrf.mxu1 }
 0x4eb   : > { %2394 = vmatmul.f32.gmra.mxu2 %v4126_v40  ;;  %2459 = vmatmul.f32.gmra.mxu3 %v4126_v40 }
 0x4ee   : > { %v7240_v29 = vpop.f32.mrf.mxu0  ;;  %v7242_v51 = vpop.f32.mrf.mxu1 }
 0x4f3   : > { %2397 = vmatmul.f32.gmra.mxu2 %v4127_v1  ;;  %2462 = vmatmul.f32.gmra.mxu3 %v4127_v1  ;;  %v7352_v1 = vpop.permute.xlu2 %2128 }
 0x4f4   : > { %8571 = vst [vmem:[#allocation4_spill] sm:$0xff] %v7352_v1 }
 0x4f6   : > { %v7244_v53 = vpop.f32.mrf.mxu0  ;;  %v7246_v56 = vpop.f32.mrf.mxu1 }
 0x4fe   : > { %v7248_v8 = vpop.f32.mrf.mxu0  ;;  %v7250_v63 = vpop.f32.mrf.mxu1 }
 0x4ff   : > { %v7252_v22 = vpop.f32.mrf.mxu2  ;;  %v7254_v59 = vpop.f32.mrf.mxu3 }
 0x500   : > { %8559 = vst [vmem:[#allocation18_spill] sm:$0xff] %v7252_v22  ;;  %v2224_v22 = vadd.f32 %v7236_v12, %v7352_v1 }
 0x501   : > { %8560 = vst [vmem:[#allocation17_spill] sm:$0xff] %v7254_v59  ;;  %v7354_v59 = vpop.permute.xlu1 %2133 }
 0x502   : > { %8572 = vst [vmem:[#allocation20_spill] sm:$0xff] %v7354_v59  ;;  %4778 = vtanh.f32 %v2224_v22 }
 0x506   : > { %v7256_v27 = vpop.f32.mrf.mxu0  ;;  %v7258_v46 = vpop.f32.mrf.mxu1 }
 0x507   : > { %v7260_v19 = vpop.f32.mrf.mxu2  ;;  %v7262_v16 = vpop.f32.mrf.mxu3 }
 0x508   : > { %8561 = vst [vmem:[#allocation2_spill] sm:$0xff] %v7260_v19 }
 0x509   : > { %8562 = vst [vmem:[#allocation9_spill] sm:$0xff] %v7262_v16 }
 0x50e   : > { %v7264_v24 = vpop.f32.mrf.mxu0  ;;  %v7266_v18 = vpop.f32.mrf.mxu1 }
 0x50f   : > { %v7268_v44 = vpop.f32.mrf.mxu2  ;;  %v7270_v17 = vpop.f32.mrf.mxu3 }
 0x510   : > { %8563 = vst [vmem:[#allocation19_spill] sm:$0xff] %v7268_v44 }
 0x511   : > { %8564 = vst [vmem:[#allocation11_spill] sm:$0xff] %v7270_v17  ;;  %v2289_v17 = vadd.f32 %v7238_v26, %v7352_v1  ;;  %v2233_v1 = vadd.f32 %v7248_v8, %v7342_v55 }
 0x513   : > { %4780 = vtanh.f32 %v2289_v17 }
 0x516   : > { %v7272_v48 = vpop.f32.mrf.mxu0  ;;  %v7274_v6 = vpop.f32.mrf.mxu1 }
 0x517   : > { %v7276_v0 = vpop.f32.mrf.mxu2  ;;  %v7278_v25 = vpop.f32.mrf.mxu3 }
 0x518   : > { %8565 = vst [vmem:[#allocation21_spill] sm:$0xff] %v7276_v0  ;;  %v2227_v0 = vadd.f32 %v7240_v29, %v7354_v59 }
 0x519   : > { %8566 = vst [vmem:[#allocation15_spill] sm:$0xff] %v7278_v25 }
 0x51a   : > { %4782 = vtanh.f32 %v2227_v0 }
 0x51e   : > { %v7280_v14 = vpop.f32.mrf.mxu0  ;;  %v7282_v60 = vpop.f32.mrf.mxu1 }
 0x51f   : > { %v7284_v23 = vpop.f32.mrf.mxu2  ;;  %v7286_v37 = vpop.f32.mrf.mxu3 }
 0x520   : > { %8567 = vst [vmem:[#allocation16_spill] sm:$0xff] %v7284_v23  ;;  %v2292_v23 = vadd.f32 %v7242_v51, %v7354_v59 }
 0x521   : > { %8568 = vst [vmem:[#allocation6_spill] sm:$0xff] %v7286_v37  ;;  %v7366_v37 = vpop.permute.xlu0 %2138 }
 0x522   : > { %v2230_v12 = vadd.f32 %v7244_v53, %v7366_v37  ;;  %v2295_v26 = vadd.f32 %v7246_v56, %v7366_v37  ;;  %4784 = vtanh.f32 %v2292_v23  ;;  %v7383_v56 = vpop.eup %4778 }
 0x523   : > { %v7386_v0 = vpop.eup %4780 }
 0x524   : > { %4786 = vtanh.f32 %v2230_v12  ;;  %v7389_v12 = vpop.eup %4782 }
 0x525   : > { %4788 = vtanh.f32 %v2295_v26 }
 0x526   : > { %v7290_v30 = vpop.f32.mrf.mxu0  ;;  %v7292_v28 = vpop.f32.mrf.mxu1  ;;  %4790 = vtanh.f32 %v2233_v1 }
 0x527   : > { %v7294_v9 = vpop.f32.mrf.mxu2  ;;  %v7296_v15 = vpop.f32.mrf.mxu3  ;;  %v2248_v59 = vadd.f32 %v7290_v30, %v7336_v58 }
 0x528   : > { %8569 = vst [vmem:[#allocation5_spill] sm:$0xff] %v7294_v9 }
 0x529   : > { %8570 = vst [vmem:[#allocation10_spill] sm:$0xff] %v7296_v15 }
 0x52e   : > { %v7304_v57 = vpop.f32.mrf.mxu0  ;;  %v7306_v39 = vpop.f32.mrf.mxu1 }
 0x52f   : > { %v7308_v52 = vpop.f32.mrf.mxu2  ;;  %v7310_v10 = vpop.f32.mrf.mxu3 }
 0x536   : > { %v7316_v43 = vpop.f32.mrf.mxu0  ;;  %v7318_v38 = vpop.f32.mrf.mxu1 }
 0x537   : > { %v7320_v5 = vpop.f32.mrf.mxu2  ;;  %v7322_v36 = vpop.f32.mrf.mxu3 }
 0x53e   : > { %v2256_v41 = vpop.f32.mrf.mxu0  ;;  %v7326_v50 = vpop.f32.mrf.mxu1 }
 0x53f   : > { %v7328_v31 = vpop.f32.mrf.mxu2  ;;  %v7330_v32 = vpop.f32.mrf.mxu3 }
 0x546   : > { %v2259_v20 = vpop.f32.mrf.mxu0  ;;  %v2324_v47 = vpop.f32.mrf.mxu1 }
 0x547   : > { %v7338_v3 = vpop.f32.mrf.mxu2  ;;  %v7340_v33 = vpop.f32.mrf.mxu3  ;;  %v2260_v26 = vadd.f32 %v2259_v20, %v7298_v35  ;;  %v2325_v1 = vadd.f32 %v2324_v47, %v7298_v35 }
 0x54e   : > { %v2262_v13 = vpop.f32.mrf.mxu0  ;;  %v2327_v34 = vpop.f32.mrf.mxu1 }
 0x54f   : > { %v7348_v2 = vpop.f32.mrf.mxu2  ;;  %v7350_v40 = vpop.f32.mrf.mxu3  ;;  %v2263_v23 = vadd.f32 %v2262_v13, %v7300_v42  ;;  %v2257_v13 = vadd.f32 %v2256_v41, %v7324_v49  ;;  %v2319_v41 = vadd.f32 %v7318_v38, %v7314_v4 }
 0x556   : > { %v2265_v16 = vpop.f32.mrf.mxu0  ;;  %v2330_v19 = vpop.f32.mrf.mxu1 }
 0x557   : > { %v7360_v44 = vpop.f32.mrf.mxu2  ;;  %v7362_v25 = vpop.f32.mrf.mxu3  ;;  %v2266_v9 = vadd.f32 %v2265_v16, %v7302_v62  ;;  %v2331_v8 = vadd.f32 %v2330_v19, %v7302_v62  ;;  %v2328_v16 = vadd.f32 %v2327_v34, %v7300_v42  ;;  %v2322_v34 = vadd.f32 %v7326_v50, %v7324_v49 }
 0x558   : > { %v2251_v50 = vadd.f32 %v7304_v57, %v7312_v7 }
 0x55e   : > { %v2268_v29 = vpop.f32.mrf.mxu0  ;;  %v2333_v15 = vpop.f32.mrf.mxu1 }
 0x55f   : > { %v2269_v51 = vadd.f32 %v2268_v29, %v7288_v21  ;;  %v2334_v22 = vadd.f32 %v2333_v15, %v7288_v21  ;;  %v7379_v53 = vpop.f32.mrf.mxu2  ;;  %v7381_v17 = vpop.f32.mrf.mxu3 }
 0x560   : > { %v7392_v15 = vpop.eup %4784 }
 0x561   : > { %4792 = vtanh.f32 %v2269_v51  ;;  %v7395_v29 = vpop.eup %4786 }
 0x562   : > { %4794 = vtanh.f32 %v2334_v22  ;;  %v7398_v19 = vpop.eup %4788 }
 0x563   : > { %4796 = vtanh.f32 %v2266_v9  ;;  %v7401_v51 = vpop.eup %4790  ;;  %v2254_v9 = vadd.f32 %v7316_v43, %v7314_v4  ;;  %v2316_v43 = vadd.f32 %v7306_v39, %v7312_v7 }
 0x564   : > { %4798 = vtanh.f32 %v2331_v8 }
 0x565   : > { %4800 = vtanh.f32 %v2263_v23 }
 0x566   : > { %4802 = vtanh.f32 %v2328_v16 }
 0x567   : > { %v4793_v22 = vpop.eup %4792  ;;  %4804 = vtanh.f32 %v2260_v26  ;;  %v7407_v20 = vpop.f32.mrf.mxu2 }
 0x568   : > { %v7409_v47 = vpop.f32.mrf.mxu3  ;;  %v4795_v8 = vpop.eup %4794  ;;  %4806 = vtanh.f32 %v2325_v1  ;;  %2644 = vmatpush.msra.mxu0 %v4793_v22  ;;  %v2313_v1 = vadd.f32 %v7292_v28, %v7336_v58  ;;  %v2242_v22 = vadd.f32 %v7272_v48, %v7332_v11  ;;  %v2304_v48 = vadd.f32 %v7266_v18, %v7346_v61 }
 0x569   : > { %v4797_v23 = vpop.eup %4796  ;;  %4808 = vtanh.f32 %v2257_v13  ;;  %2709 = vmatpush.msra.mxu1 %v4795_v8  ;;  %v2245_v13 = vadd.f32 %v7280_v14, %v7334_v54  ;;  %v2307_v14 = vadd.f32 %v7274_v6, %v7332_v11 }
 0x56a   : > { %v4799_v16 = vpop.eup %4798  ;;  %4810 = vtanh.f32 %v2322_v34  ;;  %2645 = vmatpush.msra.mxu0 %v4797_v23  ;;  %v2310_v34 = vadd.f32 %v7282_v60, %v7334_v54  ;;  %v2239_v60 = vadd.f32 %v7264_v24, %v7346_v61 }
 0x56b   : > { %v4801_v26 = vpop.eup %4800  ;;  %4812 = vtanh.f32 %v2254_v9  ;;  %2710 = vmatpush.msra.mxu1 %v4799_v16  ;;  %v2301_v16 = vadd.f32 %v7258_v46, %v7344_v45 }
 0x56c   : > { %v4803_v38 = vpop.eup %4802  ;;  %4814 = vtanh.f32 %v2319_v41  ;;  %2646 = vmatpush.msra.mxu0 %v4801_v26 }
 0x56d   : > { %v4805_v57 = vpop.eup %4804  ;;  %4816 = vtanh.f32 %v2251_v50  ;;  %2711 = vmatpush.msra.mxu1 %v4803_v38  ;;  %v2236_v50 = vadd.f32 %v7256_v27, %v7344_v45 }
 0x56e   : > { %v4807_v39 = vpop.eup %4806  ;;  %4818 = vtanh.f32 %v2316_v43  ;;  %2647 = vmatpush.msra.mxu0 %v4805_v57  ;;  %v2298_v43 = vadd.f32 %v7250_v63, %v7342_v55 }
 0x56f   : > { %v4809_v30 = vpop.eup %4808  ;;  %4820 = vtanh.f32 %v2248_v59  ;;  %v2395_v28 = vpop.f32.mrf.mxu2  ;;  %2712 = vmatpush.msra.mxu1 %v4807_v39 }
 0x570   : > { %v2460_v9 = vpop.f32.mrf.mxu3  ;;  %v4811_v8 = vpop.eup %4810  ;;  %4822 = vtanh.f32 %v2313_v1  ;;  %2648 = vmatpush.msra.mxu0 %v4809_v30  ;;  %v2396_v46 = vadd.f32 %v2395_v28, %v7302_v62  ;;  %v2393_v30 = vadd.f32 %v7407_v20, %v7300_v42  ;;  %v2458_v28 = vadd.f32 %v7409_v47, %v7300_v42 }
 0x571   : > { %v4813_v41 = vpop.eup %4812  ;;  %4824 = vtanh.f32 %v2245_v13  ;;  %2713 = vmatpush.msra.mxu1 %v4811_v8  ;;  %v2461_v39 = vadd.f32 %v2460_v9, %v7302_v62  ;;  %v2455_v9 = vadd.f32 %v7381_v17, %v7298_v35  ;;  %v2452_v47 = vadd.f32 %v7362_v25, %v7324_v49 }
 0x572   : > { %v4815_v23 = vpop.eup %4814  ;;  %4826 = vtanh.f32 %v2310_v34  ;;  %2649 = vmatpush.msra.mxu0 %v4813_v41  ;;  %v2384_v41 = vadd.f32 %v7348_v2, %v7314_v4  ;;  %v2449_v17 = vadd.f32 %v7350_v40, %v7314_v4  ;;  %v2381_v25 = vadd.f32 %v7338_v3, %v7312_v7 }
 0x573   : > { %v4817_v59 = vpop.eup %4816  ;;  %4828 = vtanh.f32 %v2242_v22  ;;  %2714 = vmatpush.msra.mxu1 %v4815_v23  ;;  %v2446_v2 = vadd.f32 %v7340_v33, %v7312_v7  ;;  %v2378_v40 = vadd.f32 %v7328_v31, %v7336_v58  ;;  %v7475_v7 = vld [vmem:[%s8425_s0 + $0x280] sm:$0xff]  ;;  %v2375_v31 = vadd.f32 %v7320_v5, %v7334_v54  ;;  %v8575_v23 = vld [vmem:[#allocation16_spill] sm:$0xff] }
 0x574   : > { %v4819_v6 = vpop.eup %4818  ;;  %4830 = vtanh.f32 %v2307_v14  ;;  %2650 = vmatpush.msra.mxu0 %v4817_v59  ;;  %v2387_v14 = vadd.f32 %v7360_v44, %v7324_v49 }
 0x575   : > { %v4821_v24 = vpop.eup %4820  ;;  %4832 = vtanh.f32 %v2239_v60  ;;  %2715 = vmatpush.msra.mxu1 %v4819_v6  ;;  %v8577_v6 = vld [vmem:[#allocation21_spill] sm:$0xff] }
 0x576   : > { %v4823_v18 = vpop.eup %4822  ;;  %4834 = vtanh.f32 %v2304_v48  ;;  %2651 = vmatpush.msra.mxu0 %v4821_v24  ;;  %v8576_v48 = vld [vmem:[#allocation6_spill] sm:$0xff] }
 0x577   : > { %v4825_v26 = vpop.eup %4824  ;;  %4836 = vtanh.f32 %v2236_v50  ;;  %v2398_v27 = vpop.f32.mrf.mxu2  ;;  %2716 = vmatpush.msra.mxu1 %v4823_v18  ;;  %v2431_v59 = vadd.f32 %v8576_v48, %v7344_v45  ;;  %v7500_v50 = vld [vmem:[%s8425_s0 + $0x288] sm:$0xff] }
 0x578   : > { %v2463_v38 = vpop.f32.mrf.mxu3  ;;  %v4827_v1 = vpop.eup %4826  ;;  %4838 = vtanh.f32 %v2301_v16  ;;  %v2399_v57 = vadd.f32 %v2398_v27, %v7288_v21  ;;  %2652 = vmatpush.msra.mxu0 %v4825_v26  ;;  %v2363_v16 = vadd.f32 %v8577_v6, %v7342_v55  ;;  %v8579_v26 = vld [vmem:[#allocation19_spill] sm:$0xff] }
 0x579   : > { %v2464_v13 = vadd.f32 %v2463_v38, %v7288_v21  ;;  %v4829_v63 = vpop.eup %4828  ;;  %4840 = vtanh.f32 %v2298_v43  ;;  %2717 = vmatpush.msra.mxu1 %v4827_v1  ;;  %v2390_v21 = vadd.f32 %v7379_v53, %v7298_v35  ;;  %v8578_v43 = vld [vmem:[#allocation15_spill] sm:$0xff]  ;;  %v2360_v27 = vadd.f32 %v8579_v26, %v7366_v37 }
 0x57a   : > { %v4831_v34 = vpop.eup %4830  ;;  %4842 = vtanh.f32 %v2399_v57  ;;  %2653 = vmatpush.msra.mxu0 %v4829_v63  ;;  %v2428_v18 = vadd.f32 %v8578_v43, %v7342_v55  ;;  %v8580_v1 = vld [vmem:[#allocation11_spill] sm:$0xff]  ;;  %v8581_v55 = vld [vmem:[#allocation20_spill] sm:$0xff] }
 0x57b   : > { %v4833_v22 = vpop.eup %4832  ;;  %4844 = vtanh.f32 %v2464_v13  ;;  %2718 = vmatpush.msra.mxu1 %v4831_v34  ;;  %v8582_v13 = vld [vmem:[#allocation2_spill] sm:$0xff]  ;;  %v8583_v34 = vld [vmem:[#allocation9_spill] sm:$0xff] }
 0x57c   : > { %v4835_v8 = vpop.eup %4834  ;;  %4846 = vtanh.f32 %v2396_v46  ;;  %2654 = vmatpush.msra.mxu0 %v4833_v22  ;;  %v2425_v46 = vadd.f32 %v8580_v1, %v7366_v37  ;;  %v2357_v63 = vadd.f32 %v8582_v13, %v8581_v55  ;;  %v7622_v13 = vpop.permute.xlu0 %2641 }
 0x57d   : > { %v4837_v62 = vpop.eup %4836  ;;  %4848 = vtanh.f32 %v2461_v39  ;;  %2719 = vmatpush.msra.mxu1 %v4835_v8  ;;  %v8585_v8 = vld [vmem:[#allocation18_spill] sm:$0xff] }
 0x57e   : > { %v4839_v20 = vpop.eup %4838  ;;  %4850 = vtanh.f32 %v2393_v30  ;;  %2655 = vmatpush.msra.mxu0 %v4837_v62  ;;  %v2422_v30 = vadd.f32 %v8583_v34, %v8581_v55  ;;  %v8586_v62 = vld [vmem:[#allocation17_spill] sm:$0xff] }
 0x57f   : > { %v4841_v42 = vpop.eup %4840  ;;  %4852 = vtanh.f32 %v2458_v28  ;;  %2720 = vmatpush.msra.mxu1 %v4839_v20  ;;  %v8584_v28 = vld [vmem:[#allocation4_spill] sm:$0xff] }
 0x580   : > { %v4843_v53 = vpop.eup %4842  ;;  %4854 = vtanh.f32 %v2390_v21  ;;  %2656 = vmatpush.msra.mxu0 %v7401_v51  ;;  %v2354_v37 = vadd.f32 %v8585_v8, %v8584_v28  ;;  %v4146_v20 = vld [vmem:[%s8425_s0 + $0x290] sm:$0xff] }
 0x581   : > { %v4845_v35 = vpop.eup %4844  ;;  %4856 = vtanh.f32 %v2455_v9  ;;  %2721 = vmatpush.msra.mxu1 %v4841_v42  ;;  %2774 = vmatpush.msra.mxu2 %v4843_v53  ;;  %v2419_v9 = vadd.f32 %v8586_v62, %v8584_v28 }
 0x582   : > { %v4847_v44 = vpop.eup %4846  ;;  %4858 = vtanh.f32 %v2387_v14  ;;  %2839 = vmatpush.msra.mxu3 %v4845_v35  ;;  %2657 = vmatpush.msra.mxu0 %v7395_v29  ;;  %v2443_v29 = vadd.f32 %v7330_v32, %v7336_v58  ;;  %v2440_v32 = vadd.f32 %v7322_v36, %v7334_v54  ;;  %v8573_v54 = vld [vmem:[#allocation5_spill] sm:$0xff] }
 0x583   : > { %v4849_v49 = vpop.eup %4848  ;;  %4860 = vtanh.f32 %v2452_v47  ;;  %2722 = vmatpush.msra.mxu1 %v7398_v19  ;;  %2775 = vmatpush.msra.mxu2 %v4847_v44 }
 0x584   : > { %v4851_v4 = vpop.eup %4850  ;;  %4862 = vtanh.f32 %v2384_v41  ;;  %2840 = vmatpush.msra.mxu3 %v4849_v49  ;;  %2658 = vmatpush.msra.mxu0 %v7389_v12 }
 0x585   : > { %v4853_v3 = vpop.eup %4852  ;;  %4864 = vtanh.f32 %v2449_v17  ;;  %2723 = vmatpush.msra.mxu1 %v7392_v15  ;;  %2776 = vmatpush.msra.mxu2 %v4851_v4  ;;  %v2372_v15 = vadd.f32 %v7308_v52, %v7332_v11  ;;  %v8574_v52 = vld [vmem:[#allocation10_spill] sm:$0xff] }
 0x586   : > { %v4855_v33 = vpop.eup %4854  ;;  %4866 = vtanh.f32 %v2381_v25  ;;  %2841 = vmatpush.msra.mxu3 %v4853_v3  ;;  %2659 = vmatpush.msra.mxu0 %v7383_v56  ;;  %v2437_v56 = vadd.f32 %v7310_v10, %v7332_v11  ;;  %v2434_v51 = vadd.f32 %v8574_v52, %v7346_v61  ;;  %v2366_v10 = vadd.f32 %v8575_v23, %v7344_v45  ;;  %v4147_v25 = vld [vmem:[%s8425_s0 + $0x298] sm:$0xff]  ;;  %v4148_v4 = vld [vmem:[%s8425_s0 + $0x2a0] sm:$0xff]  ;;  %v4150_v3 = vld [vmem:[%s8425_s0 + $0x2b0] sm:$0xff] }
 0x587   : > { %v4857_v12 = vpop.eup %4856  ;;  %4868 = vtanh.f32 %v2446_v2  ;;  %2724 = vmatpush.msra.mxu1 %v7386_v0  ;;  %2777 = vmatpush.msra.mxu2 %v4855_v33  ;;  %v2369_v0 = vadd.f32 %v8573_v54, %v7346_v61  ;;  %v4153_v33 = vld [vmem:[%s8425_s0 + $0x2c8] sm:$0xff] }
 0x588   : > { %v4859_v58 = vpop.eup %4858  ;;  %4870 = vtanh.f32 %v2378_v40  ;;  %2842 = vmatpush.msra.mxu3 %v4857_v12  ;;  %2660 = vmatmul.f32.vlgmr.msra.gmra.mxu0 %v7475_v7  ;;  %v4149_v40 = vld [vmem:[%s8425_s0 + $0x2a8] sm:$0xff]  ;;  %v4155_v12 = vld [vmem:[%s8425_s0 + $0x2d8] sm:$0xff] }
 0x589   : > { %v4861_v5 = vpop.eup %4860  ;;  %4872 = vtanh.f32 %v2443_v29  ;;  %2725 = vmatmul.f32.vlgmr.msra.gmra.mxu1 %v7475_v7  ;;  %2778 = vmatpush.msra.mxu2 %v4859_v58  ;;  %v4151_v29 = vld [vmem:[%s8425_s0 + $0x2b8] sm:$0xff]  ;;  %v4157_v58 = vld [vmem:[%s8425_s0 + $0x2e8] sm:$0xff] }
 0x58a   : > { %v4863_v36 = vpop.eup %4862  ;;  %4874 = vtanh.f32 %v2375_v31  ;;  %2843 = vmatpush.msra.mxu3 %v4861_v5  ;;  %v4154_v31 = vld [vmem:[%s8425_s0 + $0x2d0] sm:$0xff]  ;;  %v4159_v5 = vld [vmem:[%s8425_s0 + $0x2f8] sm:$0xff] }
 0x58b   : > { %v4865_v19 = vpop.eup %4864  ;;  %4876 = vtanh.f32 %v2440_v32  ;;  %2779 = vmatpush.msra.mxu2 %v4863_v36  ;;  %v4156_v32 = vld [vmem:[%s8425_s0 + $0x2e0] sm:$0xff] }
 0x58c   : > { %v4867_v60 = vpop.eup %4866  ;;  %4878 = vtanh.f32 %v2372_v15  ;;  %2844 = vmatpush.msra.mxu3 %v4865_v19  ;;  %v4158_v15 = vld [vmem:[%s8425_s0 + $0x2f0] sm:$0xff] }
 0x58d   : > { %v4869_v11 = vpop.eup %4868  ;;  %4880 = vtanh.f32 %v2437_v56  ;;  %2780 = vmatpush.msra.mxu2 %v4867_v60 }
 0x58e   : > { %v4871_v61 = vpop.eup %4870  ;;  %4882 = vtanh.f32 %v2369_v0  ;;  %2845 = vmatpush.msra.mxu3 %v4869_v11 }
 0x58f   : > { %v4873_v24 = vpop.eup %4872  ;;  %4884 = vtanh.f32 %v2434_v51  ;;  %2781 = vmatpush.msra.mxu2 %v4871_v61 }
 0x590   : > { %v4875_v45 = vpop.eup %4874  ;;  %4886 = vtanh.f32 %v2366_v10  ;;  %2846 = vmatpush.msra.mxu3 %v4873_v24  ;;  %2663 = vmatmul.f32.gmra.mxu0 %v7500_v50 }
 0x591   : > { %v4877_v38 = vpop.eup %4876  ;;  %4888 = vtanh.f32 %v2431_v59  ;;  %2728 = vmatmul.f32.gmra.mxu1 %v7500_v50  ;;  %2782 = vmatpush.msra.mxu2 %v4875_v45 }
 0x592   : > { %v4879_v57 = vpop.eup %4878  ;;  %4890 = vtanh.f32 %v2363_v16  ;;  %2847 = vmatpush.msra.mxu3 %v4877_v38 }
 0x593   : > { %v4881_v39 = vpop.eup %4880  ;;  %4892 = vtanh.f32 %v2428_v18  ;;  %2783 = vmatpush.msra.mxu2 %v4879_v57 }
 0x594   : > { %v4883_v22 = vpop.eup %4882  ;;  %4894 = vtanh.f32 %v2360_v27  ;;  %2848 = vmatpush.msra.mxu3 %v4881_v39 }
 0x595   : > { %v4885_v21 = vpop.eup %4884  ;;  %4896 = vtanh.f32 %v2425_v46  ;;  %2784 = vmatpush.msra.mxu2 %v4883_v22  ;;  %v7632_v22 = vpop.permute.xlu0 %2626 }
 0x596   : > { %v4887_v14 = vpop.eup %4886  ;;  %4898 = vtanh.f32 %v2357_v63  ;;  %2849 = vmatpush.msra.mxu3 %v4885_v21 }
 0x597   : > { %v4889_v42 = vpop.eup %4888  ;;  %4900 = vtanh.f32 %v2422_v30  ;;  %2785 = vmatpush.msra.mxu2 %v4887_v14 }
 0x598   : > { %v4891_v47 = vpop.eup %4890  ;;  %4902 = vtanh.f32 %v2354_v37  ;;  %2850 = vmatpush.msra.mxu3 %v4889_v42  ;;  %2666 = vmatmul.f32.gmra.mxu0 %v4146_v20 }
 0x599   : > { %v4893_v53 = vpop.eup %4892  ;;  %4904 = vtanh.f32 %v2419_v9  ;;  %2731 = vmatmul.f32.gmra.mxu1 %v4146_v20  ;;  %2786 = vmatpush.msra.mxu2 %v4891_v47 }
 0x59a   : > { %v4895_v41 = vpop.eup %4894  ;;  %2851 = vmatpush.msra.mxu3 %v4893_v53 }
 0x59b   : > { %v4897_v35 = vpop.eup %4896  ;;  %2787 = vmatpush.msra.mxu2 %v4895_v41 }
 0x59c   : > { %v4899_v17 = vpop.eup %4898  ;;  %2852 = vmatpush.msra.mxu3 %v4897_v35 }
 0x59d   : > { %v4901_v44 = vpop.eup %4900  ;;  %2788 = vmatpush.msra.mxu2 %v4899_v17  ;;  %v7638_v62 = vpop.permute.xlu0 %2611 }
 0x59e   : > { %v4903_v49 = vpop.eup %4902  ;;  %2853 = vmatpush.msra.mxu3 %v4901_v44 }
 0x59f   : > { %v4905_v2 = vpop.eup %4904  ;;  %2789 = vmatpush.msra.mxu2 %v4903_v49 }
 0x5a0   : > { %2854 = vmatpush.msra.mxu3 %v4905_v2  ;;  %2669 = vmatmul.f32.gmra.mxu0 %v4147_v25  ;;  %v7654_v2 = vpop.permute.xlu1 %2636 }
 0x5a1   : > { %2734 = vmatmul.f32.gmra.mxu1 %v4147_v25  ;;  %2790 = vmatmul.f32.vlgmr.msra.gmra.mxu2 %v7475_v7 }
 0x5a2   : > { %2855 = vmatmul.f32.vlgmr.msra.gmra.mxu3 %v7475_v7  ;;  %v4152_v7 = vld [vmem:[%s8425_s0 + $0x2c0] sm:$0xff] }
 0x5a5   : > { %v7648_v35 = vpop.permute.xlu0 %2596 }
 0x5a8   : > { %2672 = vmatmul.f32.gmra.mxu0 %v4148_v4 }
 0x5a9   : > { %2737 = vmatmul.f32.gmra.mxu1 %v4148_v4  ;;  %2793 = vmatmul.f32.gmra.mxu2 %v7500_v50 }
 0x5aa   : > { %2858 = vmatmul.f32.gmra.mxu3 %v7500_v50 }
 0x5b0   : > { %2675 = vmatmul.f32.gmra.mxu0 %v4149_v40 }
 0x5b1   : > { %2740 = vmatmul.f32.gmra.mxu1 %v4149_v40  ;;  %2796 = vmatmul.f32.gmra.mxu2 %v4146_v20 }
 0x5b2   : > { %2861 = vmatmul.f32.gmra.mxu3 %v4146_v20 }
 0x5b8   : > { %2678 = vmatmul.f32.gmra.mxu0 %v4150_v3 }
 0x5b9   : > { %2743 = vmatmul.f32.gmra.mxu1 %v4150_v3  ;;  %2799 = vmatmul.f32.gmra.mxu2 %v4147_v25 }
 0x5ba   : > { %2864 = vmatmul.f32.gmra.mxu3 %v4147_v25 }
 0x5c0   : > { %2681 = vmatmul.f32.gmra.mxu0 %v4151_v29 }
 0x5c1   : > { %2746 = vmatmul.f32.gmra.mxu1 %v4151_v29  ;;  %2802 = vmatmul.f32.gmra.mxu2 %v4148_v4 }
 0x5c2   : > { %2867 = vmatmul.f32.gmra.mxu3 %v4148_v4 }
 0x5c8   : > { %2684 = vmatmul.f32.gmra.mxu0 %v4152_v7 }
 0x5c9   : > { %2749 = vmatmul.f32.gmra.mxu1 %v4152_v7  ;;  %2805 = vmatmul.f32.gmra.mxu2 %v4149_v40 }
 0x5ca   : > { %2870 = vmatmul.f32.gmra.mxu3 %v4149_v40  ;;  %v7656_v40 = vpop.permute.xlu2 %2631 }
 0x5d0   : > { %2687 = vmatmul.f32.gmra.mxu0 %v4153_v33 }
 0x5d1   : > { %2752 = vmatmul.f32.gmra.mxu1 %v4153_v33  ;;  %2808 = vmatmul.f32.gmra.mxu2 %v4150_v3 }
 0x5d2   : > { %2873 = vmatmul.f32.gmra.mxu3 %v4150_v3  ;;  %v7658_v3 = vpop.permute.xlu0 %2581 }
 0x5d8   : > { %2690 = vmatmul.f32.gmra.mxu0 %v4154_v31 }
 0x5d9   : > { %2755 = vmatmul.f32.gmra.mxu1 %v4154_v31  ;;  %2811 = vmatmul.f32.gmra.mxu2 %v4151_v29 }
 0x5da   : > { %2876 = vmatmul.f32.gmra.mxu3 %v4151_v29 }
 0x5e0   : > { %2693 = vmatmul.f32.gmra.mxu0 %v4155_v12 }
 0x5e1   : > { %2758 = vmatmul.f32.gmra.mxu1 %v4155_v12  ;;  %2814 = vmatmul.f32.gmra.mxu2 %v4152_v7 }
 0x5e2   : > { %2879 = vmatmul.f32.gmra.mxu3 %v4152_v7 }
 0x5e8   : > { %2696 = vmatmul.f32.gmra.mxu0 %v4156_v32 }
 0x5e9   : > { %2761 = vmatmul.f32.gmra.mxu1 %v4156_v32  ;;  %2817 = vmatmul.f32.gmra.mxu2 %v4153_v33 }
 0x5ea   : > { %2882 = vmatmul.f32.gmra.mxu3 %v4153_v33 }
 0x5f0   : > { %2699 = vmatmul.f32.gmra.mxu0 %v4157_v58 }
 0x5f1   : > { %2764 = vmatmul.f32.gmra.mxu1 %v4157_v58  ;;  %2820 = vmatmul.f32.gmra.mxu2 %v4154_v31 }
 0x5f2   : > { %2885 = vmatmul.f32.gmra.mxu3 %v4154_v31 }
 0x5f8   : > { %2702 = vmatmul.f32.gmra.mxu0 %v4158_v15 }
 0x5f9   : > { %2767 = vmatmul.f32.gmra.mxu1 %v4158_v15  ;;  %2823 = vmatmul.f32.gmra.mxu2 %v4155_v12 }
 0x5fa   : > { %2888 = vmatmul.f32.gmra.mxu3 %v4155_v12  ;;  %v7664_v12 = vpop.permute.xlu1 %2621 }
 0x600   : > { %2705 = vmatmul.f32.gmra.mxu0 %v4159_v5 }
 0x601   : > { %2770 = vmatmul.f32.gmra.mxu1 %v4159_v5  ;;  %2826 = vmatmul.f32.gmra.mxu2 %v4156_v32 }
 0x602   : > { %2891 = vmatmul.f32.gmra.mxu3 %v4156_v32  ;;  %v7666_v32 = vpop.permute.xlu2 %2616 }
 0x605   : > { %v7566_v56 = vpop.f32.mrf.mxu0 }
 0x606   : > { %v7568_v36 = vpop.f32.mrf.mxu1 }
 0x609   : > { %2829 = vmatmul.f32.gmra.mxu2 %v4157_v58 }
 0x60a   : > { %2894 = vmatmul.f32.gmra.mxu3 %v4157_v58  ;;  %v7668_v58 = vpop.permute.xlu0 %2566 }
 0x60b   : > { %8596 = vst [vmem:[#allocation6_spill] sm:$0xff] %v7668_v58 }
 0x60d   : > { %v7570_v54 = vpop.f32.mrf.mxu0 }
 0x60e   : > { %v7572_v0 = vpop.f32.mrf.mxu1 }
 0x611   : > { %2832 = vmatmul.f32.gmra.mxu2 %v4158_v15 }
 0x612   : > { %2897 = vmatmul.f32.gmra.mxu3 %v4158_v15  ;;  %v2662_v15 = vadd.f32 %v7566_v56, %v7668_v58 }
 0x614   : > { %4906 = vtanh.f32 %v2662_v15 }
 0x615   : > { %v7574_v19 = vpop.f32.mrf.mxu0 }
 0x616   : > { %v7576_v52 = vpop.f32.mrf.mxu1 }
 0x619   : > { %2835 = vmatmul.f32.gmra.mxu2 %v4159_v5 }
 0x61a   : > { %2900 = vmatmul.f32.gmra.mxu3 %v4159_v5  ;;  %v2727_v5 = vadd.f32 %v7568_v36, %v7668_v58  ;;  %v7683_v36 = vpop.permute.xlu1 %2606  ;;  %v7692_v15 = vpop.eup %4906 }
 0x61c   : > { %4908 = vtanh.f32 %v2727_v5 }
 0x61d   : > { %v7578_v51 = vpop.f32.mrf.mxu0 }
 0x61e   : > { %v7580_v60 = vpop.f32.mrf.mxu1 }
 0x624   : > { %v7582_v23 = vpop.f32.mrf.mxu2 }
 0x625   : > { %8587 = vst [vmem:[#allocation3_spill] sm:$0xff] %v7582_v23  ;;  %v7584_v10 = vpop.f32.mrf.mxu3  ;;  %v7586_v11 = vpop.f32.mrf.mxu0 }
 0x626   : > { %8588 = vst [vmem:[#allocation12_spill] sm:$0xff] %v7584_v10  ;;  %v7588_v48 = vpop.f32.mrf.mxu1 }
 0x62c   : > { %v7590_v59 = vpop.f32.mrf.mxu2 }
 0x62d   : > { %8589 = vst [vmem:[#allocation8_spill] sm:$0xff] %v7590_v59  ;;  %v7592_v50 = vpop.f32.mrf.mxu3  ;;  %v7594_v61 = vpop.f32.mrf.mxu0 }
 0x62e   : > { %8590 = vst [vmem:[#allocation7_spill] sm:$0xff] %v7592_v50  ;;  %v7596_v6 = vpop.f32.mrf.mxu1 }
 0x634   : > { %v7598_v16 = vpop.f32.mrf.mxu2 }
 0x635   : > { %8591 = vst [vmem:[#allocation13_spill] sm:$0xff] %v7598_v16  ;;  %v7600_v24 = vpop.f32.mrf.mxu3  ;;  %v7602_v43 = vpop.f32.mrf.mxu0 }
 0x636   : > { %8592 = vst [vmem:[#allocation14_spill] sm:$0xff] %v7600_v24  ;;  %v7604_v18 = vpop.f32.mrf.mxu1 }
 0x63c   : > { %v7606_v45 = vpop.f32.mrf.mxu2 }
 0x63d   : > { %8593 = vst [vmem:[#allocation5_spill] sm:$0xff] %v7606_v45  ;;  %v7608_v26 = vpop.f32.mrf.mxu3  ;;  %v7610_v27 = vpop.f32.mrf.mxu0 }
 0x63e   : > { %8594 = vst [vmem:[#allocation10_spill] sm:$0xff] %v7608_v26  ;;  %v7612_v38 = vpop.f32.mrf.mxu1 }
 0x644   : > { %v7614_v1 = vpop.f32.mrf.mxu2 }
 0x645   : > { %v7616_v46 = vpop.f32.mrf.mxu3  ;;  %v7618_v57 = vpop.f32.mrf.mxu0 }
 0x646   : > { %8595 = vst [vmem:[#allocation16_spill] sm:$0xff] %v7616_v46  ;;  %v7620_v55 = vpop.f32.mrf.mxu1 }
 0x64c   : > { %v7624_v63 = vpop.f32.mrf.mxu2 }
 0x64d   : > { %v7626_v39 = vpop.f32.mrf.mxu3  ;;  %v7628_v34 = vpop.f32.mrf.mxu0 }
 0x64e   : > { %v7630_v30 = vpop.f32.mrf.mxu1 }
 0x654   : > { %v7634_v28 = vpop.f32.mrf.mxu2 }
 0x655   : > { %v7636_v8 = vpop.f32.mrf.mxu3  ;;  %v2691_v37 = vpop.f32.mrf.mxu0 }
 0x656   : > { %v2756_v21 = vpop.f32.mrf.mxu1 }
 0x65c   : > { %v7640_v9 = vpop.f32.mrf.mxu2 }
 0x65d   : > { %v7642_v20 = vpop.f32.mrf.mxu3  ;;  %v2694_v14 = vpop.f32.mrf.mxu0 }
 0x65e   : > { %v2759_v42 = vpop.f32.mrf.mxu1 }
 0x664   : > { %v7644_v47 = vpop.f32.mrf.mxu2 }
 0x665   : > { %v7646_v53 = vpop.f32.mrf.mxu3  ;;  %v2697_v41 = vpop.f32.mrf.mxu0 }
 0x666   : > { %v2762_v17 = vpop.f32.mrf.mxu1  ;;  %v2698_v46 = vadd.f32 %v2697_v41, %v7632_v22  ;;  %v2692_v41 = vadd.f32 %v2691_v37, %v7666_v32 }
 0x66c   : > { %v7650_v44 = vpop.f32.mrf.mxu2 }
 0x66d   : > { %v7652_v25 = vpop.f32.mrf.mxu3  ;;  %v2700_v49 = vpop.f32.mrf.mxu0 }
 0x66e   : > { %v2765_v4 = vpop.f32.mrf.mxu1  ;;  %v2701_v56 = vadd.f32 %v2700_v49, %v7656_v40  ;;  %v2695_v49 = vadd.f32 %v2694_v14, %v7664_v12  ;;  %v2689_v14 = vadd.f32 %v7628_v34, %v7638_v62  ;;  %v2751_v34 = vadd.f32 %v7620_v55, %v7683_v36 }
 0x66f   : > { %v2766_v58 = vadd.f32 %v2765_v4, %v7656_v40 }
 0x674   : > { %v7660_v29 = vpop.f32.mrf.mxu2 }
 0x675   : > { %v7662_v7 = vpop.f32.mrf.mxu3  ;;  %v2703_v33 = vpop.f32.mrf.mxu0 }
 0x676   : > { %v2768_v31 = vpop.f32.mrf.mxu1  ;;  %v2704_v16 = vadd.f32 %v2703_v33, %v7654_v2  ;;  %v2763_v33 = vadd.f32 %v2762_v17, %v7632_v22 }
 0x677   : > { %v2769_v45 = vadd.f32 %v2768_v31, %v7654_v2  ;;  %v7697_v31 = vpop.eup %4908 }
 0x67c   : > { %v7674_v10 = vpop.f32.mrf.mxu2 }
 0x67d   : > { %v7676_v23 = vpop.f32.mrf.mxu3  ;;  %v2706_v50 = vpop.f32.mrf.mxu0 }
 0x67e   : > { %v2707_v59 = vadd.f32 %v2706_v50, %v7622_v13  ;;  %v2771_v24 = vpop.f32.mrf.mxu1  ;;  %v7687_v50 = vpop.permute.xlu2 %2601 }
 0x67f   : > { %v2772_v26 = vadd.f32 %v2771_v24, %v7622_v13 }
 0x680   : > { %4910 = vtanh.f32 %v2707_v59 }
 0x681   : > { %4912 = vtanh.f32 %v2772_v26  ;;  %v2760_v26 = vadd.f32 %v2759_v42, %v7664_v12  ;;  %v2754_v42 = vadd.f32 %v7630_v30, %v7638_v62  ;;  %v2683_v30 = vadd.f32 %v7610_v27, %v7687_v50 }
 0x682   : > { %4914 = vtanh.f32 %v2704_v16  ;;  %v2745_v27 = vadd.f32 %v7604_v18, %v7648_v35 }
 0x683   : > { %4916 = vtanh.f32 %v2769_v45  ;;  %v2757_v45 = vadd.f32 %v2756_v21, %v7666_v32  ;;  %v7708_v21 = vpop.permute.xlu1 %2591 }
 0x684   : > { %v7690_v24 = vpop.f32.mrf.mxu2  ;;  %4918 = vtanh.f32 %v2701_v56 }
 0x685   : > { %v7695_v59 = vpop.f32.mrf.mxu3  ;;  %4920 = vtanh.f32 %v2766_v58 }
 0x686   : > { %v4911_v16 = vpop.eup %4910  ;;  %4922 = vtanh.f32 %v2698_v46  ;;  %v2686_v46 = vadd.f32 %v7618_v57, %v7683_v36 }
 0x687   : > { %v4913_v17 = vpop.eup %4912  ;;  %4924 = vtanh.f32 %v2763_v33  ;;  %3082 = vmatpush.msrb.mxu0 %v4911_v16  ;;  %v2748_v16 = vadd.f32 %v7612_v38, %v7687_v50 }
 0x688   : > { %v4915_v4 = vpop.eup %4914  ;;  %4926 = vtanh.f32 %v2695_v49  ;;  %3147 = vmatpush.msrb.mxu1 %v4913_v17 }
 0x689   : > { %v4917_v5 = vpop.eup %4916  ;;  %4928 = vtanh.f32 %v2760_v26  ;;  %3083 = vmatpush.msrb.mxu0 %v4915_v4  ;;  %v7718_v26 = vpop.permute.xlu2 %2586  ;;  %v2677_v4 = vadd.f32 %v7594_v61, %v7708_v21 }
 0x68a   : > { %v4919_v58 = vpop.eup %4918  ;;  %4930 = vtanh.f32 %v2692_v41  ;;  %3148 = vmatpush.msrb.mxu1 %v4917_v5  ;;  %v2680_v41 = vadd.f32 %v7602_v43, %v7648_v35  ;;  %v2674_v5 = vadd.f32 %v7586_v11, %v7718_v26  ;;  %v2736_v11 = vadd.f32 %v7580_v60, %v7658_v3 }
 0x68b   : > { %v4921_v37 = vpop.eup %4920  ;;  %4932 = vtanh.f32 %v2757_v45  ;;  %3084 = vmatpush.msrb.mxu0 %v4919_v58 }
 0x68c   : > { %v7712_v56 = vpop.f32.mrf.mxu2  ;;  %v4923_v33 = vpop.eup %4922  ;;  %4934 = vtanh.f32 %v2689_v14  ;;  %3149 = vmatpush.msrb.mxu1 %v4921_v37  ;;  %v2742_v14 = vadd.f32 %v7596_v6, %v7708_v21 }
 0x68d   : > { %v7716_v49 = vpop.f32.mrf.mxu3  ;;  %v4925_v57 = vpop.eup %4924  ;;  %4936 = vtanh.f32 %v2754_v42  ;;  %3085 = vmatpush.msrb.mxu0 %v4923_v33  ;;  %v2739_v42 = vadd.f32 %v7588_v48, %v7718_v26 }
 0x68e   : > { %v4927_v55 = vpop.eup %4926  ;;  %4938 = vtanh.f32 %v2686_v46  ;;  %3150 = vmatpush.msrb.mxu1 %v4925_v57  ;;  %v2671_v46 = vadd.f32 %v7578_v51, %v7658_v3 }
 0x68f   : > { %v4929_v17 = vpop.eup %4928  ;;  %4940 = vtanh.f32 %v2751_v34  ;;  %3086 = vmatpush.msrb.mxu0 %v4927_v55  ;;  %v7736_v34 = vpop.permute.xlu1 %2576 }
 0x690   : > { %v4931_v45 = vpop.eup %4930  ;;  %4942 = vtanh.f32 %v2683_v30  ;;  %3151 = vmatpush.msrb.mxu1 %v4929_v17  ;;  %v2668_v48 = vadd.f32 %v7574_v19, %v7736_v34  ;;  %v2733_v51 = vadd.f32 %v7576_v52, %v7736_v34 }
 0x691   : > { %v4933_v38 = vpop.eup %4932  ;;  %4944 = vtanh.f32 %v2748_v16  ;;  %3087 = vmatpush.msrb.mxu0 %v4931_v45  ;;  %v7742_v57 = vpop.permute.xlu2 %2571 }
 0x692   : > { %v4935_v43 = vpop.eup %4934  ;;  %4946 = vtanh.f32 %v2680_v41  ;;  %3152 = vmatpush.msrb.mxu1 %v4933_v38  ;;  %v2665_v60 = vadd.f32 %v7570_v54, %v7742_v57  ;;  %v2730_v19 = vadd.f32 %v7572_v0, %v7742_v57 }
 0x693   : > { %v4937_v18 = vpop.eup %4936  ;;  %4948 = vtanh.f32 %v2745_v27  ;;  %3088 = vmatpush.msrb.mxu0 %v4935_v43 }
 0x694   : > { %v2833_v61 = vpop.f32.mrf.mxu2  ;;  %v4939_v58 = vpop.eup %4938  ;;  %4950 = vtanh.f32 %v2677_v4  ;;  %3153 = vmatpush.msrb.mxu1 %v4937_v18 }
 0x695   : > { %v2898_v6 = vpop.f32.mrf.mxu3  ;;  %v4941_v37 = vpop.eup %4940  ;;  %4952 = vtanh.f32 %v2742_v14  ;;  %3089 = vmatpush.msrb.mxu0 %v4939_v58  ;;  %v2834_v45 = vadd.f32 %v2833_v61, %v7654_v2  ;;  %v2828_v58 = vadd.f32 %v7690_v24, %v7632_v22 }
 0x696   : > { %v4943_v33 = vpop.eup %4942  ;;  %4954 = vtanh.f32 %v2674_v5  ;;  %3154 = vmatpush.msrb.mxu1 %v4941_v37  ;;  %v2899_v0 = vadd.f32 %v2898_v6, %v7654_v2  ;;  %v2831_v5 = vadd.f32 %v7712_v56, %v7656_v40  ;;  %v2893_v2 = vadd.f32 %v7695_v59, %v7632_v22  ;;  %v7771_v22 = vld [vmem:[%s8425_s0 + $0x300] sm:$0xff] }
 0x697   : > { %v4945_v30 = vpop.eup %4944  ;;  %4956 = vtanh.f32 %v2739_v42  ;;  %3090 = vmatpush.msrb.mxu0 %v4943_v33  ;;  %v2896_v42 = vadd.f32 %v7716_v49, %v7656_v40  ;;  %v2890_v49 = vadd.f32 %v7676_v23, %v7664_v12  ;;  %v2822_v6 = vadd.f32 %v7660_v29, %v7666_v32 }
 0x698   : > { %v4947_v16 = vpop.eup %4946  ;;  %4958 = vtanh.f32 %v2671_v46  ;;  %3155 = vmatpush.msrb.mxu1 %v4945_v30  ;;  %v2825_v46 = vadd.f32 %v7674_v10, %v7664_v12  ;;  %v2887_v59 = vadd.f32 %v7662_v7, %v7666_v32  ;;  %v2819_v12 = vadd.f32 %v7650_v44, %v7638_v62 }
 0x699   : > { %v4949_v55 = vpop.eup %4948  ;;  %4960 = vtanh.f32 %v2736_v11  ;;  %3091 = vmatpush.msrb.mxu0 %v4947_v16  ;;  %v2884_v37 = vadd.f32 %v7652_v25, %v7638_v62  ;;  %v2816_v32 = vadd.f32 %v7644_v47, %v7683_v36  ;;  %v2813_v62 = vadd.f32 %v7640_v9, %v7687_v50 }
 0x69a   : > { %v4951_v41 = vpop.eup %4950  ;;  %4962 = vtanh.f32 %v2668_v48  ;;  %3156 = vmatpush.msrb.mxu1 %v4949_v55  ;;  %v2878_v11 = vadd.f32 %v7642_v20, %v7687_v50  ;;  %v2810_v33 = vadd.f32 %v7634_v28, %v7648_v35  ;;  %v2807_v20 = vadd.f32 %v7624_v63, %v7708_v21  ;;  %v8599_v55 = vld [vmem:[#allocation10_spill] sm:$0xff] }
 0x69b   : > { %v4953_v17 = vpop.eup %4952  ;;  %4964 = vtanh.f32 %v2733_v51  ;;  %3092 = vmatpush.msrb.mxu0 %v4951_v41  ;;  %v2872_v50 = vadd.f32 %v7626_v39, %v7708_v21  ;;  %v8598_v39 = vld [vmem:[#allocation5_spill] sm:$0xff] }
 0x69c   : > { %v2836_v52 = vpop.f32.mrf.mxu2  ;;  %v4955_v27 = vpop.eup %4954  ;;  %4966 = vtanh.f32 %v2665_v60  ;;  %3157 = vmatpush.msrb.mxu1 %v4953_v17  ;;  %v2801_v21 = vadd.f32 %v8598_v39, %v7658_v3  ;;  %v8600_v41 = vld [vmem:[#allocation13_spill] sm:$0xff] }
 0x69d   : > { %v2837_v54 = vadd.f32 %v2836_v52, %v7622_v13  ;;  %v2901_v4 = vpop.f32.mrf.mxu3  ;;  %v4957_v38 = vpop.eup %4956  ;;  %4968 = vtanh.f32 %v2730_v19  ;;  %3093 = vmatpush.msrb.mxu0 %v4955_v27  ;;  %v2866_v19 = vadd.f32 %v8599_v55, %v7658_v3  ;;  %v2798_v17 = vadd.f32 %v8600_v41, %v7736_v34  ;;  %v8601_v27 = vld [vmem:[#allocation14_spill] sm:$0xff]  ;;  %v8602_v3 = vld [vmem:[#allocation8_spill] sm:$0xff] }
 0x69e   : > { %v2902_v14 = vadd.f32 %v2901_v4, %v7622_v13  ;;  %v4959_v43 = vpop.eup %4958  ;;  %3158 = vmatpush.msrb.mxu1 %v4957_v38  ;;  %v2795_v4 = vadd.f32 %v8602_v3, %v7742_v57 }
 0x69f   : > { %4970 = vtanh.f32 %v2837_v54  ;;  %v4961_v18 = vpop.eup %4960  ;;  %3094 = vmatpush.msrb.mxu0 %v4959_v43 }
 0x6a0   : > { %4972 = vtanh.f32 %v2902_v14  ;;  %v4963_v61 = vpop.eup %4962  ;;  %3159 = vmatpush.msrb.mxu1 %v4961_v18  ;;  %v8605_v18 = vld [vmem:[#allocation3_spill] sm:$0xff] }
 0x6a1   : > { %4974 = vtanh.f32 %v2834_v45  ;;  %v4965_v13 = vpop.eup %4964  ;;  %3095 = vmatpush.msrb.mxu0 %v4963_v61  ;;  %v2863_v45 = vadd.f32 %v8601_v27, %v7736_v34  ;;  %v8606_v61 = vld [vmem:[#allocation12_spill] sm:$0xff] }
 0x6a2   : > { %4976 = vtanh.f32 %v2899_v0  ;;  %v4967_v56 = vpop.eup %4966  ;;  %3160 = vmatpush.msrb.mxu1 %v4965_v13  ;;  %v8603_v0 = vld [vmem:[#allocation7_spill] sm:$0xff] }
 0x6a3   : > { %4978 = vtanh.f32 %v2831_v5  ;;  %v4969_v40 = vpop.eup %4968  ;;  %3096 = vmatpush.msrb.mxu0 %v4967_v56  ;;  %v2860_v14 = vadd.f32 %v8603_v0, %v7742_v57  ;;  %v8604_v5 = vld [vmem:[#allocation6_spill] sm:$0xff]  ;;  %v4179_v56 = vld [vmem:[%s8425_s0 + $0x318] sm:$0xff] }
 0x6a4   : > { %4980 = vtanh.f32 %v2896_v42  ;;  %3161 = vmatpush.msrb.mxu1 %v4969_v40  ;;  %v2792_v42 = vadd.f32 %v8605_v18, %v8604_v5 }
 0x6a5   : > { %v4971_v24 = vpop.eup %4970  ;;  %4982 = vtanh.f32 %v2828_v58  ;;  %3097 = vmatpush.msrb.mxu0 %v7692_v15  ;;  %v2881_v15 = vadd.f32 %v7646_v53, %v7683_v36  ;;  %v7796_v53 = vld [vmem:[%s8425_s0 + $0x308] sm:$0xff]  ;;  %v2875_v36 = vadd.f32 %v7636_v8, %v7648_v35  ;;  %v2804_v8 = vadd.f32 %v7614_v1, %v7718_v26  ;;  %v8597_v35 = vld [vmem:[#allocation16_spill] sm:$0xff] }
 0x6a6   : > { %v4973_v10 = vpop.eup %4972  ;;  %4984 = vtanh.f32 %v2893_v2  ;;  %3212 = vmatpush.msrb.mxu2 %v4971_v24  ;;  %3162 = vmatpush.msrb.mxu1 %v7697_v31  ;;  %v2869_v51 = vadd.f32 %v8597_v35, %v7718_v26  ;;  %v4178_v26 = vld [vmem:[%s8425_s0 + $0x310] sm:$0xff]  ;;  %v2857_v58 = vadd.f32 %v8606_v61, %v8604_v5 }
 0x6a7   : > { %v4975_v23 = vpop.eup %4974  ;;  %4986 = vtanh.f32 %v2825_v46  ;;  %3277 = vmatpush.msrb.mxu3 %v4973_v10  ;;  %3098 = vmatmul.f32.vlgmr.msrb.gmra.mxu0 %v7771_v22 }
 0x6a8   : > { %v4977_v29 = vpop.eup %4976  ;;  %4988 = vtanh.f32 %v2890_v49  ;;  %3163 = vmatmul.f32.vlgmr.msrb.gmra.mxu1 %v7771_v22  ;;  %3213 = vmatpush.msrb.mxu2 %v4975_v23  ;;  %v4180_v23 = vld [vmem:[%s8425_s0 + $0x320] sm:$0xff] }
 0x6a9   : > { %v4979_v7 = vpop.eup %4978  ;;  %4990 = vtanh.f32 %v2822_v6  ;;  %3278 = vmatpush.msrb.mxu3 %v4977_v29  ;;  %v4182_v29 = vld [vmem:[%s8425_s0 + $0x330] sm:$0xff] }
 0x6aa   : > { %v4981_v44 = vpop.eup %4980  ;;  %4992 = vtanh.f32 %v2887_v59  ;;  %3214 = vmatpush.msrb.mxu2 %v4979_v7  ;;  %v4185_v7 = vld [vmem:[%s8425_s0 + $0x348] sm:$0xff] }
 0x6ab   : > { %v4983_v31 = vpop.eup %4982  ;;  %4994 = vtanh.f32 %v2819_v12  ;;  %3279 = vmatpush.msrb.mxu3 %v4981_v44  ;;  %v4181_v12 = vld [vmem:[%s8425_s0 + $0x328] sm:$0xff]  ;;  %v4187_v44 = vld [vmem:[%s8425_s0 + $0x358] sm:$0xff] }
 0x6ac   : > { %v4985_v25 = vpop.eup %4984  ;;  %4996 = vtanh.f32 %v2884_v37  ;;  %3215 = vmatpush.msrb.mxu2 %v4983_v31  ;;  %v4184_v37 = vld [vmem:[%s8425_s0 + $0x340] sm:$0xff]  ;;  %v4189_v31 = vld [vmem:[%s8425_s0 + $0x368] sm:$0xff] }
 0x6ad   : > { %v4987_v47 = vpop.eup %4986  ;;  %4998 = vtanh.f32 %v2816_v32  ;;  %3280 = vmatpush.msrb.mxu3 %v4985_v25  ;;  %v4186_v32 = vld [vmem:[%s8425_s0 + $0x350] sm:$0xff]  ;;  %v4191_v25 = vld [vmem:[%s8425_s0 + $0x378] sm:$0xff] }
 0x6ae   : > { %v4989_v9 = vpop.eup %4988  ;;  %5000 = vtanh.f32 %v2881_v15  ;;  %3216 = vmatpush.msrb.mxu2 %v4987_v47  ;;  %v4188_v15 = vld [vmem:[%s8425_s0 + $0x360] sm:$0xff] }
 0x6af   : > { %v4991_v48 = vpop.eup %4990  ;;  %5002 = vtanh.f32 %v2813_v62  ;;  %3281 = vmatpush.msrb.mxu3 %v4989_v9  ;;  %3101 = vmatmul.f32.gmra.mxu0 %v7796_v53  ;;  %v4190_v62 = vld [vmem:[%s8425_s0 + $0x370] sm:$0xff] }
 0x6b0   : > { %v4993_v28 = vpop.eup %4992  ;;  %5004 = vtanh.f32 %v2878_v11  ;;  %3166 = vmatmul.f32.gmra.mxu1 %v7796_v53  ;;  %3217 = vmatpush.msrb.mxu2 %v4991_v48 }
 0x6b1   : > { %v4995_v30 = vpop.eup %4994  ;;  %5006 = vtanh.f32 %v2810_v33  ;;  %3282 = vmatpush.msrb.mxu3 %v4993_v28 }
 0x6b2   : > { %v4997_v63 = vpop.eup %4996  ;;  %5008 = vtanh.f32 %v2875_v36  ;;  %3218 = vmatpush.msrb.mxu2 %v4995_v30 }
 0x6b3   : > { %v4999_v16 = vpop.eup %4998  ;;  %5010 = vtanh.f32 %v2807_v20  ;;  %3283 = vmatpush.msrb.mxu3 %v4997_v63 }
 0x6b4   : > { %v5001_v60 = vpop.eup %5000  ;;  %5012 = vtanh.f32 %v2872_v50  ;;  %3219 = vmatpush.msrb.mxu2 %v4999_v16 }
 0x6b5   : > { %v5003_v1 = vpop.eup %5002  ;;  %5014 = vtanh.f32 %v2804_v8  ;;  %3284 = vmatpush.msrb.mxu3 %v5001_v60 }
 0x6b6   : > { %v5005_v52 = vpop.eup %5004  ;;  %5016 = vtanh.f32 %v2869_v51  ;;  %3220 = vmatpush.msrb.mxu2 %v5003_v1 }
 0x6b7   : > { %v5007_v54 = vpop.eup %5006  ;;  %5018 = vtanh.f32 %v2801_v21  ;;  %3285 = vmatpush.msrb.mxu3 %v5005_v52  ;;  %3104 = vmatmul.f32.gmra.mxu0 %v4178_v26 }
 0x6b8   : > { %v5009_v38 = vpop.eup %5008  ;;  %5020 = vtanh.f32 %v2866_v19  ;;  %3169 = vmatmul.f32.gmra.mxu1 %v4178_v26  ;;  %3221 = vmatpush.msrb.mxu2 %v5007_v54 }
 0x6b9   : > { %v5011_v43 = vpop.eup %5010  ;;  %5022 = vtanh.f32 %v2798_v17  ;;  %3286 = vmatpush.msrb.mxu3 %v5009_v38 }
 0x6ba   : > { %v5013_v34 = vpop.eup %5012  ;;  %5024 = vtanh.f32 %v2863_v45  ;;  %3222 = vmatpush.msrb.mxu2 %v5011_v43 }
 0x6bb   : > { %v5015_v13 = vpop.eup %5014  ;;  %5026 = vtanh.f32 %v2795_v4  ;;  %3287 = vmatpush.msrb.mxu3 %v5013_v34 }
 0x6bc   : > { %v5017_v57 = vpop.eup %5016  ;;  %5028 = vtanh.f32 %v2860_v14  ;;  %3223 = vmatpush.msrb.mxu2 %v5015_v13 }
 0x6bd   : > { %v5019_v2 = vpop.eup %5018  ;;  %5030 = vtanh.f32 %v2792_v42  ;;  %3288 = vmatpush.msrb.mxu3 %v5017_v57  ;;  %v7942_v57 = vpop.permute.xlu1 %3079 }
 0x6be   : > { %v5021_v46 = vpop.eup %5020  ;;  %5032 = vtanh.f32 %v2857_v58  ;;  %3224 = vmatpush.msrb.mxu2 %v5019_v2 }
 0x6bf   : > { %v5023_v40 = vpop.eup %5022  ;;  %3289 = vmatpush.msrb.mxu3 %v5021_v46  ;;  %3107 = vmatmul.f32.gmra.mxu0 %v4179_v56  ;;  %v7948_v46 = vpop.permute.xlu2 %3074 }
 0x6c0   : > { %v5025_v49 = vpop.eup %5024  ;;  %3172 = vmatmul.f32.gmra.mxu1 %v4179_v56  ;;  %3225 = vmatpush.msrb.mxu2 %v5023_v40 }
 0x6c1   : > { %v5027_v24 = vpop.eup %5026  ;;  %3290 = vmatpush.msrb.mxu3 %v5025_v49 }
 0x6c2   : > { %v5029_v6 = vpop.eup %5028  ;;  %3226 = vmatpush.msrb.mxu2 %v5027_v24  ;;  %v7950_v24 = vpop.permute.xlu0 %3069 }
 0x6c3   : > { %v5031_v10 = vpop.eup %5030  ;;  %3291 = vmatpush.msrb.mxu3 %v5029_v6 }
 0x6c4   : > { %v5033_v59 = vpop.eup %5032  ;;  %3227 = vmatpush.msrb.mxu2 %v5031_v10 }
 0x6c5   : > { %3292 = vmatpush.msrb.mxu3 %v5033_v59  ;;  %3228 = vmatmul.f32.vlgmr.msrb.gmra.mxu2 %v7771_v22  ;;  %v7952_v6 = vpop.permute.xlu1 %3064 }
 0x6c6   : > { %3293 = vmatmul.f32.vlgmr.msrb.gmra.mxu3 %v7771_v22  ;;  %v4183_v22 = vld [vmem:[%s8425_s0 + $0x338] sm:$0xff] }
 0x6c7   : > { %3110 = vmatmul.f32.gmra.mxu0 %v4180_v23 }
 0x6c8   : > { %3175 = vmatmul.f32.gmra.mxu1 %v4180_v23 }
 0x6cd   : > { %3231 = vmatmul.f32.gmra.mxu2 %v7796_v53 }
 0x6ce   : > { %3296 = vmatmul.f32.gmra.mxu3 %v7796_v53 }
 0x6cf   : > { %3113 = vmatmul.f32.gmra.mxu0 %v4181_v12 }
 0x6d0   : > { %3178 = vmatmul.f32.gmra.mxu1 %v4181_v12 }
 0x6d5   : > { %3234 = vmatmul.f32.gmra.mxu2 %v4178_v26 }
 0x6d6   : > { %3299 = vmatmul.f32.gmra.mxu3 %v4178_v26 }
 0x6d7   : > { %3116 = vmatmul.f32.gmra.mxu0 %v4182_v29 }
 0x6d8   : > { %3181 = vmatmul.f32.gmra.mxu1 %v4182_v29 }
 0x6dd   : > { %3237 = vmatmul.f32.gmra.mxu2 %v4179_v56 }
 0x6de   : > { %3302 = vmatmul.f32.gmra.mxu3 %v4179_v56 }
 0x6df   : > { %3119 = vmatmul.f32.gmra.mxu0 %v4183_v22 }
 0x6e0   : > { %3184 = vmatmul.f32.gmra.mxu1 %v4183_v22 }
 0x6e5   : > { %3240 = vmatmul.f32.gmra.mxu2 %v4180_v23 }
 0x6e6   : > { %3305 = vmatmul.f32.gmra.mxu3 %v4180_v23 }
 0x6e7   : > { %3122 = vmatmul.f32.gmra.mxu0 %v4184_v37 }
 0x6e8   : > { %3187 = vmatmul.f32.gmra.mxu1 %v4184_v37 }
 0x6ed   : > { %3243 = vmatmul.f32.gmra.mxu2 %v4181_v12 }
 0x6ee   : > { %3308 = vmatmul.f32.gmra.mxu3 %v4181_v12 }
 0x6ef   : > { %3125 = vmatmul.f32.gmra.mxu0 %v4185_v7 }
 0x6f0   : > { %3190 = vmatmul.f32.gmra.mxu1 %v4185_v7 }
 0x6f5   : > { %3246 = vmatmul.f32.gmra.mxu2 %v4182_v29 }
 0x6f6   : > { %3311 = vmatmul.f32.gmra.mxu3 %v4182_v29  ;;  %v7958_v29 = vpop.permute.xlu2 %3059 }
 0x6f7   : > { %3128 = vmatmul.f32.gmra.mxu0 %v4186_v32 }
 0x6f8   : > { %3193 = vmatmul.f32.gmra.mxu1 %v4186_v32 }
 0x6fd   : > { %3249 = vmatmul.f32.gmra.mxu2 %v4183_v22 }
 0x6fe   : > { %3314 = vmatmul.f32.gmra.mxu3 %v4183_v22  ;;  %v7960_v22 = vpop.permute.xlu0 %3054 }
 0x6ff   : > { %3131 = vmatmul.f32.gmra.mxu0 %v4187_v44 }
 0x700   : > { %3196 = vmatmul.f32.gmra.mxu1 %v4187_v44 }
 0x705   : > { %3252 = vmatmul.f32.gmra.mxu2 %v4184_v37 }
 0x706   : > { %3317 = vmatmul.f32.gmra.mxu3 %v4184_v37 }
 0x707   : > { %3134 = vmatmul.f32.gmra.mxu0 %v4188_v15 }
 0x708   : > { %3199 = vmatmul.f32.gmra.mxu1 %v4188_v15 }
 0x70d   : > { %3255 = vmatmul.f32.gmra.mxu2 %v4185_v7 }
 0x70e   : > { %3320 = vmatmul.f32.gmra.mxu3 %v4185_v7 }
 0x70f   : > { %3137 = vmatmul.f32.gmra.mxu0 %v4189_v31 }
 0x710   : > { %3202 = vmatmul.f32.gmra.mxu1 %v4189_v31 }
 0x715   : > { %3258 = vmatmul.f32.gmra.mxu2 %v4186_v32 }
 0x716   : > { %3323 = vmatmul.f32.gmra.mxu3 %v4186_v32  ;;  %v7966_v32 = vpop.permute.xlu1 %3049 }
 0x717   : > { %3140 = vmatmul.f32.gmra.mxu0 %v4190_v62 }
 0x718   : > { %3205 = vmatmul.f32.gmra.mxu1 %v4190_v62 }
 0x71d   : > { %3261 = vmatmul.f32.gmra.mxu2 %v4187_v44 }
 0x71e   : > { %3326 = vmatmul.f32.gmra.mxu3 %v4187_v44 }
 0x71f   : > { %3143 = vmatmul.f32.gmra.mxu0 %v4191_v25 }
 0x720   : > { %3208 = vmatmul.f32.gmra.mxu1 %v4191_v25 }
 0x724   : > { %v7872_v11 = vpop.f32.mrf.mxu0 }
 0x725   : > { %v7874_v47 = vpop.f32.mrf.mxu1  ;;  %3264 = vmatmul.f32.gmra.mxu2 %v4188_v15 }
 0x726   : > { %3329 = vmatmul.f32.gmra.mxu3 %v4188_v15 }
 0x72c   : > { %v7876_v33 = vpop.f32.mrf.mxu0 }
 0x72d   : > { %v7878_v53 = vpop.f32.mrf.mxu1  ;;  %3267 = vmatmul.f32.gmra.mxu2 %v4189_v31 }
 0x72e   : > { %3332 = vmatmul.f32.gmra.mxu3 %v4189_v31 }
 0x734   : > { %v7880_v9 = vpop.f32.mrf.mxu0 }
 0x735   : > { %v7882_v36 = vpop.f32.mrf.mxu1  ;;  %3270 = vmatmul.f32.gmra.mxu2 %v4190_v62 }
 0x736   : > { %3335 = vmatmul.f32.gmra.mxu3 %v4190_v62 }
 0x73c   : > { %v7884_v48 = vpop.f32.mrf.mxu0 }
 0x73d   : > { %v7886_v20 = vpop.f32.mrf.mxu1  ;;  %3273 = vmatmul.f32.gmra.mxu2 %v4191_v25 }
 0x73e   : > { %3338 = vmatmul.f32.gmra.mxu3 %v4191_v25 }
 0x744   : > { %v7888_v28 = vpop.f32.mrf.mxu0 }
 0x745   : > { %v7890_v50 = vpop.f32.mrf.mxu1 }
 0x748   : > { %v7892_v30 = vpop.f32.mrf.mxu2 }
 0x749   : > { %8607 = vst [vmem:[#allocation21_spill] sm:$0xff] %v7892_v30  ;;  %v7894_v8 = vpop.f32.mrf.mxu3  ;;  %v7972_v30 = vpop.permute.xlu2 %3044 }
 0x74a   : > { %8608 = vst [vmem:[#allocation15_spill] sm:$0xff] %v7894_v8 }
 0x74c   : > { %v7896_v63 = vpop.f32.mrf.mxu0 }
 0x74d   : > { %v7898_v35 = vpop.f32.mrf.mxu1 }
 0x750   : > { %v7900_v51 = vpop.f32.mrf.mxu2 }
 0x751   : > { %8609 = vst [vmem:[#allocation19_spill] sm:$0xff] %v7900_v51  ;;  %v7902_v16 = vpop.f32.mrf.mxu3 }
 0x752   : > { %8610 = vst [vmem:[#allocation11_spill] sm:$0xff] %v7902_v16 }
 0x754   : > { %v7904_v39 = vpop.f32.mrf.mxu0 }
 0x755   : > { %v7906_v21 = vpop.f32.mrf.mxu1 }
 0x758   : > { %v7908_v60 = vpop.f32.mrf.mxu2 }
 0x759   : > { %8611 = vst [vmem:[#allocation20_spill] sm:$0xff] %v7908_v60  ;;  %v7910_v55 = vpop.f32.mrf.mxu3 }
 0x75a   : > { %8612 = vst [vmem:[#allocation2_spill] sm:$0xff] %v7910_v55 }
 0x75c   : > { %v7912_v19 = vpop.f32.mrf.mxu0 }
 0x75d   : > { %v7914_v1 = vpop.f32.mrf.mxu1 }
 0x760   : > { %v7916_v41 = vpop.f32.mrf.mxu2 }
 0x761   : > { %v7918_v17 = vpop.f32.mrf.mxu3 }
 0x762   : > { %8613 = vst [vmem:[#allocation9_spill] sm:$0xff] %v7918_v17 }
 0x764   : > { %v7920_v26 = vpop.f32.mrf.mxu0 }
 0x765   : > { %v7922_v52 = vpop.f32.mrf.mxu1 }
 0x768   : > { %v7924_v27 = vpop.f32.mrf.mxu2 }
 0x769   : > { %v7926_v45 = vpop.f32.mrf.mxu3 }
 0x76c   : > { %v3126_v54 = vpop.f32.mrf.mxu0 }
 0x76d   : > { %v7928_v3 = vpop.f32.mrf.mxu1 }
 0x770   : > { %v7930_v4 = vpop.f32.mrf.mxu2 }
 0x771   : > { %v7932_v38 = vpop.f32.mrf.mxu3 }
 0x774   : > { %v3129_v0 = vpop.f32.mrf.mxu0 }
 0x775   : > { %v3194_v14 = vpop.f32.mrf.mxu1 }
 0x778   : > { %v7934_v43 = vpop.f32.mrf.mxu2 }
 0x779   : > { %v7936_v5 = vpop.f32.mrf.mxu3 }
 0x77c   : > { %v3132_v18 = vpop.f32.mrf.mxu0 }
 0x77d   : > { %v3197_v42 = vpop.f32.mrf.mxu1 }
 0x780   : > { %v7938_v34 = vpop.f32.mrf.mxu2 }
 0x781   : > { %v7940_v61 = vpop.f32.mrf.mxu3 }
 0x784   : > { %v3135_v58 = vpop.f32.mrf.mxu0 }
 0x785   : > { %v3200_v13 = vpop.f32.mrf.mxu1 }
 0x788   : > { %v7944_v2 = vpop.f32.mrf.mxu2 }
 0x789   : > { %v7946_v56 = vpop.f32.mrf.mxu3 }
 0x78c   : > { %v3138_v40 = vpop.f32.mrf.mxu0 }
 0x78d   : > { %v3203_v49 = vpop.f32.mrf.mxu1  ;;  %v3139_v16 = vadd.f32 %v3138_v40, %v7950_v24  ;;  %v3133_v40 = vadd.f32 %v3132_v18, %v7958_v29 }
 0x78e   : > { %v3204_v51 = vadd.f32 %v3203_v49, %v7950_v24  ;;  %v3198_v49 = vadd.f32 %v3197_v42, %v7958_v29 }
 0x790   : > { %v7954_v10 = vpop.f32.mrf.mxu2 }
 0x791   : > { %v7956_v59 = vpop.f32.mrf.mxu3 }
 0x794   : > { %v3141_v23 = vpop.f32.mrf.mxu0 }
 0x795   : > { %v3206_v12 = vpop.f32.mrf.mxu1  ;;  %v3142_v31 = vadd.f32 %v3141_v23, %v7948_v46  ;;  %v3136_v23 = vadd.f32 %v3135_v58, %v7952_v6  ;;  %v3195_v58 = vadd.f32 %v3194_v14, %v7960_v22  ;;  %v3124_v14 = vadd.f32 %v7920_v26, %v7972_v30 }
 0x796   : > { %v3207_v8 = vadd.f32 %v3206_v12, %v7948_v46  ;;  %v7984_v12 = vpop.permute.xlu1 %3034 }
 0x798   : > { %v7962_v37 = vpop.f32.mrf.mxu2 }
 0x799   : > { %v7964_v7 = vpop.f32.mrf.mxu3 }
 0x79c   : > { %v3144_v44 = vpop.f32.mrf.mxu0 }
 0x79d   : > { %v3209_v15 = vpop.f32.mrf.mxu1  ;;  %v3145_v62 = vadd.f32 %v3144_v44, %v7942_v57  ;;  %v7981_v44 = vpop.permute.xlu0 %3039 }
 0x79e   : > { %v3210_v25 = vadd.f32 %v3209_v15, %v7942_v57  ;;  %v3201_v15 = vadd.f32 %v3200_v13, %v7952_v6  ;;  %v3186_v26 = vadd.f32 %v7914_v1, %v7981_v44 }
 0x79f   : > { %5034 = vtanh.f32 %v3145_v62 }
 0x7a0   : > { %5036 = vtanh.f32 %v3210_v25  ;;  %v7976_v55 = vpop.f32.mrf.mxu2  ;;  %v3130_v25 = vadd.f32 %v3129_v0, %v7960_v22 }
 0x7a1   : > { %v7978_v60 = vpop.f32.mrf.mxu3  ;;  %5038 = vtanh.f32 %v3142_v31 }
 0x7a2   : > { %5040 = vtanh.f32 %v3207_v8  ;;  %v3127_v8 = vadd.f32 %v3126_v54, %v7966_v32  ;;  %v7999_v54 = vpop.permute.xlu2 %3029 }
 0x7a3   : > { %5042 = vtanh.f32 %v3139_v16  ;;  %v3192_v16 = vadd.f32 %v7928_v3, %v7966_v32  ;;  %v3115_v1 = vadd.f32 %v7896_v63, %v7999_v54 }
 0x7a4   : > { %5044 = vtanh.f32 %v3204_v51 }
 0x7a5   : > { %v5035_v62 = vpop.eup %5034  ;;  %5046 = vtanh.f32 %v3136_v23  ;;  %v3121_v23 = vadd.f32 %v7912_v19, %v7981_v44  ;;  %v3183_v19 = vadd.f32 %v7906_v21, %v7984_v12 }
 0x7a6   : > { %v5037_v17 = vpop.eup %5036  ;;  %5048 = vtanh.f32 %v3201_v15  ;;  %3520 = vmatpush.msra.mxu0 %v5035_v62  ;;  %v8009_v62 = vpop.permute.xlu1 %3019 }
 0x7a7   : > { %v5039_v31 = vpop.eup %5038  ;;  %5050 = vtanh.f32 %v3133_v40  ;;  %3585 = vmatpush.msra.mxu1 %v5037_v17  ;;  %v3189_v17 = vadd.f32 %v7922_v52, %v7972_v30  ;;  %v8005_v40 = vpop.permute.xlu0 %3024  ;;  %v3118_v52 = vadd.f32 %v7904_v39, %v7984_v12 }
 0x7a8   : > { %v5041_v13 = vpop.eup %5040  ;;  %5052 = vtanh.f32 %v3198_v49  ;;  %v7993_v51 = vpop.f32.mrf.mxu2  ;;  %3521 = vmatpush.msra.mxu0 %v5039_v31  ;;  %v3112_v21 = vadd.f32 %v7888_v28, %v8005_v40  ;;  %v3177_v63 = vadd.f32 %v7890_v50, %v8005_v40  ;;  %v3174_v28 = vadd.f32 %v7886_v20, %v8009_v62 }
 0x7a9   : > { %v7995_v18 = vpop.f32.mrf.mxu3  ;;  %v5043_v0 = vpop.eup %5042  ;;  %5054 = vtanh.f32 %v3130_v25  ;;  %3586 = vmatpush.msra.mxu1 %v5041_v13 }
 0x7aa   : > { %v5045_v42 = vpop.eup %5044  ;;  %5056 = vtanh.f32 %v3195_v58  ;;  %3522 = vmatpush.msra.mxu0 %v5043_v0 }
 0x7ab   : > { %v5047_v3 = vpop.eup %5046  ;;  %5058 = vtanh.f32 %v3127_v8  ;;  %3587 = vmatpush.msra.mxu1 %v5045_v42  ;;  %v3180_v8 = vadd.f32 %v7898_v35, %v7999_v54  ;;  %v3109_v35 = vadd.f32 %v7884_v48, %v8009_v62 }
 0x7ac   : > { %v5049_v15 = vpop.eup %5048  ;;  %5060 = vtanh.f32 %v3192_v16  ;;  %3523 = vmatpush.msra.mxu0 %v5047_v3 }
 0x7ad   : > { %v5051_v49 = vpop.eup %5050  ;;  %5062 = vtanh.f32 %v3124_v14  ;;  %3588 = vmatpush.msra.mxu1 %v5049_v15 }
 0x7ae   : > { %v5053_v25 = vpop.eup %5052  ;;  %5064 = vtanh.f32 %v3189_v17  ;;  %3524 = vmatpush.msra.mxu0 %v5051_v49  ;;  %v8029_v17 = vpop.permute.xlu2 %3014 }
 0x7af   : > { %v5055_v58 = vpop.eup %5054  ;;  %5066 = vtanh.f32 %v3121_v23  ;;  %3589 = vmatpush.msra.mxu1 %v5053_v25  ;;  %v3106_v50 = vadd.f32 %v7880_v9, %v8029_v17  ;;  %v8035_v15 = vpop.permute.xlu0 %3009  ;;  %v3171_v48 = vadd.f32 %v7882_v36, %v8029_v17 }
 0x7b0   : > { %v5057_v31 = vpop.eup %5056  ;;  %5068 = vtanh.f32 %v3186_v26  ;;  %v8019_v39 = vpop.f32.mrf.mxu2  ;;  %3525 = vmatpush.msra.mxu0 %v5055_v58  ;;  %v3103_v20 = vadd.f32 %v7876_v33, %v8035_v15  ;;  %v3168_v9 = vadd.f32 %v7878_v53, %v8035_v15 }
 0x7b1   : > { %v8021_v13 = vpop.f32.mrf.mxu3  ;;  %v5059_v16 = vpop.eup %5058  ;;  %5070 = vtanh.f32 %v3118_v52  ;;  %3590 = vmatpush.msra.mxu1 %v5057_v31 }
 0x7b2   : > { %v5061_v0 = vpop.eup %5060  ;;  %5072 = vtanh.f32 %v3183_v19  ;;  %3526 = vmatpush.msra.mxu0 %v5059_v16  ;;  %v8039_v49 = vpop.permute.xlu1 %3004 }
 0x7b3   : > { %v5063_v14 = vpop.eup %5062  ;;  %5074 = vtanh.f32 %v3115_v1  ;;  %3591 = vmatpush.msra.mxu1 %v5061_v0  ;;  %v3100_v36 = vadd.f32 %v7872_v11, %v8039_v49  ;;  %v3165_v33 = vadd.f32 %v7874_v47, %v8039_v49 }
 0x7b4   : > { %v5065_v42 = vpop.eup %5064  ;;  %5076 = vtanh.f32 %v3180_v8  ;;  %3527 = vmatpush.msra.mxu0 %v5063_v14 }
 0x7b5   : > { %v5067_v3 = vpop.eup %5066  ;;  %5078 = vtanh.f32 %v3112_v21  ;;  %3592 = vmatpush.msra.mxu1 %v5065_v42 }
 0x7b6   : > { %v5069_v23 = vpop.eup %5068  ;;  %5080 = vtanh.f32 %v3177_v63  ;;  %3528 = vmatpush.msra.mxu0 %v5067_v3 }
 0x7b7   : > { %v5071_v26 = vpop.eup %5070  ;;  %5082 = vtanh.f32 %v3109_v35  ;;  %3593 = vmatpush.msra.mxu1 %v5069_v23 }
 0x7b8   : > { %v5073_v52 = vpop.eup %5072  ;;  %5084 = vtanh.f32 %v3174_v28  ;;  %v3271_v25 = vpop.f32.mrf.mxu2  ;;  %3529 = vmatpush.msra.mxu0 %v5071_v26 }
 0x7b9   : > { %v3336_v19 = vpop.f32.mrf.mxu3  ;;  %v5075_v58 = vpop.eup %5074  ;;  %5086 = vtanh.f32 %v3106_v50  ;;  %3594 = vmatpush.msra.mxu1 %v5073_v52  ;;  %v3272_v14 = vadd.f32 %v3271_v25, %v7948_v46  ;;  %v8056_v50 = vld [vmem:[%s8425_s0 + $0x380] sm:$0xff] }
 0x7ba   : > { %v5077_v1 = vpop.eup %5076  ;;  %5088 = vtanh.f32 %v3171_v48  ;;  %3530 = vmatpush.msra.mxu0 %v5075_v58  ;;  %v3337_v3 = vadd.f32 %v3336_v19, %v7948_v46  ;;  %v3269_v48 = vadd.f32 %v8019_v39, %v7950_v24  ;;  %v3266_v46 = vadd.f32 %v7993_v51, %v7952_v6 }
 0x7bb   : > { %v5079_v31 = vpop.eup %5078  ;;  %5090 = vtanh.f32 %v3103_v20  ;;  %3595 = vmatpush.msra.mxu1 %v5077_v1  ;;  %v3331_v20 = vadd.f32 %v7995_v18, %v7952_v6  ;;  %v3263_v39 = vadd.f32 %v7976_v55, %v7958_v29  ;;  %v3260_v51 = vadd.f32 %v7962_v37, %v7960_v22  ;;  %v8079_v55 = vld [vmem:[%s8425_s0 + $0x388] sm:$0xff] }
 0x7bc   : > { %v5081_v53 = vpop.eup %5080  ;;  %5092 = vtanh.f32 %v3168_v9  ;;  %3531 = vmatpush.msra.mxu0 %v5079_v31  ;;  %v3325_v6 = vadd.f32 %v7964_v7, %v7960_v22  ;;  %v3322_v37 = vadd.f32 %v7956_v59, %v7966_v32  ;;  %v3254_v7 = vadd.f32 %v7944_v2, %v7972_v30 }
 0x7bd   : > { %v5083_v8 = vpop.eup %5082  ;;  %5094 = vtanh.f32 %v3100_v36  ;;  %3596 = vmatpush.msra.mxu1 %v5081_v53  ;;  %v3251_v59 = vadd.f32 %v7938_v34, %v7981_v44  ;;  %v3316_v2 = vadd.f32 %v7940_v61, %v7981_v44  ;;  %v3313_v58 = vadd.f32 %v7936_v5, %v7984_v12  ;;  %v8102_v34 = vld [vmem:[%s8425_s0 + $0x390] sm:$0xff] }
 0x7be   : > { %v5085_v16 = vpop.eup %5084  ;;  %5096 = vtanh.f32 %v3165_v33  ;;  %3532 = vmatpush.msra.mxu0 %v5083_v8  ;;  %v3245_v44 = vadd.f32 %v7930_v4, %v7999_v54  ;;  %v3310_v36 = vadd.f32 %v7932_v38, %v7999_v54  ;;  %v3307_v4 = vadd.f32 %v7926_v45, %v8005_v40  ;;  %v8615_v8 = vld [vmem:[#allocation20_spill] sm:$0xff] }
 0x7bf   : > { %v5087_v11 = vpop.eup %5086  ;;  %3597 = vmatpush.msra.mxu1 %v5085_v16  ;;  %v3239_v38 = vadd.f32 %v7916_v41, %v8009_v62  ;;  %v3236_v45 = vadd.f32 %v8615_v8, %v8029_v17  ;;  %v8616_v16 = vld [vmem:[#allocation2_spill] sm:$0xff]  ;;  %v4211_v41 = vld [vmem:[%s8425_s0 + $0x398] sm:$0xff] }
 0x7c0   : > { %v5089_v21 = vpop.eup %5088  ;;  %v3274_v0 = vpop.f32.mrf.mxu2  ;;  %3533 = vmatpush.msra.mxu0 %v5087_v11  ;;  %v3301_v11 = vadd.f32 %v8616_v16, %v8029_v17  ;;  %v8619_v17 = vld [vmem:[#allocation21_spill] sm:$0xff] }
 0x7c1   : > { %v3339_v63 = vpop.f32.mrf.mxu3  ;;  %v5091_v47 = vpop.eup %5090  ;;  %v3275_v35 = vadd.f32 %v3274_v0, %v7942_v57  ;;  %3598 = vmatpush.msra.mxu1 %v5089_v21 }
 0x7c2   : > { %v3340_v42 = vadd.f32 %v3339_v63, %v7942_v57  ;;  %v5093_v28 = vpop.eup %5092  ;;  %3534 = vmatpush.msra.mxu0 %v5091_v47  ;;  %v3334_v57 = vadd.f32 %v8021_v13, %v7950_v24  ;;  %v3328_v24 = vadd.f32 %v7978_v60, %v7958_v29  ;;  %v3257_v60 = vadd.f32 %v7954_v10, %v7966_v32  ;;  %v8618_v47 = vld [vmem:[#allocation11_spill] sm:$0xff] }
 0x7c3   : > { %v5095_v23 = vpop.eup %5094  ;;  %5098 = vtanh.f32 %v3275_v35  ;;  %3599 = vmatpush.msra.mxu1 %v5093_v28  ;;  %v3319_v10 = vadd.f32 %v7946_v56, %v7972_v30  ;;  %v3248_v30 = vadd.f32 %v7934_v43, %v7984_v12  ;;  %v3242_v12 = vadd.f32 %v7924_v27, %v8005_v40  ;;  %v8614_v27 = vld [vmem:[#allocation9_spill] sm:$0xff] }
 0x7c4   : > { %v5097_v26 = vpop.eup %5096  ;;  %5100 = vtanh.f32 %v3340_v42  ;;  %3535 = vmatpush.msra.mxu0 %v5095_v23  ;;  %v3304_v31 = vadd.f32 %v8614_v27, %v8009_v62  ;;  %v8617_v62 = vld [vmem:[#allocation19_spill] sm:$0xff]  ;;  %v3230_v42 = vadd.f32 %v8619_v17, %v8039_v49 }
 0x7c5   : > { %5102 = vtanh.f32 %v3272_v14  ;;  %3600 = vmatpush.msra.mxu1 %v5097_v26  ;;  %3536 = vmatmul.f32.vlgmr.msra.gmra.mxu0 %v8056_v50  ;;  %v3233_v0 = vadd.f32 %v8617_v62, %v8035_v15  ;;  %v3298_v14 = vadd.f32 %v8618_v47, %v8035_v15 }
 0x7c6   : > { %5104 = vtanh.f32 %v3337_v3  ;;  %3601 = vmatmul.f32.vlgmr.msra.gmra.mxu1 %v8056_v50  ;;  %v8620_v3 = vld [vmem:[#allocation15_spill] sm:$0xff] }
 0x7c7   : > { %5106 = vtanh.f32 %v3269_v48  ;;  %v3295_v23 = vadd.f32 %v8620_v3, %v8039_v49  ;;  %v8243_v3 = vpop.permute.xlu2 %3517 }
 0x7c8   : > { %5108 = vtanh.f32 %v3334_v57 }
 0x7c9   : > { %v5099_v13 = vpop.eup %5098  ;;  %5110 = vtanh.f32 %v3266_v46  ;;  %v4212_v46 = vld [vmem:[%s8425_s0 + $0x3a0] sm:$0xff] }
 0x7ca   : > { %v5101_v52 = vpop.eup %5100  ;;  %5112 = vtanh.f32 %v3331_v20  ;;  %3650 = vmatpush.msra.mxu2 %v5099_v13 }
 0x7cb   : > { %v5103_v18 = vpop.eup %5102  ;;  %5114 = vtanh.f32 %v3263_v39  ;;  %3715 = vmatpush.msra.mxu3 %v5101_v52  ;;  %v4213_v52 = vld [vmem:[%s8425_s0 + $0x3a8] sm:$0xff] }
 0x7cc   : > { %v5105_v29 = vpop.eup %5104  ;;  %5116 = vtanh.f32 %v3328_v24  ;;  %3651 = vmatpush.msra.mxu2 %v5103_v18  ;;  %v4217_v18 = vld [vmem:[%s8425_s0 + $0x3c8] sm:$0xff] }
 0x7cd   : > { %v5107_v22 = vpop.eup %5106  ;;  %5118 = vtanh.f32 %v3260_v51  ;;  %3716 = vmatpush.msra.mxu3 %v5105_v29  ;;  %3539 = vmatmul.f32.gmra.mxu0 %v8079_v55  ;;  %v4219_v29 = vld [vmem:[%s8425_s0 + $0x3d8] sm:$0xff] }
 0x7ce   : > { %v5109_v9 = vpop.eup %5108  ;;  %5120 = vtanh.f32 %v3325_v6  ;;  %3604 = vmatmul.f32.gmra.mxu1 %v8079_v55  ;;  %3652 = vmatpush.msra.mxu2 %v5107_v22  ;;  %v4214_v6 = vld [vmem:[%s8425_s0 + $0x3b0] sm:$0xff]  ;;  %v4221_v22 = vld [vmem:[%s8425_s0 + $0x3e8] sm:$0xff] }
 0x7cf   : > { %v5111_v25 = vpop.eup %5110  ;;  %5122 = vtanh.f32 %v3257_v60  ;;  %3717 = vmatpush.msra.mxu3 %v5109_v9  ;;  %v4218_v60 = vld [vmem:[%s8425_s0 + $0x3d0] sm:$0xff]  ;;  %v4223_v9 = vld [vmem:[%s8425_s0 + $0x3f8] sm:$0xff] }
 0x7d0   : > { %v5113_v32 = vpop.eup %5112  ;;  %5124 = vtanh.f32 %v3322_v37  ;;  %3653 = vmatpush.msra.mxu2 %v5111_v25  ;;  %v4220_v37 = vld [vmem:[%s8425_s0 + $0x3e0] sm:$0xff] }
 0x7d1   : > { %v5115_v19 = vpop.eup %5114  ;;  %5126 = vtanh.f32 %v3254_v7  ;;  %3718 = vmatpush.msra.mxu3 %v5113_v32  ;;  %v4222_v7 = vld [vmem:[%s8425_s0 + $0x3f0] sm:$0xff] }
 0x7d2   : > { %v5117_v56 = vpop.eup %5116  ;;  %5128 = vtanh.f32 %v3319_v10  ;;  %3654 = vmatpush.msra.mxu2 %v5115_v19 }
 0x7d3   : > { %v5119_v61 = vpop.eup %5118  ;;  %5130 = vtanh.f32 %v3251_v59  ;;  %3719 = vmatpush.msra.mxu3 %v5117_v56 }
 0x7d4   : > { %v5121_v43 = vpop.eup %5120  ;;  %5132 = vtanh.f32 %v3316_v2  ;;  %3655 = vmatpush.msra.mxu2 %v5119_v61 }
 0x7d5   : > { %v5123_v5 = vpop.eup %5122  ;;  %5134 = vtanh.f32 %v3248_v30  ;;  %3720 = vmatpush.msra.mxu3 %v5121_v43  ;;  %3542 = vmatmul.f32.gmra.mxu0 %v8102_v34 }
 0x7d6   : > { %v5125_v1 = vpop.eup %5124  ;;  %5136 = vtanh.f32 %v3313_v58  ;;  %3607 = vmatmul.f32.gmra.mxu1 %v8102_v34  ;;  %3656 = vmatpush.msra.mxu2 %v5123_v5 }
 0x7d7   : > { %v5127_v33 = vpop.eup %5126  ;;  %5138 = vtanh.f32 %v3245_v44  ;;  %3721 = vmatpush.msra.mxu3 %v5125_v1 }
 0x7d8   : > { %v5129_v54 = vpop.eup %5128  ;;  %5140 = vtanh.f32 %v3310_v36  ;;  %3657 = vmatpush.msra.mxu2 %v5127_v33 }
 0x7d9   : > { %v5131_v53 = vpop.eup %5130  ;;  %5142 = vtanh.f32 %v3242_v12  ;;  %3722 = vmatpush.msra.mxu3 %v5129_v54 }
 0x7da   : > { %v5133_v40 = vpop.eup %5132  ;;  %5144 = vtanh.f32 %v3307_v4  ;;  %3658 = vmatpush.msra.mxu2 %v5131_v53 }
 0x7db   : > { %v5135_v21 = vpop.eup %5134  ;;  %5146 = vtanh.f32 %v3239_v38  ;;  %3723 = vmatpush.msra.mxu3 %v5133_v40 }
 0x7dc   : > { %v5137_v63 = vpop.eup %5136  ;;  %5148 = vtanh.f32 %v3304_v31  ;;  %3659 = vmatpush.msra.mxu2 %v5135_v21 }
 0x7dd   : > { %v5139_v35 = vpop.eup %5138  ;;  %5150 = vtanh.f32 %v3236_v45  ;;  %3724 = vmatpush.msra.mxu3 %v5137_v63  ;;  %3545 = vmatmul.f32.gmra.mxu0 %v4211_v41 }
 0x7de   : > { %v5141_v28 = vpop.eup %5140  ;;  %5152 = vtanh.f32 %v3301_v11  ;;  %3610 = vmatmul.f32.gmra.mxu1 %v4211_v41  ;;  %3660 = vmatpush.msra.mxu2 %v5139_v35 }
 0x7df   : > { %v5143_v48 = vpop.eup %5142  ;;  %5154 = vtanh.f32 %v3233_v0  ;;  %3725 = vmatpush.msra.mxu3 %v5141_v28 }
 0x7e0   : > { %v5145_v15 = vpop.eup %5144  ;;  %5156 = vtanh.f32 %v3298_v14  ;;  %3661 = vmatpush.msra.mxu2 %v5143_v48 }
 0x7e1   : > { %v5147_v26 = vpop.eup %5146  ;;  %5158 = vtanh.f32 %v3230_v42  ;;  %3726 = vmatpush.msra.mxu3 %v5145_v15  ;;  %v8249_v15 = vpop.permute.xlu0 %3512 }
 0x7e2   : > { %v5149_v57 = vpop.eup %5148  ;;  %5160 = vtanh.f32 %v3295_v23  ;;  %3662 = vmatpush.msra.mxu2 %v5147_v26 }
 0x7e3   : > { %v5151_v49 = vpop.eup %5150  ;;  %3727 = vmatpush.msra.mxu3 %v5149_v57 }
 0x7e4   : > { %v5153_v20 = vpop.eup %5152  ;;  %3663 = vmatpush.msra.mxu2 %v5151_v49 }
 0x7e5   : > { %v5155_v39 = vpop.eup %5154  ;;  %3728 = vmatpush.msra.mxu3 %v5153_v20  ;;  %3548 = vmatmul.f32.gmra.mxu0 %v4212_v46 }
 0x7e6   : > { %v5157_v24 = vpop.eup %5156  ;;  %3613 = vmatmul.f32.gmra.mxu1 %v4212_v46  ;;  %3664 = vmatpush.msra.mxu2 %v5155_v39  ;;  %v8257_v39 = vpop.permute.xlu2 %3502 }
 0x7e7   : > { %v5159_v13 = vpop.eup %5158  ;;  %3729 = vmatpush.msra.mxu3 %v5157_v24 }
 0x7e8   : > { %v5161_v51 = vpop.eup %5160  ;;  %3665 = vmatpush.msra.mxu2 %v5159_v13 }
 0x7e9   : > { %3730 = vmatpush.msra.mxu3 %v5161_v51  ;;  %3666 = vmatmul.f32.vlgmr.msra.gmra.mxu2 %v8056_v50  ;;  %v8259_v51 = vpop.permute.xlu0 %3497 }
 0x7ea   : > { %3731 = vmatmul.f32.vlgmr.msra.gmra.mxu3 %v8056_v50  ;;  %v4215_v50 = vld [vmem:[%s8425_s0 + $0x3b8] sm:$0xff] }
 0x7ed   : > { %3551 = vmatmul.f32.gmra.mxu0 %v4213_v52 }
 0x7ee   : > { %3616 = vmatmul.f32.gmra.mxu1 %v4213_v52 }
 0x7f1   : > { %3669 = vmatmul.f32.gmra.mxu2 %v8079_v55 }
 0x7f2   : > { %3734 = vmatmul.f32.gmra.mxu3 %v8079_v55  ;;  %v4216_v55 = vld [vmem:[%s8425_s0 + $0x3c0] sm:$0xff] }
 0x7f5   : > { %3554 = vmatmul.f32.gmra.mxu0 %v4214_v6 }
 0x7f6   : > { %3619 = vmatmul.f32.gmra.mxu1 %v4214_v6 }
 0x7f9   : > { %3672 = vmatmul.f32.gmra.mxu2 %v8102_v34 }
 0x7fa   : > { %3737 = vmatmul.f32.gmra.mxu3 %v8102_v34 }
 0x7fd   : > { %3557 = vmatmul.f32.gmra.mxu0 %v4215_v50 }
 0x7fe   : > { %3622 = vmatmul.f32.gmra.mxu1 %v4215_v50 }
 0x801   : > { %3675 = vmatmul.f32.gmra.mxu2 %v4211_v41 }
 0x802   : > { %3740 = vmatmul.f32.gmra.mxu3 %v4211_v41 }
 0x805   : > { %3560 = vmatmul.f32.gmra.mxu0 %v4216_v55 }
 0x806   : > { %3625 = vmatmul.f32.gmra.mxu1 %v4216_v55 }
 0x809   : > { %3678 = vmatmul.f32.gmra.mxu2 %v4212_v46 }
 0x80a   : > { %3743 = vmatmul.f32.gmra.mxu3 %v4212_v46  ;;  %v8251_v46 = vpop.permute.xlu1 %3507 }
 0x80d   : > { %3563 = vmatmul.f32.gmra.mxu0 %v4217_v18 }
 0x80e   : > { %3628 = vmatmul.f32.gmra.mxu1 %v4217_v18 }
 0x811   : > { %3681 = vmatmul.f32.gmra.mxu2 %v4213_v52 }
 0x812   : > { %3746 = vmatmul.f32.gmra.mxu3 %v4213_v52 }
 0x815   : > { %3566 = vmatmul.f32.gmra.mxu0 %v4218_v60 }
 0x816   : > { %3631 = vmatmul.f32.gmra.mxu1 %v4218_v60 }
 0x819   : > { %3684 = vmatmul.f32.gmra.mxu2 %v4214_v6 }
 0x81a   : > { %3749 = vmatmul.f32.gmra.mxu3 %v4214_v6 }
 0x81d   : > { %3569 = vmatmul.f32.gmra.mxu0 %v4219_v29 }
 0x81e   : > { %3634 = vmatmul.f32.gmra.mxu1 %v4219_v29 }
 0x821   : > { %3687 = vmatmul.f32.gmra.mxu2 %v4215_v50 }
 0x822   : > { %3752 = vmatmul.f32.gmra.mxu3 %v4215_v50  ;;  %v8265_v50 = vpop.permute.xlu1 %3492 }
 0x825   : > { %3572 = vmatmul.f32.gmra.mxu0 %v4220_v37 }
 0x826   : > { %3637 = vmatmul.f32.gmra.mxu1 %v4220_v37 }
 0x829   : > { %3690 = vmatmul.f32.gmra.mxu2 %v4216_v55 }
 0x82a   : > { %3755 = vmatmul.f32.gmra.mxu3 %v4216_v55  ;;  %v8267_v55 = vpop.permute.xlu2 %3487 }
 0x82d   : > { %3575 = vmatmul.f32.gmra.mxu0 %v4221_v22 }
 0x82e   : > { %3640 = vmatmul.f32.gmra.mxu1 %v4221_v22 }
 0x831   : > { %3693 = vmatmul.f32.gmra.mxu2 %v4217_v18 }
 0x832   : > { %3758 = vmatmul.f32.gmra.mxu3 %v4217_v18 }
 0x835   : > { %3578 = vmatmul.f32.gmra.mxu0 %v4222_v7 }
 0x836   : > { %3643 = vmatmul.f32.gmra.mxu1 %v4222_v7 }
 0x839   : > { %3696 = vmatmul.f32.gmra.mxu2 %v4218_v60 }
 0x83a   : > { %3761 = vmatmul.f32.gmra.mxu3 %v4218_v60 }
 0x83d   : > { %3581 = vmatmul.f32.gmra.mxu0 %v4223_v9 }
 0x83e   : > { %3646 = vmatmul.f32.gmra.mxu1 %v4223_v9 }
 0x841   : > { %3699 = vmatmul.f32.gmra.mxu2 %v4219_v29 }
 0x842   : > { %3764 = vmatmul.f32.gmra.mxu3 %v4219_v29  ;;  %v8175_v10 = vpop.f32.mrf.mxu0 }
 0x843   : > { %v8177_v25 = vpop.f32.mrf.mxu1 }
 0x849   : > { %3702 = vmatmul.f32.gmra.mxu2 %v4220_v37 }
 0x84a   : > { %3767 = vmatmul.f32.gmra.mxu3 %v4220_v37  ;;  %v8179_v59 = vpop.f32.mrf.mxu0 }
 0x84b   : > { %v8181_v32 = vpop.f32.mrf.mxu1 }
 0x851   : > { %3705 = vmatmul.f32.gmra.mxu2 %v4221_v22 }
 0x852   : > { %3770 = vmatmul.f32.gmra.mxu3 %v4221_v22  ;;  %v8183_v2 = vpop.f32.mrf.mxu0 }
 0x853   : > { %v8185_v19 = vpop.f32.mrf.mxu1 }
 0x859   : > { %3708 = vmatmul.f32.gmra.mxu2 %v4222_v7 }
 0x85a   : > { %3773 = vmatmul.f32.gmra.mxu3 %v4222_v7  ;;  %v8187_v30 = vpop.f32.mrf.mxu0 }
 0x85b   : > { %v8189_v56 = vpop.f32.mrf.mxu1 }
 0x861   : > { %3711 = vmatmul.f32.gmra.mxu2 %v4223_v9 }
 0x862   : > { %3776 = vmatmul.f32.gmra.mxu3 %v4223_v9  ;;  %v8191_v58 = vpop.f32.mrf.mxu0 }
 0x863   : > { %v8193_v34 = vpop.f32.mrf.mxu1 }
 0x86a   : > { %v8195_v61 = vpop.f32.mrf.mxu0 }
 0x86b   : > { %v8197_v44 = vpop.f32.mrf.mxu1 }
 0x86c   : > { %v8199_v43 = vpop.f32.mrf.mxu2 }
 0x86d   : > { %8621 = vst [vmem:[#allocation4_spill] sm:$0xff] %v8199_v43  ;;  %v8201_v36 = vpop.f32.mrf.mxu3 }
 0x86e   : > { %8622 = vst [vmem:[#allocation18_spill] sm:$0xff] %v8201_v36 }
 0x872   : > { %v8203_v5 = vpop.f32.mrf.mxu0 }
 0x873   : > { %v8205_v12 = vpop.f32.mrf.mxu1 }
 0x874   : > { %v8207_v1 = vpop.f32.mrf.mxu2 }
 0x875   : > { %8623 = vst [vmem:[#allocation17_spill] sm:$0xff] %v8207_v1  ;;  %v8209_v4 = vpop.f32.mrf.mxu3 }
 0x876   : > { %8624 = vst [vmem:[#allocation16_spill] sm:$0xff] %v8209_v4  ;;  %v8278_v4 = vpop.permute.xlu0 %3482 }
 0x87a   : > { %v8211_v33 = vpop.f32.mrf.mxu0 }
 0x87b   : > { %v8213_v38 = vpop.f32.mrf.mxu1 }
 0x87c   : > { %v8215_v54 = vpop.f32.mrf.mxu2 }
 0x87d   : > { %v8217_v27 = vpop.f32.mrf.mxu3 }
 0x87e   : > { %8625 = vst [vmem:[#allocation5_spill] sm:$0xff] %v8217_v27 }
 0x882   : > { %v8219_v31 = vpop.f32.mrf.mxu0 }
 0x883   : > { %v8221_v53 = vpop.f32.mrf.mxu1 }
 0x884   : > { %v8223_v8 = vpop.f32.mrf.mxu2 }
 0x885   : > { %v8225_v45 = vpop.f32.mrf.mxu3 }
 0x88a   : > { %v8227_v40 = vpop.f32.mrf.mxu0 }
 0x88b   : > { %v8229_v16 = vpop.f32.mrf.mxu1 }
 0x88c   : > { %v8231_v11 = vpop.f32.mrf.mxu2 }
 0x88d   : > { %v8233_v41 = vpop.f32.mrf.mxu3 }
 0x892   : > { %v3567_v21 = vpop.f32.mrf.mxu0 }
 0x893   : > { %v3632_v62 = vpop.f32.mrf.mxu1 }
 0x894   : > { %v8235_v0 = vpop.f32.mrf.mxu2 }
 0x895   : > { %v8237_v63 = vpop.f32.mrf.mxu3 }
 0x89a   : > { %v3570_v47 = vpop.f32.mrf.mxu0 }
 0x89b   : > { %v3635_v14 = vpop.f32.mrf.mxu1 }
 0x89c   : > { %v8239_v35 = vpop.f32.mrf.mxu2 }
 0x89d   : > { %v8241_v17 = vpop.f32.mrf.mxu3 }
 0x8a2   : > { %v3573_v42 = vpop.f32.mrf.mxu0 }
 0x8a3   : > { %v3638_v28 = vpop.f32.mrf.mxu1 }
 0x8a4   : > { %v8245_v23 = vpop.f32.mrf.mxu2 }
 0x8a5   : > { %v8247_v48 = vpop.f32.mrf.mxu3 }
 0x8aa   : > { %v3576_v26 = vpop.f32.mrf.mxu0 }
 0x8ab   : > { %v3641_v57 = vpop.f32.mrf.mxu1  ;;  %v3577_v36 = vadd.f32 %v3576_v26, %v8251_v46  ;;  %v8286_v26 = vpop.permute.xlu2 %3472 }
 0x8ac   : > { %v8253_v49 = vpop.f32.mrf.mxu2  ;;  %v3642_v1 = vadd.f32 %v3641_v57, %v8251_v46  ;;  %v3568_v57 = vadd.f32 %v3567_v21, %v8265_v50  ;;  %v3630_v21 = vadd.f32 %v8229_v16, %v8267_v55 }
 0x8ad   : > { %v8255_v20 = vpop.f32.mrf.mxu3 }
 0x8b2   : > { %v3579_v24 = vpop.f32.mrf.mxu0 }
 0x8b3   : > { %v3644_v13 = vpop.f32.mrf.mxu1  ;;  %v3580_v60 = vadd.f32 %v3579_v24, %v8249_v15  ;;  %v3574_v24 = vadd.f32 %v3573_v42, %v8257_v39  ;;  %v3633_v42 = vadd.f32 %v3632_v62, %v8265_v50  ;;  %v3562_v62 = vadd.f32 %v8219_v31, %v8278_v4 }
 0x8b4   : > { %v8261_v52 = vpop.f32.mrf.mxu2  ;;  %v3645_v22 = vadd.f32 %v3644_v13, %v8249_v15  ;;  %v3639_v13 = vadd.f32 %v3638_v28, %v8257_v39 }
 0x8b5   : > { %v8263_v6 = vpop.f32.mrf.mxu3 }
 0x8ba   : > { %v3582_v18 = vpop.f32.mrf.mxu0 }
 0x8bb   : > { %v3583_v29 = vadd.f32 %v3582_v18, %v8243_v3  ;;  %v3647_v37 = vpop.f32.mrf.mxu1  ;;  %v8282_v18 = vpop.permute.xlu1 %3477 }
 0x8bc   : > { %v3648_v7 = vadd.f32 %v3647_v37, %v8243_v3  ;;  %v8273_v9 = vpop.f32.mrf.mxu2  ;;  %v3571_v37 = vadd.f32 %v3570_v47, %v8259_v51  ;;  %v3559_v16 = vadd.f32 %v8211_v33, %v8282_v18  ;;  %v3624_v31 = vadd.f32 %v8213_v38, %v8282_v18 }
 0x8bd   : > { %5162 = vtanh.f32 %v3583_v29  ;;  %v8276_v43 = vpop.f32.mrf.mxu3  ;;  %v3636_v29 = vadd.f32 %v3635_v14, %v8259_v51  ;;  %v3621_v33 = vadd.f32 %v8205_v12, %v8286_v26 }
 0x8be   : > { %5164 = vtanh.f32 %v3648_v7 }
 0x8bf   : > { %5166 = vtanh.f32 %v3580_v60 }
 0x8c0   : > { %5168 = vtanh.f32 %v3645_v22  ;;  %v8301_v22 = vpop.permute.xlu0 %3467 }
 0x8c1   : > { %5170 = vtanh.f32 %v3577_v36  ;;  %v3565_v36 = vadd.f32 %v8227_v40, %v8267_v55  ;;  %v3627_v40 = vadd.f32 %v8221_v53, %v8278_v4  ;;  %v3556_v53 = vadd.f32 %v8203_v5, %v8286_v26 }
 0x8c2   : > { %5172 = vtanh.f32 %v3642_v1  ;;  %v3553_v38 = vadd.f32 %v8195_v61, %v8301_v22 }
 0x8c3   : > { %v5163_v27 = vpop.eup %5162  ;;  %5174 = vtanh.f32 %v3574_v24 }
 0x8c4   : > { %v5165_v7 = vpop.eup %5164  ;;  %5176 = vtanh.f32 %v3639_v13  ;;  %v8291_v60 = vpop.f32.mrf.mxu2  ;;  %3846 = vmatpush.msrb.mxu0 %v5163_v27 }
 0x8c5   : > { %v5167_v28 = vpop.eup %5166  ;;  %5178 = vtanh.f32 %v3571_v37  ;;  %v8295_v47 = vpop.f32.mrf.mxu3  ;;  %3866 = vmatpush.msrb.mxu1 %v5165_v7 }
 0x8c6   : > { %v5169_v1 = vpop.eup %5168  ;;  %5180 = vtanh.f32 %v3636_v29  ;;  %3847 = vmatpush.msrb.mxu0 %v5167_v28  ;;  %v8307_v37 = vpop.permute.xlu1 %3462 }
 0x8c7   : > { %v5171_v14 = vpop.eup %5170  ;;  %5182 = vtanh.f32 %v3568_v57  ;;  %3867 = vmatpush.msrb.mxu1 %v5169_v1  ;;  %v8313_v7 = vpop.permute.xlu2 %3457  ;;  %v3618_v1 = vadd.f32 %v8197_v44, %v8301_v22  ;;  %v3550_v12 = vadd.f32 %v8191_v58, %v8307_v37  ;;  %v3615_v61 = vadd.f32 %v8193_v34, %v8307_v37 }
 0x8c8   : > { %v5173_v27 = vpop.eup %5172  ;;  %5184 = vtanh.f32 %v3633_v42  ;;  %3848 = vmatpush.msrb.mxu0 %v5171_v14  ;;  %v3612_v58 = vadd.f32 %v8189_v56, %v8313_v7 }
 0x8c9   : > { %v5175_v24 = vpop.eup %5174  ;;  %5186 = vtanh.f32 %v3565_v36  ;;  %3868 = vmatpush.msrb.mxu1 %v5173_v27  ;;  %v3547_v27 = vadd.f32 %v8187_v30, %v8313_v7 }
 0x8ca   : > { %v5177_v13 = vpop.eup %5176  ;;  %5188 = vtanh.f32 %v3630_v21  ;;  %3849 = vmatpush.msrb.mxu0 %v5175_v24 }
 0x8cb   : > { %v5179_v29 = vpop.eup %5178  ;;  %5190 = vtanh.f32 %v3562_v62  ;;  %3869 = vmatpush.msrb.mxu1 %v5177_v13 }
 0x8cc   : > { %v5181_v57 = vpop.eup %5180  ;;  %5192 = vtanh.f32 %v3627_v40  ;;  %v8317_v42 = vpop.f32.mrf.mxu2  ;;  %3850 = vmatpush.msrb.mxu0 %v5179_v29 }
 0x8cd   : > { %v5183_v28 = vpop.eup %5182  ;;  %5194 = vtanh.f32 %v3559_v16  ;;  %v8321_v36 = vpop.f32.mrf.mxu3  ;;  %3870 = vmatpush.msrb.mxu1 %v5181_v57 }
 0x8ce   : > { %v5185_v5 = vpop.eup %5184  ;;  %5196 = vtanh.f32 %v3624_v31  ;;  %3851 = vmatpush.msrb.mxu0 %v5183_v28  ;;  %v8331_v40 = vpop.permute.xlu0 %3452 }
 0x8cf   : > { %v5187_v21 = vpop.eup %5186  ;;  %5198 = vtanh.f32 %v3556_v53  ;;  %3871 = vmatpush.msrb.mxu1 %v5185_v5  ;;  %v3544_v34 = vadd.f32 %v8183_v2, %v8331_v40  ;;  %v8337_v13 = vpop.permute.xlu1 %3447  ;;  %v3609_v30 = vadd.f32 %v8185_v19, %v8331_v40 }
 0x8d0   : > { %v5189_v14 = vpop.eup %5188  ;;  %5200 = vtanh.f32 %v3621_v33  ;;  %3852 = vmatpush.msrb.mxu0 %v5187_v21  ;;  %v3541_v56 = vadd.f32 %v8179_v59, %v8337_v13  ;;  %v8343_v2 = vpop.permute.xlu2 %3442  ;;  %v3606_v33 = vadd.f32 %v8181_v32, %v8337_v13 }
 0x8d1   : > { %v5191_v62 = vpop.eup %5190  ;;  %5202 = vtanh.f32 %v3553_v38  ;;  %3872 = vmatpush.msrb.mxu1 %v5189_v14  ;;  %v3538_v19 = vadd.f32 %v8175_v10, %v8343_v2  ;;  %v3603_v59 = vadd.f32 %v8177_v25, %v8343_v2 }
 0x8d2   : > { %v5193_v44 = vpop.eup %5192  ;;  %5204 = vtanh.f32 %v3618_v1  ;;  %3853 = vmatpush.msrb.mxu0 %v5191_v62 }
 0x8d3   : > { %v5195_v24 = vpop.eup %5194  ;;  %5206 = vtanh.f32 %v3550_v12  ;;  %3873 = vmatpush.msrb.mxu1 %v5193_v44 }
 0x8d4   : > { %v5197_v16 = vpop.eup %5196  ;;  %5208 = vtanh.f32 %v3615_v61  ;;  %v3706_v31 = vpop.f32.mrf.mxu2  ;;  %3854 = vmatpush.msrb.mxu0 %v5195_v24 }
 0x8d5   : > { %v5199_v29 = vpop.eup %5198  ;;  %5210 = vtanh.f32 %v3547_v27  ;;  %v3771_v53 = vpop.f32.mrf.mxu3  ;;  %3874 = vmatpush.msrb.mxu1 %v5197_v16  ;;  %v8354_v27 = vld [vmem:[%s8425_s0 + $0x400] sm:$0xff] }
 0x8d6   : > { %v5201_v57 = vpop.eup %5200  ;;  %5212 = vtanh.f32 %v3612_v58  ;;  %3855 = vmatpush.msrb.mxu0 %v5199_v29 }
 0x8d7   : > { %v5203_v28 = vpop.eup %5202  ;;  %5214 = vtanh.f32 %v3544_v34  ;;  %3875 = vmatpush.msrb.mxu1 %v5201_v57  ;;  %v3707_v57 = vadd.f32 %v3706_v31, %v8251_v46 }
 0x8d8   : > { %v5205_v38 = vpop.eup %5204  ;;  %5216 = vtanh.f32 %v3609_v30  ;;  %3856 = vmatpush.msrb.mxu0 %v5203_v28  ;;  %v3704_v28 = vadd.f32 %v8317_v42, %v8257_v39  ;;  %v3763_v42 = vadd.f32 %v8276_v43, %v8265_v50 }
 0x8d9   : > { %v5207_v5 = vpop.eup %5206  ;;  %5218 = vtanh.f32 %v3541_v56  ;;  %3876 = vmatpush.msrb.mxu1 %v5205_v38  ;;  %v3701_v38 = vadd.f32 %v8291_v60, %v8259_v51  ;;  %v3695_v60 = vadd.f32 %v8261_v52, %v8267_v55 }
 0x8da   : > { %v5209_v1 = vpop.eup %5208  ;;  %5220 = vtanh.f32 %v3606_v33  ;;  %3857 = vmatpush.msrb.mxu0 %v5207_v5  ;;  %v3772_v33 = vadd.f32 %v3771_v53, %v8251_v46  ;;  %v3698_v46 = vadd.f32 %v8273_v9, %v8265_v50  ;;  %v3757_v50 = vadd.f32 %v8255_v20, %v8278_v4 }
 0x8db   : > { %v5211_v32 = vpop.eup %5210  ;;  %5222 = vtanh.f32 %v3538_v19  ;;  %3877 = vmatpush.msrb.mxu1 %v5209_v1  ;;  %v3769_v19 = vadd.f32 %v8321_v36, %v8257_v39  ;;  %v3689_v53 = vadd.f32 %v8245_v23, %v8282_v18  ;;  %v3751_v20 = vadd.f32 %v8241_v17, %v8286_v26 }
 0x8dc   : > { %v5213_v21 = vpop.eup %5212  ;;  %5224 = vtanh.f32 %v3603_v59  ;;  %v3709_v10 = vpop.f32.mrf.mxu2  ;;  %3858 = vmatpush.msrb.mxu0 %v5211_v32  ;;  %v3686_v59 = vadd.f32 %v8239_v35, %v8286_v26  ;;  %v3683_v5 = vadd.f32 %v8235_v0, %v8301_v22  ;;  %v3680_v1 = vadd.f32 %v8231_v11, %v8307_v37 }
 0x8dd   : > { %v5215_v12 = vpop.eup %5214  ;;  %v3774_v14 = vpop.f32.mrf.mxu3  ;;  %3878 = vmatpush.msrb.mxu1 %v5213_v21  ;;  %v3710_v34 = vadd.f32 %v3709_v10, %v8249_v15  ;;  %v3745_v26 = vadd.f32 %v8233_v41, %v8307_v37  ;;  %v3677_v32 = vadd.f32 %v8223_v8, %v8313_v7  ;;  %v3674_v21 = vadd.f32 %v8215_v54, %v8331_v40  ;;  %v8626_v37 = vld [vmem:[#allocation5_spill] sm:$0xff] }
 0x8de   : > { %v5217_v61 = vpop.eup %5216  ;;  %3859 = vmatpush.msrb.mxu0 %v5215_v12  ;;  %v3775_v29 = vadd.f32 %v3774_v14, %v8249_v15  ;;  %v3739_v10 = vadd.f32 %v8626_v37, %v8331_v40  ;;  %v8627_v12 = vld [vmem:[#allocation17_spill] sm:$0xff] }
 0x8df   : > { %v5219_v25 = vpop.eup %5218  ;;  %3879 = vmatpush.msrb.mxu1 %v5217_v61  ;;  %v3671_v14 = vadd.f32 %v8627_v12, %v8337_v13 }
 0x8e0   : > { %v5221_v62 = vpop.eup %5220  ;;  %3860 = vmatpush.msrb.mxu0 %v5219_v25  ;;  %v8629_v25 = vld [vmem:[#allocation4_spill] sm:$0xff] }
 0x8e1   : > { %v5223_v44 = vpop.eup %5222  ;;  %3880 = vmatpush.msrb.mxu1 %v5221_v62  ;;  %v3668_v62 = vadd.f32 %v8629_v25, %v8343_v2 }
 0x8e2   : > { %v5225_v58 = vpop.eup %5224  ;;  %3861 = vmatpush.msrb.mxu0 %v5223_v44  ;;  %v8630_v44 = vld [vmem:[#allocation18_spill] sm:$0xff] }
 0x8e3   : > { %3881 = vmatpush.msrb.mxu1 %v5225_v58  ;;  %3862 = vmatmul.f32.vlgmr.msrb.gmra.mxu0 %v8354_v27  ;;  %v3733_v58 = vadd.f32 %v8630_v44, %v8343_v2 }
 0x8e4   : > { %3882 = vmatmul.f32.vlgmr.msrb.gmra.mxu1 %v8354_v27  ;;  %v3712_v24 = vpop.f32.mrf.mxu2 }
 0x8e5   : > { %v3713_v16 = vadd.f32 %v3712_v24, %v8243_v3  ;;  %v3777_v30 = vpop.f32.mrf.mxu3 }
 0x8e6   : > { %v3778_v56 = vadd.f32 %v3777_v30, %v8243_v3  ;;  %v3766_v3 = vadd.f32 %v8295_v47, %v8259_v51  ;;  %v3760_v51 = vadd.f32 %v8263_v6, %v8267_v55  ;;  %v3692_v47 = vadd.f32 %v8253_v49, %v8278_v4 }
 0x8e7   : > { %5226 = vtanh.f32 %v3713_v16  ;;  %v3754_v55 = vadd.f32 %v8247_v48, %v8282_v18  ;;  %v3748_v18 = vadd.f32 %v8237_v63, %v8301_v22  ;;  %v3742_v22 = vadd.f32 %v8225_v45, %v8313_v7  ;;  %v8628_v7 = vld [vmem:[#allocation16_spill] sm:$0xff] }
 0x8e8   : > { %5228 = vtanh.f32 %v3778_v56  ;;  %v3736_v61 = vadd.f32 %v8628_v7, %v8337_v13 }
 0x8e9   : > { %5230 = vtanh.f32 %v3710_v34 }
 0x8ea   : > { %5232 = vtanh.f32 %v3775_v29 }
 0x8eb   : > { %5234 = vtanh.f32 %v3707_v57 }
 0x8ec   : > { %5236 = vtanh.f32 %v3772_v33 }
 0x8ed   : > { %v5227_v15 = vpop.eup %5226  ;;  %5238 = vtanh.f32 %v3704_v28 }
 0x8ee   : > { %v5229_v31 = vpop.eup %5228  ;;  %5240 = vtanh.f32 %v3769_v19  ;;  %3886 = vmatpush.msrb.mxu2 %v5227_v15  ;;  %v3931_v19 = vpop.permute.xlu0 %3930 }
 0x8ef   : > { %v5231_v39 = vpop.eup %5230  ;;  %5242 = vtanh.f32 %v3701_v38  ;;  %3906 = vmatpush.msrb.mxu3 %v5229_v31 }
 0x8f0   : > { %v5233_v36 = vpop.eup %5232  ;;  %5244 = vtanh.f32 %v3766_v3  ;;  %3887 = vmatpush.msrb.mxu2 %v5231_v39 }
 0x8f1   : > { %v5235_v9 = vpop.eup %5234  ;;  %5246 = vtanh.f32 %v3698_v46  ;;  %3907 = vmatpush.msrb.mxu3 %v5233_v36 }
 0x8f2   : > { %v5237_v43 = vpop.eup %5236  ;;  %5248 = vtanh.f32 %v3763_v42  ;;  %3888 = vmatpush.msrb.mxu2 %v5235_v9  ;;  %v3951_v42 = vlaneseq }
 0x8f3   : > { %v5239_v52 = vpop.eup %5238  ;;  %5250 = vtanh.f32 %v3695_v60  ;;  %3908 = vmatpush.msrb.mxu3 %v5237_v43 }
 0x8f4   : > { %v5241_v6 = vpop.eup %5240  ;;  %5252 = vtanh.f32 %v3760_v51  ;;  %3889 = vmatpush.msrb.mxu2 %v5239_v52  ;;  %vm3953_vm4 = vcmp.lt.s32.totalorder %v3951_v42, 512 }
 0x8f5   : > { %v5243_v49 = vpop.eup %5242  ;;  %5254 = vtanh.f32 %v3692_v47  ;;  %3909 = vmatpush.msrb.mxu3 %v5241_v6 }
 0x8f6   : > { %v5245_v4 = vpop.eup %5244  ;;  %5256 = vtanh.f32 %v3757_v50  ;;  %3890 = vmatpush.msrb.mxu2 %v5243_v49 }
 0x8f7   : > { %v5247_v23 = vpop.eup %5246  ;;  %5258 = vtanh.f32 %v3689_v53  ;;  %3910 = vmatpush.msrb.mxu3 %v5245_v4 }
 0x8f8   : > { %v5249_v48 = vpop.eup %5248  ;;  %5260 = vtanh.f32 %v3754_v55  ;;  %3891 = vmatpush.msrb.mxu2 %v5247_v23 }
 0x8f9   : > { %v5251_v35 = vpop.eup %5250  ;;  %5262 = vtanh.f32 %v3686_v59  ;;  %3911 = vmatpush.msrb.mxu3 %v5249_v48 }
 0x8fa   : > { %v5253_v17 = vpop.eup %5252  ;;  %5264 = vtanh.f32 %v3751_v20  ;;  %3892 = vmatpush.msrb.mxu2 %v5251_v35 }
 0x8fb   : > { %v5255_v0 = vpop.eup %5254  ;;  %5266 = vtanh.f32 %v3683_v5  ;;  %3912 = vmatpush.msrb.mxu3 %v5253_v17 }
 0x8fc   : > { %v5257_v63 = vpop.eup %5256  ;;  %5268 = vtanh.f32 %v3748_v18  ;;  %3893 = vmatpush.msrb.mxu2 %v5255_v0 }
 0x8fd   : > { %v5259_v11 = vpop.eup %5258  ;;  %5270 = vtanh.f32 %v3680_v1  ;;  %3913 = vmatpush.msrb.mxu3 %v5257_v63 }
 0x8fe   : > { %v5261_v41 = vpop.eup %5260  ;;  %5272 = vtanh.f32 %v3745_v26  ;;  %3894 = vmatpush.msrb.mxu2 %v5259_v11 }
 0x8ff   : > { %v5263_v8 = vpop.eup %5262  ;;  %5274 = vtanh.f32 %v3677_v32  ;;  %3914 = vmatpush.msrb.mxu3 %v5261_v41 }
 0x900   : > { %v5265_v45 = vpop.eup %5264  ;;  %5276 = vtanh.f32 %v3742_v22  ;;  %3895 = vmatpush.msrb.mxu2 %v5263_v8 }
 0x901   : > { %v5267_v54 = vpop.eup %5266  ;;  %5278 = vtanh.f32 %v3674_v21  ;;  %3915 = vmatpush.msrb.mxu3 %v5265_v45 }
 0x902   : > { %v5269_v40 = vpop.eup %5268  ;;  %5280 = vtanh.f32 %v3739_v10  ;;  %3896 = vmatpush.msrb.mxu2 %v5267_v54 }
 0x903   : > { %v5271_v24 = vpop.eup %5270  ;;  %5282 = vtanh.f32 %v3671_v14  ;;  %3916 = vmatpush.msrb.mxu3 %v5269_v40 }
 0x904   : > { %v5273_v34 = vpop.eup %5272  ;;  %5284 = vtanh.f32 %v3736_v61  ;;  %3897 = vmatpush.msrb.mxu2 %v5271_v24 }
 0x905   : > { %v5275_v13 = vpop.eup %5274  ;;  %5286 = vtanh.f32 %v3668_v62  ;;  %3917 = vmatpush.msrb.mxu3 %v5273_v34 }
 0x906   : > { %v5277_v16 = vpop.eup %5276  ;;  %5288 = vtanh.f32 %v3733_v58  ;;  %3898 = vmatpush.msrb.mxu2 %v5275_v13 }
 0x907   : > { %v5279_v30 = vpop.eup %5278  ;;  %3918 = vmatpush.msrb.mxu3 %v5277_v16 }
 0x908   : > { %v5281_v29 = vpop.eup %5280  ;;  %3899 = vmatpush.msrb.mxu2 %v5279_v30 }
 0x909   : > { %v5283_v56 = vpop.eup %5282  ;;  %3919 = vmatpush.msrb.mxu3 %v5281_v29 }
 0x90a   : > { %v5285_v2 = vpop.eup %5284  ;;  %3900 = vmatpush.msrb.mxu2 %v5283_v56 }
 0x90b   : > { %v5287_v57 = vpop.eup %5286  ;;  %3920 = vmatpush.msrb.mxu3 %v5285_v2 }
 0x90c   : > { %v5289_v33 = vpop.eup %5288  ;;  %3901 = vmatpush.msrb.mxu2 %v5287_v57 }
 0x90d   : > { %3921 = vmatpush.msrb.mxu3 %v5289_v33  ;;  %3902 = vmatmul.f32.vlgmr.msrb.gmra.mxu2 %v8354_v27 }
 0x90e   : > { %3922 = vmatmul.f32.vlgmr.msrb.gmra.mxu3 %v8354_v27 }
 0x960   : > { %v3863_v15 = vpop.f32.mrf.mxu0 }
 0x961   : > { %v3883_v28 = vpop.f32.mrf.mxu1  ;;  %v3933_v51 = vadd.f32 %v3931_v19, %v3863_v15 }
 0x962   : > { %v3934_v38 = vadd.f32 %v3931_v19, %v3883_v28 }
 0x964   : > { %v3941_v39 = vrot.slane %v3934_v38, 7 }
 0x966   : > { %v3945_v27 = vsel %vm3944_vm1, %v3933_v51, %v3941_v39 }
 0x990   : > { %v3903_v3 = vpop.f32.mrf.mxu2 }
 0x991   : > { %v3935_v46 = vadd.f32 %v3931_v19, %v3903_v3  ;;  %v3923_v31 = vpop.f32.mrf.mxu3 }
 0x992   : > { %v3936_v60 = vadd.f32 %v3931_v19, %v3923_v31 }
 0x993   : > { %v3942_v36 = vrot.slane %v3935_v46, 6 }
 0x994   : > { %v3943_v9 = vrot.slane %v3936_v60, 5 }
 0x996   : > { %v3947_v47 = vsel %vm3946_vm2, %v3942_v36, %v3943_v9 }
 0x997   : > { %v3949_v43 = vsel %vm3948_vm3, %v3945_v27, %v3947_v47 }
 0x998   : > { %3955 = vst.msk [vmem:[%s170_s9] sm:$0xf] %vm3953_vm4, %v3949_v43 }
 0x999 PF: > { %s13_s12 = sadd.s32 1, %s5296_s12  }
 0x99a   : > { %p10_p4 = scmp.ge.s32.totalorder %s13_s12, 4  }
 0x99c   :  { %12 = sbr.rel (!%p10_p4) target bundleno = 1 (0x1), region = 79 }

</bundles_post_ra>
